<compile_context>
chip_gen: v7x
topology: tpu7x:2x2x1
jax: 0.10.0
libtpu: 0.0.40
codegen_flags: <defaults>
</compile_context>

<pallas_src>
import functools

import jax
import jax.numpy as jnp
from jax.experimental import pallas as pl
from jax.experimental.pallas import tpu as pltpu

# bitsandbytes NF4 codebook (16 levels)
NF4_CODE = (
    -1.0, -0.6961928009986877, -0.5250730514526367, -0.39491748809814453,
    -0.28444138169288635, -0.18477343022823334, -0.09105003625154495, 0.0,
    0.07958029955625534, 0.16093020141124725, 0.24611230194568634,
    0.33791524171829224, 0.44070982933044434, 0.5626170039176941,
    0.7229568362236023, 1.0,
)

# bitsandbytes FP4 codebook (e2m1, sign in MSB), normalized to [-1, 1]
FP4_CODE = (
    0.0, 0.0052083333, 0.6666667, 1.0, 0.3333333, 0.5, 0.1666667, 0.25,
    -0.0, -0.0052083333, -0.6666667, -1.0, -0.3333333, -0.5, -0.1666667, -0.25,
)

QBLOCK = 64  # bitsandbytes default 4-bit quantization block size


def _round_up(a, b):
    return (a + b - 1) // b * b


def quantize_4bit(w, blocksize=QBLOCK):
    """Host-side synthetic quantization mimicking NF4Quantization.quantize.

    Codes are packed two per byte by K-halves: byte j of a row holds original
    K column j in the low nibble and column j + K/2 in the high nibble.
    Returns (packed_codes uint8 (N, K//2), absmax scales f32 (N, K//blocksize),
    quant_type).
    """
    max_val = float(jnp.max(w))
    min_val = float(jnp.min(w))
    ratio = -(min_val / max_val)
    quant_type = "fp4" if (ratio < 0.5 or ratio > 2.0) else "nf4"
    cb = jnp.asarray(FP4_CODE if quant_type == "fp4" else NF4_CODE, jnp.float32)

    n, k = w.shape
    assert k % blocksize == 0 and k % 2 == 0
    flat = w.reshape(-1, blocksize)
    absmax = jnp.max(jnp.abs(flat), axis=1, keepdims=True)
    absmax = jnp.where(absmax == 0.0, 1.0, absmax)          # zero-block guard
    normed = flat / absmax
    codes = jnp.argmin(jnp.abs(normed[..., None] - cb[None, None, :]), axis=-1)
    codes = codes.astype(jnp.int32).reshape(n, k)

    kh = k // 2
    packed = jnp.bitwise_or(codes[:, :kh],
                            jnp.left_shift(codes[:, kh:], 4)).astype(jnp.uint8)
    scales = absmax.reshape(n, k // blocksize).astype(jnp.float32)
    return packed, scales, quant_type


def _qlinear_kernel(x_ref, packed_ref, slo_ref, shi_ref, expand_ref, o_ref,
                    wlo_ref, whi_ref, *, codebook, kh):
    # NOTE: the decode-once-per-N-tile scheme requires the M axis (grid axis 1)
    # to stay the innermost, sequentially iterated ("arbitrary") axis so the
    # VMEM scratch filled at m == 0 is valid for every subsequent m step.
    m = pl.program_id(1)

    @pl.when(m == 0)
    def _decode():
        packed = packed_ref[...].astype(jnp.int32)              # (tn, Kh) 0..255
        lo = jnp.bitwise_and(packed, 0xF)                       # K cols [0, Kh)
        hi = jnp.bitwise_and(jnp.right_shift(packed, 4), 0xF)   # K cols [Kh, K)

        def lookup(codes):
            # 4-level binary select tree over the 16-entry codebook:
            # 4 bit tests + 8 + 4 + 2 + 1 selects (vs 15 compares + 15 selects).
            b0 = jnp.bitwise_and(codes, 1) > 0
            b1 = jnp.bitwise_and(codes, 2) > 0
            b2 = jnp.bitwise_and(codes, 4) > 0
            b3 = jnp.bitwise_and(codes, 8) > 0
            v = [jnp.float32(c) for c in codebook]
            l0 = [jnp.where(b0, v[2 * i + 1], v[2 * i]) for i in range(8)]
            l1 = [jnp.where(b1, l0[2 * i + 1], l0[2 * i]) for i in range(4)]
            l2 = [jnp.where(b2, l1[2 * i + 1], l1[2 * i]) for i in range(2)]
            return jnp.where(b3, l2[1], l2[0])

        # Broadcast per-block absmax along K via a tiny bf16 MXU matmul against
        # the host-precomputed 0/1 block-expansion matrix (no iota/select chain).
        expand = expand_ref[...]                                 # (KBh, Kh) bf16
        scale_lo = jnp.dot(slo_ref[...], expand,
                           preferred_element_type=jnp.float32)  # (tn, Kh)
        scale_hi = jnp.dot(shi_ref[...], expand,
                           preferred_element_type=jnp.float32)  # (tn, Kh)

        # bf16 storage of the scaled weights adds ~0.5% rounding on top of the
        # 4-bit quantization (the reference dequant is f32); covered by the
        # test tolerance.
        wlo_ref[...] = (lookup(lo) * scale_lo).astype(jnp.bfloat16)
        whi_ref[...] = (lookup(hi) * scale_hi).astype(jnp.bfloat16)

    # y = x[:, :Kh] @ w_lo.T + x[:, Kh:] @ w_hi.T   (bf16 MXU, f32 accumulate)
    xe = x_ref[:, pl.ds(0, kh)]
    xo = x_ref[:, pl.ds(kh, kh)]
    acc = jax.lax.dot_general(xe, wlo_ref[...], (((1,), (1,)), ((), ())),
                              preferred_element_type=jnp.float32)
    acc = acc + jax.lax.dot_general(xo, whi_ref[...], (((1,), (1,)), ((), ())),
                                    preferred_element_type=jnp.float32)
    o_ref[...] = acc.astype(o_ref.dtype)


def quantized_linear(x, packed_codes, scales, quant_type, *, qblock=QBLOCK):
    """y = x @ dequant(packed_codes, scales).T  (no bias, matching the module)."""
    *lead, K = x.shape
    N, Kh = packed_codes.shape
    assert Kh * 2 == K, "packed codes must hold K/2 bytes per row"
    # K-half packing needs each half to be a whole number of quant blocks and
    # lane-aligned (multiple of 128) for the in-kernel static slice of x.
    assert K % (2 * qblock) == 0 and Kh % 128 == 0, \
        "in_features must be a multiple of max(2*qblock, 256)"
    KB = K // qblock
    KBh = KB // 2

    x2 = x.reshape(-1, K).astype(jnp.bfloat16)     # single contiguous MXU-dtype copy
    M = x2.shape[0]

    # --- tile selection ------------------------------------------------------
    # N tile: largest of {512, 256, 128} that still yields >= 2 N tiles when
    # possible (N axis is "parallel" -> sharded across v7x's 2 TensorCores).
    tn = 128
    for cand in (512, 256, 128):
        if pl.cdiv(N, cand) >= 2 or cand == 128:
            tn = cand
            break
    # M tile: minimize padding for awkward M (e.g. M=300 -> tm=152, not 256).
    if M <= 256:
        tm = max(8, _round_up(M, 8))
    else:
        tm = _round_up(pl.cdiv(M, pl.cdiv(M, 256)), 8)

    # Working-set estimate (double-buffered inputs/outputs + persistent scratch
    # + decode temporaries); shrink tiles to stay v7x-safe (64 MiB VMEM).
    def vmem_est(tm_, tn_):
        return (2 * tm_ * K * 2            # x blocks (bf16, double-buffered)
                + 2 * tn_ * Kh             # packed codes (u8, double-buffered)
                + 2 * 2 * tn_ * KBh * 2    # scale halves (bf16, double-buffered)
                + 2 * KBh * Kh * 2         # block-expansion matrix (bf16)
                + 2 * tm_ * tn_ * 4        # output blocks (f32, double-buffered)
                + 2 * tn_ * Kh * 2         # decoded bf16 weight scratch (lo+hi)
                + 2 * tn_ * Kh * 4)        # decode f32 temporaries headroom

    budget = 44 * 1024 * 1024
    while vmem_est(tm, tn) > budget and tn > 128:
        tn //= 2
    while vmem_est(tm, tn) > budget and tm > 8:
        tm = max(8, _round_up(tm // 2, 8))
    vmem_limit = min(60 * 1024 * 1024,
                     max(32 * 1024 * 1024, int(1.5 * vmem_est(tm, tn))))

    Mp = _round_up(M, tm)
    Np = _round_up(N, tn)

    # --- padding (lane-dense stores, bounded scratch) ------------------------
    if Mp != M:
        x2 = jnp.pad(x2, ((0, Mp - M), (0, 0)))
    if Np != N:
        packed_codes = jnp.pad(packed_codes, ((0, Np - N), (0, 0)))
        scales = jnp.pad(scales, ((0, Np - N), (0, 0)))

    # Per-K-half absmax scales (bf16 feeds the tiny scale-broadcast matmul).
    scales_lo = scales[:, :KBh].astype(jnp.bfloat16)          # blocks of K[:Kh]
    scales_hi = scales[:, KBh:].astype(jnp.bfloat16)          # blocks of K[Kh:]

    # Host-precomputed 0/1 block-expansion matrix: expand[b, j] = (j//qblock == b).
    blk = jnp.arange(Kh, dtype=jnp.int32) // qblock
    expand = (blk[None, :] == jnp.arange(KBh, dtype=jnp.int32)[:, None]
              ).astype(jnp.bfloat16)                          # (KBh, Kh)

    codebook = FP4_CODE if quant_type == "fp4" else NF4_CODE
    kernel = functools.partial(_qlinear_kernel, codebook=codebook, kh=Kh)

    grid = (Np // tn, Mp // tm)   # M innermost -> decoded weights reused across M
    n_ntiles = Np // tn

    cost = pl.CostEstimate(
        flops=2 * Mp * Np * K + 2 * 2 * Np * KBh * Kh,         # main + scale matmuls
        transcendentals=0,
        bytes_accessed=(n_ntiles * Mp * K * 2)                 # x re-read per N tile
                       + Np * Kh                               # packed codes
                       + 2 * Np * KBh * 2                      # scales (bf16)
                       + KBh * Kh * 2                          # expand matrix
                       + Mp * Np * 4,                          # f32 output
    )

    out = pl.pallas_call(
        kernel,
        out_shape=jax.ShapeDtypeStruct((Mp, Np), jnp.float32),
        grid=grid,
        in_specs=[
            pl.BlockSpec((tm, K), lambda n, m: (m, 0)),        # activations (bf16)
            pl.BlockSpec((tn, Kh), lambda n, m: (n, 0)),       # packed 4-bit codes
            pl.BlockSpec((tn, KBh), lambda n, m: (n, 0)),      # absmax, lower K half
            pl.BlockSpec((tn, KBh), lambda n, m: (n, 0)),      # absmax, upper K half
            pl.BlockSpec((KBh, Kh), lambda n, m: (0, 0)),      # block-expansion matrix
        ],
        out_specs=pl.BlockSpec((tm, tn), lambda n, m: (m, n)),
        scratch_shapes=[
            pltpu.VMEM((tn, Kh), jnp.bfloat16),                # scaled w, lower K half
            pltpu.VMEM((tn, Kh), jnp.bfloat16),                # scaled w, upper K half
        ],
        compiler_params=pltpu.CompilerParams(
            dimension_semantics=("parallel", "arbitrary"),
            vmem_limit_bytes=vmem_limit,
        ),
        cost_estimate=cost,
    )(x2, packed_codes, scales_lo, scales_hi, expand)

    out = out[:M, :N]
    # TODO(synk): bias path of QuantizedLinear is unreachable in the reference
    # (quantized_bias is never set), so it is intentionally not implemented.
    return out.reshape(*lead, N)


def reference_linear(x, packed_codes, scales, quant_type, qblock=QBLOCK):
    """Pure-JAX f32 reference: dequantize the K-half-packed codes and matmul."""
    cb = jnp.asarray(FP4_CODE if quant_type == "fp4" else NF4_CODE, jnp.float32)
    lo = jnp.bitwise_and(packed_codes, jnp.uint8(0xF)).astype(jnp.int32)
    hi = jnp.right_shift(packed_codes, 4).astype(jnp.int32)
    codes = jnp.concatenate([lo, hi], axis=1)                 # (N, K), K-half order
    w = cb[codes] * jnp.repeat(scales, qblock, axis=1)
    return jnp.einsum("...k,nk->...n", x.astype(jnp.float32), w)


if __name__ == "__main__":
    in_features, out_features = 256, 512
    key = jax.random.PRNGKey(0)
    k_w, k_x = jax.random.split(key)

    # deterministic synthetic "checkpoint"
    weight = jax.random.normal(k_w, (out_features, in_features), jnp.float32) * 0.05
    packed_codes, scales, quant_type = quantize_4bit(weight)

    x = jax.random.normal(k_x, (2, 4, in_features), jnp.float32)

    y = quantized_linear(x, packed_codes, scales, quant_type)
    y = jax.block_until_ready(y)

    y_ref = reference_linear(x, packed_codes, scales, quant_type)
    assert y.shape == (2, 4, out_features)
    # bf16 MXU inputs / bf16 scales with f32 accumulation -> slightly looser
    # tolerance than a pure-f32 dequantized matmul.
    assert jnp.allclose(y, y_ref, rtol=2e-2, atol=2e-2), "mismatch vs reference"

    print("KERNEL_OK")
</pallas_src>

<mosaic_0001>
module attributes {stable_mosaic.version = 11 : i64} {
  func.func @_qlinear_kernel(%arg0: i32, %arg1: i32, %arg2: memref<8x256xbf16, #tpu.memory_space<vmem>>, %arg3: memref<256x128xi8, #tpu.memory_space<vmem>>, %arg4: memref<256x2xbf16, #tpu.memory_space<vmem>>, %arg5: memref<256x2xbf16, #tpu.memory_space<vmem>>, %arg6: memref<2x128xbf16, #tpu.memory_space<vmem>>, %arg7: memref<8x256xf32, #tpu.memory_space<vmem>>, %arg8: memref<256x128xbf16, #tpu.memory_space<vmem>>, %arg9: memref<256x128xbf16, #tpu.memory_space<vmem>>) attributes {dimension_semantics = [#tpu.dimension_semantics<parallel>, #tpu.dimension_semantics<arbitrary>], iteration_bounds = array<i64: 2, 1>, scalar_prefetch = 0 : i64, scratch_operands = 2 : i64, tpu.core_type = #tpu.core_type<tc>, window_params = [{transform_indices = @transform_0, window_bounds = array<i64: 8, 256>}, {transform_indices = @transform_1, window_bounds = array<i64: 256, 128>}, {transform_indices = @transform_2, window_bounds = array<i64: 256, 2>}, {transform_indices = @transform_3, window_bounds = array<i64: 256, 2>}, {pipeline_mode = #tpu.pipeline_mode<synchronous>, transform_indices = @transform_4, window_bounds = array<i64: 2, 128>}, {transform_indices = @transform_5, window_bounds = array<i64: 8, 256>}]} {
    %c0_i32 = arith.constant 0 : i32
    %0 = arith.cmpi eq, %arg1, %c0_i32 : i32
    %1 = arith.extui %0 : i1 to i32
    %c0_i32_0 = arith.constant 0 : i32
    %2 = arith.cmpi ne, %1, %c0_i32_0 : i32
    scf.if %2 {
      %c0_10 = arith.constant 0 : index
      %c0_11 = arith.constant 0 : index
      %11 = vector.load %arg3[%c0_10, %c0_11] : memref<256x128xi8, #tpu.memory_space<vmem>>, vector<256x128xi8>
      %12 = arith.extui %11 : vector<256x128xi8> to vector<256x128xi32>
      %c15_i32 = arith.constant 15 : i32
      %13 = vector.broadcast %c15_i32 : i32 to vector<256x128xi32>
      %14 = arith.andi %12, %13 : vector<256x128xi32>
      %c4_i32 = arith.constant 4 : i32
      %15 = vector.broadcast %c4_i32 : i32 to vector<256x128xi32>
      %16 = arith.shrsi %12, %15 : vector<256x128xi32>
      %c15_i32_12 = arith.constant 15 : i32
      %17 = vector.broadcast %c15_i32_12 : i32 to vector<256x128xi32>
      %18 = arith.andi %16, %17 : vector<256x128xi32>
      %c0_13 = arith.constant 0 : index
      %c0_14 = arith.constant 0 : index
      %19 = vector.load %arg6[%c0_13, %c0_14] : memref<2x128xbf16, #tpu.memory_space<vmem>>, vector<2x128xbf16>
      %c0_15 = arith.constant 0 : index
      %c0_16 = arith.constant 0 : index
      %20 = vector.load %arg4[%c0_15, %c0_16] : memref<256x2xbf16, #tpu.memory_space<vmem>>, vector<256x2xbf16>
      %cst_17 = arith.constant dense<0.000000e+00> : vector<256x128xf32>
      %21 = tpu.matmul %20, %19, %cst_17 {dimension_numbers = #tpu.dot_dimension_numbers<[1], [0], [0], [1], [0, 0, 1, 1], [], []>} : vector<256x2xbf16>, vector<2x128xbf16>, vector<256x128xf32> -> vector<256x128xf32>
      %c0_18 = arith.constant 0 : index
      %c0_19 = arith.constant 0 : index
      %22 = vector.load %arg5[%c0_18, %c0_19] : memref<256x2xbf16, #tpu.memory_space<vmem>>, vector<256x2xbf16>
      %cst_20 = arith.constant dense<0.000000e+00> : vector<256x128xf32>
      %23 = tpu.matmul %22, %19, %cst_20 {dimension_numbers = #tpu.dot_dimension_numbers<[1], [0], [0], [1], [0, 0, 1, 1], [], []>} : vector<256x2xbf16>, vector<2x128xbf16>, vector<256x128xf32> -> vector<256x128xf32>
      %c1_i32 = arith.constant 1 : i32
      %24 = vector.broadcast %c1_i32 : i32 to vector<256x128xi32>
      %25 = arith.andi %14, %24 : vector<256x128xi32>
      %c0_i32_21 = arith.constant 0 : i32
      %26 = vector.broadcast %c0_i32_21 : i32 to vector<256x128xi32>
      %27 = arith.cmpi sgt, %25, %26 : vector<256x128xi32>
      %c2_i32 = arith.constant 2 : i32
      %28 = vector.broadcast %c2_i32 : i32 to vector<256x128xi32>
      %29 = arith.andi %14, %28 : vector<256x128xi32>
      %c0_i32_22 = arith.constant 0 : i32
      %30 = vector.broadcast %c0_i32_22 : i32 to vector<256x128xi32>
      %31 = arith.cmpi sgt, %29, %30 : vector<256x128xi32>
      %c4_i32_23 = arith.constant 4 : i32
      %32 = vector.broadcast %c4_i32_23 : i32 to vector<256x128xi32>
      %33 = arith.andi %14, %32 : vector<256x128xi32>
      %c0_i32_24 = arith.constant 0 : i32
      %34 = vector.broadcast %c0_i32_24 : i32 to vector<256x128xi32>
      %35 = arith.cmpi sgt, %33, %34 : vector<256x128xi32>
      %c8_i32 = arith.constant 8 : i32
      %36 = vector.broadcast %c8_i32 : i32 to vector<256x128xi32>
      %37 = arith.andi %14, %36 : vector<256x128xi32>
      %c0_i32_25 = arith.constant 0 : i32
      %38 = vector.broadcast %c0_i32_25 : i32 to vector<256x128xi32>
      %39 = arith.cmpi sgt, %37, %38 : vector<256x128xi32>
      %cst_26 = arith.constant -0.6961928 : f32
      %cst_27 = arith.constant -1.000000e+00 : f32
      %40 = vector.broadcast %cst_26 : f32 to vector<256x128xf32>
      %41 = vector.broadcast %cst_27 : f32 to vector<256x128xf32>
      %42 = arith.select %27, %40, %41 : vector<256x128xi1>, vector<256x128xf32>
      %cst_28 = arith.constant -0.394917488 : f32
      %cst_29 = arith.constant -0.525073051 : f32
      %43 = vector.broadcast %cst_28 : f32 to vector<256x128xf32>
      %44 = vector.broadcast %cst_29 : f32 to vector<256x128xf32>
      %45 = arith.select %27, %43, %44 : vector<256x128xi1>, vector<256x128xf32>
      %cst_30 = arith.constant -0.18477343 : f32
      %cst_31 = arith.constant -0.284441382 : f32
      %46 = vector.broadcast %cst_30 : f32 to vector<256x128xf32>
      %47 = vector.broadcast %cst_31 : f32 to vector<256x128xf32>
      %48 = arith.select %27, %46, %47 : vector<256x128xi1>, vector<256x128xf32>
      %cst_32 = arith.constant 0.000000e+00 : f32
      %cst_33 = arith.constant -0.0910500362 : f32
      %49 = vector.broadcast %cst_32 : f32 to vector<256x128xf32>
      %50 = vector.broadcast %cst_33 : f32 to vector<256x128xf32>
      %51 = arith.select %27, %49, %50 : vector<256x128xi1>, vector<256x128xf32>
      %cst_34 = arith.constant 0.160930201 : f32
      %cst_35 = arith.constant 0.0795802995 : f32
      %52 = vector.broadcast %cst_34 : f32 to vector<256x128xf32>
      %53 = vector.broadcast %cst_35 : f32 to vector<256x128xf32>
      %54 = arith.select %27, %52, %53 : vector<256x128xi1>, vector<256x128xf32>
      %cst_36 = arith.constant 0.337915242 : f32
      %cst_37 = arith.constant 0.246112302 : f32
      %55 = vector.broadcast %cst_36 : f32 to vector<256x128xf32>
      %56 = vector.broadcast %cst_37 : f32 to vector<256x128xf32>
      %57 = arith.select %27, %55, %56 : vector<256x128xi1>, vector<256x128xf32>
      %cst_38 = arith.constant 5.626170e-01 : f32
      %cst_39 = arith.constant 0.440709829 : f32
      %58 = vector.broadcast %cst_38 : f32 to vector<256x128xf32>
      %59 = vector.broadcast %cst_39 : f32 to vector<256x128xf32>
      %60 = arith.select %27, %58, %59 : vector<256x128xi1>, vector<256x128xf32>
      %cst_40 = arith.constant 1.000000e+00 : f32
      %cst_41 = arith.constant 0.722956836 : f32
      %61 = vector.broadcast %cst_40 : f32 to vector<256x128xf32>
      %62 = vector.broadcast %cst_41 : f32 to vector<256x128xf32>
      %63 = arith.select %27, %61, %62 : vector<256x128xi1>, vector<256x128xf32>
      %64 = arith.select %31, %45, %42 : vector<256x128xi1>, vector<256x128xf32>
      %65 = arith.select %31, %51, %48 : vector<256x128xi1>, vector<256x128xf32>
      %66 = arith.select %31, %57, %54 : vector<256x128xi1>, vector<256x128xf32>
      %67 = arith.select %31, %63, %60 : vector<256x128xi1>, vector<256x128xf32>
      %68 = arith.select %35, %65, %64 : vector<256x128xi1>, vector<256x128xf32>
      %69 = arith.select %35, %67, %66 : vector<256x128xi1>, vector<256x128xf32>
      %70 = arith.select %39, %69, %68 : vector<256x128xi1>, vector<256x128xf32>
      %71 = arith.mulf %70, %21 : vector<256x128xf32>
      %72 = arith.truncf %71 : vector<256x128xf32> to vector<256x128xbf16>
      %c0_42 = arith.constant 0 : index
      %c0_43 = arith.constant 0 : index
      %73 = vector.load %arg8[%c0_42, %c0_43] : memref<256x128xbf16, #tpu.memory_space<vmem>>, vector<256x128xbf16>
      tpu.vector_store %arg8[%c0_42, %c0_43], %72 {strides = array<i32>} : memref<256x128xbf16, #tpu.memory_space<vmem>>, vector<256x128xbf16>,
      %c1_i32_44 = arith.constant 1 : i32
      %74 = vector.broadcast %c1_i32_44 : i32 to vector<256x128xi32>
      %75 = arith.andi %18, %74 : vector<256x128xi32>
      %c0_i32_45 = arith.constant 0 : i32
      %76 = vector.broadcast %c0_i32_45 : i32 to vector<256x128xi32>
      %77 = arith.cmpi sgt, %75, %76 : vector<256x128xi32>
      %c2_i32_46 = arith.constant 2 : i32
      %78 = vector.broadcast %c2_i32_46 : i32 to vector<256x128xi32>
      %79 = arith.andi %18, %78 : vector<256x128xi32>
      %c0_i32_47 = arith.constant 0 : i32
      %80 = vector.broadcast %c0_i32_47 : i32 to vector<256x128xi32>
      %81 = arith.cmpi sgt, %79, %80 : vector<256x128xi32>
      %c4_i32_48 = arith.constant 4 : i32
      %82 = vector.broadcast %c4_i32_48 : i32 to vector<256x128xi32>
      %83 = arith.andi %18, %82 : vector<256x128xi32>
      %c0_i32_49 = arith.constant 0 : i32
      %84 = vector.broadcast %c0_i32_49 : i32 to vector<256x128xi32>
      %85 = arith.cmpi sgt, %83, %84 : vector<256x128xi32>
      %c8_i32_50 = arith.constant 8 : i32
      %86 = vector.broadcast %c8_i32_50 : i32 to vector<256x128xi32>
      %87 = arith.andi %18, %86 : vector<256x128xi32>
      %c0_i32_51 = arith.constant 0 : i32
      %88 = vector.broadcast %c0_i32_51 : i32 to vector<256x128xi32>
      %89 = arith.cmpi sgt, %87, %88 : vector<256x128xi32>
      %cst_52 = arith.constant -0.6961928 : f32
      %cst_53 = arith.constant -1.000000e+00 : f32
      %90 = vector.broadcast %cst_52 : f32 to vector<256x128xf32>
      %91 = vector.broadcast %cst_53 : f32 to vector<256x128xf32>
      %92 = arith.select %77, %90, %91 : vector<256x128xi1>, vector<256x128xf32>
      %cst_54 = arith.constant -0.394917488 : f32
      %cst_55 = arith.constant -0.525073051 : f32
      %93 = vector.broadcast %cst_54 : f32 to vector<256x128xf32>
      %94 = vector.broadcast %cst_55 : f32 to vector<256x128xf32>
      %95 = arith.select %77, %93, %94 : vector<256x128xi1>, vector<256x128xf32>
      %cst_56 = arith.constant -0.18477343 : f32
      %cst_57 = arith.constant -0.284441382 : f32
      %96 = vector.broadcast %cst_56 : f32 to vector<256x128xf32>
      %97 = vector.broadcast %cst_57 : f32 to vector<256x128xf32>
      %98 = arith.select %77, %96, %97 : vector<256x128xi1>, vector<256x128xf32>
      %cst_58 = arith.constant 0.000000e+00 : f32
      %cst_59 = arith.constant -0.0910500362 : f32
      %99 = vector.broadcast %cst_58 : f32 to vector<256x128xf32>
      %100 = vector.broadcast %cst_59 : f32 to vector<256x128xf32>
      %101 = arith.select %77, %99, %100 : vector<256x128xi1>, vector<256x128xf32>
      %cst_60 = arith.constant 0.160930201 : f32
      %cst_61 = arith.constant 0.0795802995 : f32
      %102 = vector.broadcast %cst_60 : f32 to vector<256x128xf32>
      %103 = vector.broadcast %cst_61 : f32 to vector<256x128xf32>
      %104 = arith.select %77, %102, %103 : vector<256x128xi1>, vector<256x128xf32>
      %cst_62 = arith.constant 0.337915242 : f32
      %cst_63 = arith.constant 0.246112302 : f32
      %105 = vector.broadcast %cst_62 : f32 to vector<256x128xf32>
      %106 = vector.broadcast %cst_63 : f32 to vector<256x128xf32>
      %107 = arith.select %77, %105, %106 : vector<256x128xi1>, vector<256x128xf32>
      %cst_64 = arith.constant 5.626170e-01 : f32
      %cst_65 = arith.constant 0.440709829 : f32
      %108 = vector.broadcast %cst_64 : f32 to vector<256x128xf32>
      %109 = vector.broadcast %cst_65 : f32 to vector<256x128xf32>
      %110 = arith.select %77, %108, %109 : vector<256x128xi1>, vector<256x128xf32>
      %cst_66 = arith.constant 1.000000e+00 : f32
      %cst_67 = arith.constant 0.722956836 : f32
      %111 = vector.broadcast %cst_66 : f32 to vector<256x128xf32>
      %112 = vector.broadcast %cst_67 : f32 to vector<256x128xf32>
      %113 = arith.select %77, %111, %112 : vector<256x128xi1>, vector<256x128xf32>
      %114 = arith.select %81, %95, %92 : vector<256x128xi1>, vector<256x128xf32>
      %115 = arith.select %81, %101, %98 : vector<256x128xi1>, vector<256x128xf32>
      %116 = arith.select %81, %107, %104 : vector<256x128xi1>, vector<256x128xf32>
      %117 = arith.select %81, %113, %110 : vector<256x128xi1>, vector<256x128xf32>
      %118 = arith.select %85, %115, %114 : vector<256x128xi1>, vector<256x128xf32>
      %119 = arith.select %85, %117, %116 : vector<256x128xi1>, vector<256x128xf32>
      %120 = arith.select %89, %119, %118 : vector<256x128xi1>, vector<256x128xf32>
      %121 = arith.mulf %120, %23 : vector<256x128xf32>
      %122 = arith.truncf %121 : vector<256x128xf32> to vector<256x128xbf16>
      %c0_68 = arith.constant 0 : index
      %c0_69 = arith.constant 0 : index
      %123 = vector.load %arg9[%c0_68, %c0_69] : memref<256x128xbf16, #tpu.memory_space<vmem>>, vector<256x128xbf16>
      tpu.vector_store %arg9[%c0_68, %c0_69], %122 {strides = array<i32>} : memref<256x128xbf16, #tpu.memory_space<vmem>>, vector<256x128xbf16>,
    } else {
    }
    %c0 = arith.constant 0 : index
    %c0_1 = arith.constant 0 : index
    %3 = vector.load %arg2[%c0, %c0_1] : memref<8x256xbf16, #tpu.memory_space<vmem>>, vector<8x128xbf16>
    %c0_2 = arith.constant 0 : index
    %c128 = arith.constant 128 : index
    %4 = vector.load %arg2[%c0_2, %c128] : memref<8x256xbf16, #tpu.memory_space<vmem>>, vector<8x128xbf16>
    %c0_3 = arith.constant 0 : index
    %c0_4 = arith.constant 0 : index
    %5 = vector.load %arg8[%c0_3, %c0_4] : memref<256x128xbf16, #tpu.memory_space<vmem>>, vector<256x128xbf16>
    %cst = arith.constant dense<0.000000e+00> : vector<8x256xf32>
    %6 = tpu.matmul %3, %5, %cst {dimension_numbers = #tpu.dot_dimension_numbers<[1], [1], [0], [0], [0, 0, 1, 0], [], []>} : vector<8x128xbf16>, vector<256x128xbf16>, vector<8x256xf32> -> vector<8x256xf32>
    %c0_5 = arith.constant 0 : index
    %c0_6 = arith.constant 0 : index
    %7 = vector.load %arg9[%c0_5, %c0_6] : memref<256x128xbf16, #tpu.memory_space<vmem>>, vector<256x128xbf16>
    %cst_7 = arith.constant dense<0.000000e+00> : vector<8x256xf32>
    %8 = tpu.matmul %4, %7, %cst_7 {dimension_numbers = #tpu.dot_dimension_numbers<[1], [1], [0], [0], [0, 0, 1, 0], [], []>} : vector<8x128xbf16>, vector<256x128xbf16>, vector<8x256xf32> -> vector<8x256xf32>
    %9 = arith.addf %6, %8 : vector<8x256xf32>
    %c0_8 = arith.constant 0 : index
    %c0_9 = arith.constant 0 : index
    %10 = vector.load %arg7[%c0_8, %c0_9] : memref<8x256xf32, #tpu.memory_space<vmem>>, vector<8x256xf32>
    tpu.vector_store %arg7[%c0_8, %c0_9], %9 {strides = array<i32>} : memref<8x256xf32, #tpu.memory_space<vmem>>, vector<8x256xf32>,
    return
  }
  func.func @transform_0(%arg0: i32, %arg1: i32) -> (i32, i32) {
    %c0_i32 = arith.constant 0 : i32
    %c0_i32_0 = arith.constant 0 : i32
    return %arg1, %c0_i32 : i32, i32
  }
  func.func @transform_1(%arg0: i32, %arg1: i32) -> (i32, i32) {
    %c0_i32 = arith.constant 0 : i32
    %c0_i32_0 = arith.constant 0 : i32
    return %arg0, %c0_i32 : i32, i32
  }
  func.func @transform_2(%arg0: i32, %arg1: i32) -> (i32, i32) {
    %c0_i32 = arith.constant 0 : i32
    %c0_i32_0 = arith.constant 0 : i32
    return %arg0, %c0_i32 : i32, i32
  }
  func.func @transform_3(%arg0: i32, %arg1: i32) -> (i32, i32) {
    %c0_i32 = arith.constant 0 : i32
    %c0_i32_0 = arith.constant 0 : i32
    return %arg0, %c0_i32 : i32, i32
  }
  func.func @transform_4(%arg0: i32, %arg1: i32) -> (i32, i32) {
    %c0_i32 = arith.constant 0 : i32
    %c0_i32_0 = arith.constant 0 : i32
    %c0_i32_1 = arith.constant 0 : i32
    return %c0_i32, %c0_i32_0 : i32, i32
  }
  func.func @transform_5(%arg0: i32, %arg1: i32) -> (i32, i32) {
    %c0_i32 = arith.constant 0 : i32
    return %arg1, %arg0 : i32, i32
  }
}

</mosaic_0001>

<bundles_post_ra>
// kernel: tpu_custom_call.1
= control target key start
LH: loop header
LB: loop body
LE: loop exit
PB: predicated region body
PF: predicated region fallthrough
CT: control target
= control target key end

     0   :  { %10 = vsyncpa [#allocation5], 0  ;;  %s7187_s0 = inlined_call_operand.vmem [shape: bf16[8,256], index: 0, kind: input, shape index: {}]   ;;  %s7188_s1 = inlined_call_operand.vmem [shape: u8[512,128], index: 1, kind: input, shape index: {}]   ;;  %s7189_s2 = inlined_call_operand.vmem [shape: bf16[512,2], index: 2, kind: input, shape index: {}]   ;;  %s7190_s3 = inlined_call_operand.vmem [shape: bf16[512,2], index: 3, kind: input, shape index: {}]   ;;  %s7191_s4 = inlined_call_operand.vmem [shape: bf16[2,128], index: 4, kind: input, shape index: {}]   ;;  %s7192_s5 = inlined_call_operand.hbm [shape: f32[8,512], index: 5, kind: output, shape index: {}]  }
   0x1   :  { %12 = vsyncpa [#allocation5 + $0x1], 0  ;;  %s3408_s18 = smov 0   ;;  %s3410_s19 = smov 0  }
   0x2   :  { %s3412_s20 = smov 0   ;;  %s3414_s21 = smov 0  }
   0x3   :  { %s3416_s22 = smov 0   ;;  %s3418_s23 = smov 0  }
   0x4 LB: > { %s2969_s24 = sadd.s32 4294967295, %s3367_s23   ;;  %s2970_s25 = sadd.s32 4294967294, %s3367_s23   ;;  %s3367_s23 = sphi %s3418_s23, %s18_s23   ;;  %s3363_s22 = sphi %s3416_s22, %s7877_s22   ;;  %s3359_s21 = sphi %s3414_s21, %s7876_s21   ;;  %s3355_s20 = sphi %s3412_s20, %s7875_s20   ;;  %s3351_s19 = sphi %s3410_s19, %s7874_s19   ;;  %s3347_s18 = sphi %s3408_s18, %s7873_s18  }
   0x5   : > { %s30_s26 = sadd.s32 1, %s3363_s22  ;;  %s164_s27 = sadd.s32 1, %s3355_s20 }
   0x6   : > { %p32_p0 = scmp.ge.s32.totalorder %s30_s26, 2  ;;  %p174_p1 = scmp.ne.s32.totalorder %s3355_s20, %s3351_s19 }
   0x7   : > { %p175_p2 = scmp.eq.s32.totalorder %s2969_s24, 1  ;;  %p180_p3 = scmp.ne.s32.totalorder %s3351_s19, %s3347_s18 }
   0x8   : > { %s7879_s26 = smov (%p32_p0, %s30_s26), 0  ;;  %p181_p5 = scmp.eq.s32.totalorder %s2970_s25, 1 }
   0x9   : > { %p3448_p4 = por %p175_p2, %p174_p1  ;;  %s160_s29 = ssub.s32 %s3363_s22, %s7879_s26 }
   0xa   : > { %p2974_p6 = scmp.ge.s32.totalorder %s3367_s23, 1  ;;  %p162_p7 = scmp.eq.s32.totalorder %s160_s29, 0 }
   0xb   : > { %p3455_p8 = por %p181_p5, %p180_p3  ;;  %p237_p9 = scmp.lt.s32.totalorder %s3367_s23, 3 }
   0xc   : > { %s3461_s6 = scalar_select %p162_p7, %s3355_s20, %s164_s27  }
   0xd   : > { %p238_p10 = pnand %p2974_p6, %p237_p9 }
   0xf   : > { %241 = sbr.rel (%p238_p10) target bundleno = 794 (0x31a), region = 40 }
  0x16   : > { %v477_v0 = vld [vmem:[%s7191_s4] sm:$0x1]  ;;  %vm639_vm0 = vcmask 1040384   ;;  %s2978_s9 = sshll.u32 %s3359_s21, 5  ;;  %vm590_vm1 = vcmask 15360   ;;  %s2976_s17 = sshll.u32 %s3359_s21, 3 }
  0x17   : > { %3192 = vmatprep.subr.msk.bf16.mxu0 %vm639_vm0, %v477_v0  ;;  %3193 = vmatprep.subr.msk.bf16.mxu1 %vm639_vm0, %v477_v0  ;;  %v641_v1 = vsel %vm639_vm0, %v477_v0, 0  ;;  %p292_p11 = scmp.lt.s32.totalorder %s2978_s9, 63  ;;  %p286_p12 = scmp.lt.s32.totalorder %s2976_s17, 15  ;;  %v7217_v63 = vmov -1.0  }
  0x18   : > { %3123 = vmatpush3.bf16.msra.mxu0 %v641_v1  ;;  %3157 = vmatpush3.bf16.msra.mxu1 %v641_v1  ;;  %v7215_v1 = vmov -0.52507305   ;;  %s277_s11 = sand.u32 1, %s3351_s19   ;;  %s3377_s27 = smov [#allocation4]  }
  0x19   : > { %s7881_s9 = smov (!%p292_p11, %s2978_s9), 63  ;;  %s7883_s17 = smov (!%p286_p12, %s2976_s17), 15 }
  0x1a   : > { %s2979_s10 = sshll.u32 %s7881_s9, 2  ;;  %s2977_s24 = sshll.u32 %s7883_s17, 3 }
  0x1b   : > { %s3470_s13 = scalar_lea.vmem %s7189_s2, %s2979_s10  ;;  %s3475_s16 = scalar_lea.vmem %s7190_s3, %s2979_s10 }
  0x1c   : > { %v3257_v2 = vld [vmem:[%s3470_s13] sm:$0xff]   ;;  %v3259_v4 = vld [vmem:[%s3470_s13 + $0x8] sm:$0xff]   ;;  %v3261_v6 = vld [vmem:[%s3470_s13 + $0x10] sm:$0xff]   ;;  %s3545_s29 = scalar_lea.vmem %s7188_s1, %s2977_s24  ;;  %s2975_s12 = sshll.u32 %s277_s11, 4 }
  0x1d   : > { %v3258_v3 = vld [vmem:[%s3475_s16] sm:$0xff]   ;;  %3124 = vmatprep.mubr.msk.bf16.mxu0 %vm590_vm1, %v3257_v2  ;;  %v3260_v5 = vld [vmem:[%s3475_s16 + $0x8] sm:$0xff]   ;;  %v3262_v7 = vld [vmem:[%s3475_s16 + $0x10] sm:$0xff]   ;;  %s279_s14 = scalar_lea.vmem [#allocation4], %s2975_s12 }
  0x1e   : > { %3158 = vmatprep.mubr.msk.bf16.mxu1 %vm590_vm1, %v3258_v3  ;;  %3125 = vmatmul.mubr.msk.bf16.vlgmr.msra.gmra.mrb[0].mxu0 %vm590_vm1, %v3259_v4  ;;  %v3263_v8 = vld [vmem:[%s3470_s13 + $0x18] sm:$0xff]   ;;  %v3265_v10 = vld [vmem:[%s3470_s13 + $0x20] sm:$0xff]   ;;  %v3267_v12 = vld [vmem:[%s3470_s13 + $0x28] sm:$0xff]   ;;  %s2860_s15 = sshll.u32 %s279_s14, 4  ;;  %s7142_s15 = int_to_ptr.vmem [resolvable:$true] %s2860_s15 }
  0x1f   : > { %3159 = vmatmul.mubr.msk.bf16.vlgmr.msra.gmra.mrb[0].mxu1 %vm590_vm1, %v3260_v5  ;;  %3128 = vmatprep.mubr.msk.bf16.mxu0 %vm590_vm1, %v3261_v6  ;;  %v3264_v9 = vld [vmem:[%s3475_s16 + $0x18] sm:$0xff]   ;;  %v3266_v11 = vld [vmem:[%s3475_s16 + $0x20] sm:$0xff]   ;;  %v3268_v13 = vld [vmem:[%s3475_s16 + $0x28] sm:$0xff]   ;;  %v7206_v6 = vmov -0.28444138   ;;  %s3289_s25 = scalar_lea.vmem %s7142_s15, 256 }
  0x20   : > { %3162 = vmatprep.mubr.msk.bf16.mxu1 %vm590_vm1, %v3262_v7  ;;  %v3269_v14 = vld [vmem:[%s3470_s13 + $0x30] sm:$0xff]   ;;  %v3271_v16 = vld [vmem:[%s3470_s13 + $0x38] sm:$0xff]   ;;  %v3273_v18 = vld [vmem:[%s3470_s13 + $0x40] sm:$0xff]   ;;  %p3290_p13 = scmp.ne.s32.totalorder %s7142_s15, %s3289_s25 }
  0x21   : > { %v3270_v15 = vld [vmem:[%s3475_s16 + $0x30] sm:$0xff]   ;;  %v3272_v17 = vld [vmem:[%s3475_s16 + $0x38] sm:$0xff]   ;;  %v3274_v19 = vld [vmem:[%s3475_s16 + $0x40] sm:$0xff]  }
  0x22   : > { %v3275_v20 = vld [vmem:[%s3470_s13 + $0x48] sm:$0xff]   ;;  %v3277_v22 = vld [vmem:[%s3470_s13 + $0x50] sm:$0xff]   ;;  %v3279_v24 = vld [vmem:[%s3470_s13 + $0x58] sm:$0xff]   ;;  %p3291_p0 = pnand %p3290_p13, %p3448_p4 }
  0x23   : > { %v3276_v21 = vld [vmem:[%s3475_s16 + $0x48] sm:$0xff]   ;;  %v3278_v23 = vld [vmem:[%s3475_s16 + $0x50] sm:$0xff]   ;;  %v3280_v25 = vld [vmem:[%s3475_s16 + $0x58] sm:$0xff]  }
  0x24   : > { %v3281_v26 = vld [vmem:[%s3470_s13 + $0x60] sm:$0xff]   ;;  %v3283_v28 = vld [vmem:[%s3470_s13 + $0x68] sm:$0xff]   ;;  %v3285_v30 = vld [vmem:[%s3470_s13 + $0x70] sm:$0xff]   ;;  %p3292_p1 = pneg %p3291_p0 }
  0x25   : > { %v3282_v27 = vld [vmem:[%s3475_s16 + $0x60] sm:$0xff]   ;;  %v3284_v29 = vld [vmem:[%s3475_s16 + $0x68] sm:$0xff]   ;;  %v3286_v31 = vld [vmem:[%s3475_s16 + $0x70] sm:$0xff]  }
  0x26   : > { %3129 = vmatmul.mubr.msk.bf16.gmra.mrb[4].mxu0 %vm590_vm1, %v3263_v8  ;;  %v3287_v32 = vld [vmem:[%s3470_s13 + $0x78] sm:$0xff]   ;;  %v309_v34 = vld [vmem:[%s3545_s29] sm:$0xff]  ;;  %v7204_v8 = vmov -0.091050036   ;;  %s3051_s13 = sshll.u32 %s3359_s21, 8  ;;  %s2844_s21 = scalar_lea.sflag [#allocation5], %s277_s11 }
  0x27   : > { %3163 = vmatmul.mubr.msk.bf16.gmra.mrb[4].mxu1 %vm590_vm1, %v3264_v9  ;;  %3132 = vmatprep.mubr.msk.bf16.mxu0 %vm590_vm1, %v3265_v10  ;;  %v3288_v33 = vld [vmem:[%s3475_s16 + $0x78] sm:$0xff]   ;;  %v319_v35 = vunpack.c.2.s8 %v309_v34  ;;  %v317_v37 = vunpack.c.0.s8 %v309_v34  ;;  %v320_v38 = vunpack.c.3.s8 %v309_v34  ;;  %v318_v40 = vunpack.c.1.s8 %v309_v34  ;;  %s7140_s24 = scalar_lea.hbm %s7192_s5, %s3051_s13 }
  0x28   : > { %3166 = vmatprep.mubr.msk.bf16.mxu1 %vm590_vm1, %v3266_v11  ;;  %v7196_v10 = vmov 0.0795803  }
  0x29   : > { %v351_v36 = vand.u32 255, %v319_v35  ;;  %v349_v39 = vand.u32 255, %v317_v37  ;;  %v352_v43 = vand.u32 255, %v320_v38  ;;  %v3548_v45 = vand.u32 255, %v318_v40 }
  0x2b   : > { %v383_v41 = vand.u32 15, %v351_v36  ;;  %v415_v42 = vshra.s32 %v351_v36, 4  ;;  %v413_v44 = vshra.s32 %v349_v39, 4  ;;  %v416_v47 = vshra.s32 %v352_v43, 4 }
  0x2c   : > { %v3550_v48 = vand.u32 15, %v349_v39  ;;  %v414_v50 = vshra.s32 %v3548_v45, 4  ;;  %v3555_v53 = vand.u32 15, %v352_v43 }
  0x2d   : > { %v447_v46 = vand.u32 15, %v415_v42  ;;  %v3552_v49 = vand.u32 15, %v413_v44  ;;  %v1127_v51 = vand.u32 1, %v383_v41  ;;  %v3557_v54 = vand.u32 15, %v416_v47 }
  0x2e   : > { %3133 = vmatmul.mubr.msk.bf16.gmra.mrb[8].mxu0 %vm590_vm1, %v3267_v12  ;;  %v1191_v55 = vand.u32 2, %v383_v41  ;;  %v1125_v57 = vand.u32 1, %v3550_v48  ;;  %v1255_v60 = vand.u32 4, %v383_v41  ;;  %v1319_v62 = vand.u32 8, %v383_v41 }
  0x2f   : > { %3167 = vmatmul.mubr.msk.bf16.gmra.mrb[8].mxu1 %vm590_vm1, %v3268_v13  ;;  %3136 = vmatprep.mubr.msk.bf16.mxu0 %vm590_vm1, %v3269_v14  ;;  %v1927_v52 = vand.u32 1, %v447_v46  ;;  %v1991_v56 = vand.u32 2, %v447_v46  ;;  %v1925_v58 = vand.u32 1, %v3552_v49  ;;  %vm3561_vm2 = vcmp.gt.s32.totalorder %v1127_v51, 0 }
  0x30   : > { %3170 = vmatprep.mubr.msk.bf16.mxu1 %vm590_vm1, %v3270_v15  ;;  %vm3565_vm3 = vcmp.gt.s32.totalorder %v1191_v55, 0  ;;  %v1383_v0 = vsel %vm3561_vm2, -0.6961928, %v7217_v63  ;;  %v1415_v2 = vsel %vm3561_vm2, -0.3949175, %v7215_v1  ;;  %vm3575_vm4 = vcmp.gt.s32.totalorder %v1255_v60, 0 }
  0x31   : > { %v1639_v4 = vsel %vm3565_vm3, %v1415_v2, %v1383_v0  ;;  %vm3581_vm5 = vcmp.gt.s32.totalorder %v1319_v62, 0  ;;  %v1447_v7 = vsel %vm3561_vm2, -0.18477343, %v7206_v6  ;;  %v1479_v9 = vsel %vm3561_vm2, 0.0, %v7204_v8 }
  0x32   : > { %v1511_v11 = vsel %vm3561_vm2, 0.1609302, %v7196_v10  ;;  %v1671_v12 = vsel %vm3565_vm3, %v1479_v9, %v1447_v7  ;;  %v7200_v13 = vmov 0.2461123   ;;  %v7202_v15 = vmov 0.44070983  }
  0x33   : > { %v1543_v14 = vsel %vm3561_vm2, 0.33791524, %v7200_v13  ;;  %vm3611_vm6 = vcmp.gt.s32.totalorder %v1927_v52, 0  ;;  %vm3615_vm7 = vcmp.gt.s32.totalorder %v1991_v56, 0  ;;  %vm3665_vm10 = vcmp.gt.s32.totalorder %v1125_v57, 0 }
  0x34   : > { %v2343_v34 = vsel %vm3611_vm6, 0.33791524, %v7200_v13  ;;  %v2375_v35 = vsel %vm3611_vm6, 0.562617, %v7202_v15  ;;  %v1189_v44 = vand.u32 2, %v3550_v48  ;;  %v1317_v51 = vand.u32 8, %v3550_v48 }
  0x35   : > { %v1381_v52 = vsel %vm3665_vm10, -0.6961928, %v7217_v63  ;;  %v1413_v55 = vsel %vm3665_vm10, -0.3949175, %v7215_v1  ;;  %v1445_v57 = vsel %vm3665_vm10, -0.18477343, %v7206_v6 }
  0x36   : > { %3137 = vmatmul.mubr.msk.bf16.gmra.mrb[12].mxu0 %vm590_vm1, %v3271_v16  ;;  %v1575_v16 = vsel %vm3561_vm2, 0.562617, %v7202_v15  ;;  %vm3686_vm11 = vcmp.gt.s32.totalorder %v1189_v44, 0  ;;  %vm3696_vm13 = vcmp.gt.s32.totalorder %v1317_v51, 0  ;;  %v1509_v60 = vsel %vm3665_vm10, 0.1609302, %v7196_v10 }
  0x37   : > { %3171 = vmatmul.mubr.msk.bf16.gmra.mrb[12].mxu1 %vm590_vm1, %v3272_v17  ;;  %3140 = vmatprep.mubr.msk.bf16.mxu0 %vm590_vm1, %v3273_v18  ;;  %v3604_v17 = vsel %vm3575_vm4, %v1671_v12, %v1639_v4  ;;  %v7198_v18 = vmov 0.72295684   ;;  %v1541_v61 = vsel %vm3665_vm10, 0.33791524, %v7200_v13  ;;  %v1573_v0 = vsel %vm3665_vm10, 0.562617, %v7202_v15 }
  0x38   : > { %3174 = vmatprep.mubr.msk.bf16.mxu1 %vm590_vm1, %v3274_v19  ;;  %v1607_v19 = vsel %vm3561_vm2, 1.0, %v7198_v18  ;;  %v2407_v36 = vsel %vm3611_vm6, 1.0, %v7198_v18  ;;  %v1605_v62 = vsel %vm3665_vm10, 1.0, %v7198_v18  ;;  %v1637_v2 = vsel %vm3686_vm11, %v1413_v55, %v1381_v52 }
  0x39   : > { %v2535_v40 = vsel %vm3615_vm7, %v2407_v36, %v2375_v35  ;;  %v1701_v4 = vsel %vm3686_vm11, %v1541_v61, %v1509_v60  ;;  %v1733_v7 = vsel %vm3686_vm11, %v1605_v62, %v1573_v0  ;;  %vm3724_vm14 = vcmp.gt.s32.totalorder %v1925_v58, 0 }
  0x3a   : > { %v1989_v12 = vand.u32 2, %v3552_v49  ;;  %v1128_v36 = vand.u32 1, %v3555_v53  ;;  %v1320_v44 = vand.u32 8, %v3555_v53  ;;  %v382_v52 = vand.u32 15, %v3548_v45 }
  0x3c   : > { %vm3740_vm15 = vcmp.gt.s32.totalorder %v1989_v12, 0  ;;  %vm1160_vm2 = vcmp.gt.s32.totalorder %v1128_v36, 0  ;;  %v1318_v45 = vand.u32 8, %v382_v52 }
  0x3d   : > { %v1384_v55 = vsel %vm1160_vm2, -0.6961928, %v7217_v63  ;;  %v1416_v56 = vsel %vm1160_vm2, -0.3949175, %v7215_v1  ;;  %v1512_v60 = vsel %vm1160_vm2, 0.1609302, %v7196_v10 }
  0x3e   : > { %3141 = vmatmul.mubr.msk.bf16.gmra.mrb[16].mxu0 %vm590_vm1, %v3275_v20  ;;  %v1703_v20 = vsel %vm3565_vm3, %v1543_v14, %v1511_v11  ;;  %v1544_v61 = vsel %vm1160_vm2, 0.33791524, %v7200_v13  ;;  %v1576_v62 = vsel %vm1160_vm2, 0.562617, %v7202_v15  ;;  %v1608_v0 = vsel %vm1160_vm2, 1.0, %v7198_v18 }
  0x3f   : > { %3175 = vmatmul.mubr.msk.bf16.gmra.mrb[16].mxu1 %vm590_vm1, %v3276_v21  ;;  %3144 = vmatprep.mubr.msk.bf16.mxu0 %vm590_vm1, %v3277_v22  ;;  %v2213_v22 = vsel %vm3724_vm14, -0.3949175, %v7215_v1 }
  0x40   : > { %3178 = vmatprep.mubr.msk.bf16.mxu1 %vm590_vm1, %v3278_v23  ;;  %v1735_v23 = vsel %vm3565_vm3, %v1607_v19, %v1575_v16  ;;  %v2053_v16 = vand.u32 4, %v3552_v49  ;;  %v2117_v19 = vand.u32 8, %v3552_v49  ;;  %v2245_v49 = vsel %vm3724_vm14, -0.18477343, %v7206_v6 }
  0x42   : > { %vm2085_vm0 = vcmp.gt.s32.totalorder %v2053_v16, 0 }
  0x46   : > { %3145 = vmatmul.mubr.msk.bf16.gmra.mrb[20].mxu0 %vm590_vm1, %v3279_v24  ;;  %v2055_v24 = vand.u32 4, %v447_v46 }
  0x47   : > { %3179 = vmatmul.mubr.msk.bf16.gmra.mrb[20].mxu1 %vm590_vm1, %v3280_v25  ;;  %3148 = vmatprep.mubr.msk.bf16.mxu0 %vm590_vm1, %v3281_v26  ;;  %v2119_v25 = vand.u32 8, %v447_v46  ;;  %v2183_v26 = vsel %vm3611_vm6, -0.6961928, %v7217_v63  ;;  %v1253_v46 = vand.u32 4, %v3550_v48  ;;  %v1477_v48 = vsel %vm3665_vm10, 0.0, %v7204_v8 }
  0x48   : > { %3182 = vmatprep.mubr.msk.bf16.mxu1 %vm590_vm1, %v3282_v27  ;;  %v3626_v27 = vsel %vm3575_vm4, %v1735_v23, %v1703_v20  ;;  %vm2087_vm8 = vcmp.gt.s32.totalorder %v2055_v24, 0  ;;  %v1669_v3 = vsel %vm3686_vm11, %v1477_v48, %v1445_v57  ;;  %v2181_v20 = vsel %vm3724_vm14, -0.6961928, %v7217_v63 }
  0x49   : > { %vm3641_vm9 = vcmp.gt.s32.totalorder %v2119_v25, 0  ;;  %vm1285_vm12 = vcmp.gt.s32.totalorder %v1253_v46, 0  ;;  %v2277_v24 = vsel %vm3724_vm14, 0.0, %v7204_v8  ;;  %v2309_v25 = vsel %vm3724_vm14, 0.1609302, %v7196_v10 }
  0x4a   : > { %v3720_v9 = vsel %vm1285_vm12, %v1669_v3, %v1637_v2  ;;  %v3729_v14 = vsel %vm1285_vm12, %v1733_v7, %v1701_v4  ;;  %v1928_v46 = vand.u32 1, %v3557_v54  ;;  %v1480_v48 = vsel %vm1160_vm2, 0.0, %v7204_v8 }
  0x4b   : > { %v7452_v5 = vsel %vm3696_vm13, %v3729_v14, %v3720_v9 }
  0x4e   : > { %3149 = vmatmul.mubr.msk.bf16.gmra.mrb[24].mxu0 %vm590_vm1, %v3283_v28  ;;  %v2215_v28 = vsel %vm3611_vm6, -0.3949175, %v7215_v1 }
  0x4f   : > { %3183 = vmatmul.mubr.msk.bf16.gmra.mrb[24].mxu1 %vm590_vm1, %v3284_v29  ;;  %3152 = vmatprep.mubr.msk.bf16.mxu0 %vm590_vm1, %v3285_v30  ;;  %v2247_v29 = vsel %vm3611_vm6, -0.18477343, %v7206_v6  ;;  %v2279_v30 = vsel %vm3611_vm6, 0.0, %v7204_v8  ;;  %v2439_v37 = vsel %vm3615_vm7, %v2215_v28, %v2183_v26  ;;  %v2341_v26 = vsel %vm3724_vm14, 0.33791524, %v7200_v13 }
  0x50   : > { %3186 = vmatprep.mubr.msk.bf16.mxu1 %vm590_vm1, %v3286_v31  ;;  %v2471_v38 = vsel %vm3615_vm7, %v2279_v30, %v2247_v29  ;;  %v2373_v28 = vsel %vm3724_vm14, 0.562617, %v7202_v15  ;;  %v2405_v29 = vsel %vm3724_vm14, 1.0, %v7198_v18  ;;  %v2437_v30 = vsel %vm3740_vm15, %v2213_v22, %v2181_v20 }
  0x51   : > { %v3669_v42 = vsel %vm2087_vm8, %v2471_v38, %v2439_v37  ;;  %v2533_v35 = vsel %vm3740_vm15, %v2405_v29, %v2373_v28  ;;  %v2056_v20 = vand.u32 4, %v3557_v54  ;;  %v2120_v22 = vand.u32 8, %v3557_v54  ;;  %v3858_v29 = vld [vmem:[%s3545_s29 + $0x8] sm:$0xff] }
  0x53   : > { %vm3847_vm10 = vcmp.gt.s32.totalorder %v2056_v20, 0  ;;  %vm3860_vm11 = vcmp.gt.s32.totalorder %v2120_v22, 0 }
  0x56   : > { %3153 = vmatmul.mubr.msk.bf16.gmra.mrb[28].mxu0 %vm590_vm1, %v3287_v32 }
  0x57   : > { %3187 = vmatmul.mubr.msk.bf16.gmra.mrb[28].mxu1 %vm590_vm1, %v3288_v33  ;;  %v2311_v33 = vsel %vm3611_vm6, 0.1609302, %v7196_v10  ;;  %vm3750_vm1 = vcmp.gt.s32.totalorder %v2117_v19, 0  ;;  %vm3800_vm6 = vcmp.gt.s32.totalorder %v1320_v44, 0  ;;  %v1992_v19 = vand.u32 2, %v3557_v54 }
  0x58   : > { %v2503_v39 = vsel %vm3615_vm7, %v2343_v34, %v2311_v33  ;;  %v2469_v33 = vsel %vm3740_vm15, %v2277_v24, %v2245_v49  ;;  %v2501_v34 = vsel %vm3740_vm15, %v2341_v26, %v2309_v25  ;;  %vm3818_vm7 = vcmp.gt.s32.totalorder %v1928_v46, 0 }
  0x59   : > { %v3671_v43 = vsel %vm2087_vm8, %v2535_v40, %v2503_v39  ;;  %v3778_v37 = vsel %vm2085_vm0, %v2469_v33, %v2437_v30  ;;  %v3780_v38 = vsel %vm2085_vm0, %v2533_v35, %v2501_v34  ;;  %v1192_v39 = vand.u32 2, %v3555_v53 }
  0x5a   : > { %v1256_v40 = vand.u32 4, %v3555_v53  ;;  %v1448_v53 = vsel %vm1160_vm2, -0.18477343, %v7206_v6  ;;  %v2184_v49 = vsel %vm3818_vm7, -0.6961928, %v7217_v63  ;;  %vm3843_vm8 = vcmp.gt.s32.totalorder %v1992_v19, 0 }
  0x5b   : > { %vm3790_vm3 = vcmp.gt.s32.totalorder %v1192_v39, 0  ;;  %v2216_v24 = vsel %vm3818_vm7, -0.3949175, %v7215_v1  ;;  %v2248_v54 = vsel %vm3818_vm7, -0.18477343, %v7206_v6  ;;  %v2280_v28 = vsel %vm3818_vm7, 0.0, %v7204_v8 }
  0x5c   : > { %vm3794_vm4 = vcmp.gt.s32.totalorder %v1256_v40, 0  ;;  %v1640_v2 = vsel %vm3790_vm3, %v1416_v56, %v1384_v55  ;;  %v1672_v3 = vsel %vm3790_vm3, %v1480_v48, %v1448_v53  ;;  %v1704_v4 = vsel %vm3790_vm3, %v1544_v61, %v1512_v60 }
  0x5d   : > { %v1736_v7 = vsel %vm3790_vm3, %v1608_v0, %v1576_v62  ;;  %v3824_v12 = vsel %vm3794_vm4, %v1672_v3, %v1640_v2  ;;  %v2312_v33 = vsel %vm3818_vm7, 0.1609302, %v7196_v10  ;;  %v2344_v34 = vsel %vm3818_vm7, 0.33791524, %v7200_v13 }
  0x5e   : > { %v3828_v16 = vsel %vm3794_vm4, %v1736_v7, %v1704_v4  ;;  %v2408_v35 = vsel %vm3818_vm7, 1.0, %v7198_v18  ;;  %v2376_v36 = vsel %vm3818_vm7, 0.562617, %v7202_v15  ;;  %v2440_v39 = vsel %vm3843_vm8, %v2216_v24, %v2184_v49 }
  0x5f   : > { %v2472_v40 = vsel %vm3843_vm8, %v2280_v28, %v2248_v54  ;;  %v2504_v44 = vsel %vm3843_vm8, %v2344_v34, %v2312_v33  ;;  %v2536_v46 = vsel %vm3843_vm8, %v2408_v35, %v2376_v36  ;;  %v446_v55 = vand.u32 15, %v414_v50 }
  0x60   : > { %v3886_v51 = vsel %vm3847_vm10, %v2472_v40, %v2440_v39  ;;  %v3893_v56 = vsel %vm3847_vm10, %v2536_v46, %v2504_v44  ;;  %v323_v53 = vunpack.c.2.s8 %v3858_v29  ;;  %v321_v48 = vunpack.c.0.s8 %v3858_v29 }
  0x61   : > { %v324_v60 = vunpack.c.3.s8 %v3858_v29  ;;  %v1126_v62 = vand.u32 1, %v382_v52  ;;  %v1190_v0 = vand.u32 2, %v382_v52  ;;  %v1254_v2 = vand.u32 4, %v382_v52 }
  0x62   : > { %v1926_v50 = vand.u32 1, %v446_v55  ;;  %v1990_v3 = vand.u32 2, %v446_v55  ;;  %v2054_v4 = vand.u32 4, %v446_v55  ;;  %v2118_v19 = vand.u32 8, %v446_v55 }
  0x63   : > { %vm1158_vm12 = vcmp.gt.s32.totalorder %v1126_v62, 0  ;;  %vm3902_vm14 = vcmp.gt.s32.totalorder %v1190_v0, 0  ;;  %vm3906_vm15 = vcmp.gt.s32.totalorder %v1254_v2, 0  ;;  %vm3910_vm0 = vcmp.gt.s32.totalorder %v1318_v45, 0 }
  0x64   : > { %v1382_v22 = vsel %vm1158_vm12, -0.6961928, %v7217_v63  ;;  %v1414_v49 = vsel %vm1158_vm12, -0.3949175, %v7215_v1  ;;  %v1478_v24 = vsel %vm1158_vm12, 0.0, %v7204_v8  ;;  %v1606_v34 = vsel %vm1158_vm12, 1.0, %v7198_v18 }
  0x65   : > { %v1446_v25 = vsel %vm1158_vm12, -0.18477343, %v7206_v6  ;;  %v1510_v26 = vsel %vm1158_vm12, 0.1609302, %v7196_v10  ;;  %v1542_v54 = vsel %vm1158_vm12, 0.33791524, %v7200_v13  ;;  %v1638_v28 = vsel %vm3902_vm14, %v1414_v49, %v1382_v22 }
  0x66   : > { %v1574_v33 = vsel %vm1158_vm12, 0.562617, %v7202_v15  ;;  %v1670_v35 = vsel %vm3902_vm14, %v1478_v24, %v1446_v25  ;;  %v1702_v36 = vsel %vm3902_vm14, %v1542_v54, %v1510_v26  ;;  %vm1958_vm2 = vcmp.gt.s32.totalorder %v1926_v50, 0 }
  0x67   : > { %v1734_v39 = vsel %vm3902_vm14, %v1606_v34, %v1574_v33  ;;  %v3932_v40 = vsel %vm3906_vm15, %v1670_v35, %v1638_v28  ;;  %vm3934_vm3 = vcmp.gt.s32.totalorder %v1990_v3, 0  ;;  %vm3942_vm4 = vcmp.gt.s32.totalorder %v2054_v4, 0 }
  0x68   : > { %v3940_v46 = vsel %vm3906_vm15, %v1734_v39, %v1702_v36  ;;  %vm3946_vm7 = vcmp.gt.s32.totalorder %v2118_v19, 0  ;;  %v2182_v62 = vsel %vm1958_vm2, -0.6961928, %v7217_v63  ;;  %v2214_v2 = vsel %vm1958_vm2, -0.3949175, %v7215_v1 }
  0x69   : > { %v2246_v45 = vsel %vm1958_vm2, -0.18477343, %v7206_v6  ;;  %v2278_v50 = vsel %vm1958_vm2, 0.0, %v7204_v8  ;;  %v2310_v3 = vsel %vm1958_vm2, 0.1609302, %v7196_v10  ;;  %v2438_v11 = vsel %vm3934_vm3, %v2214_v2, %v2182_v62 }
  0x6a   : > { %v2342_v4 = vsel %vm1958_vm2, 0.33791524, %v7200_v13  ;;  %v2374_v7 = vsel %vm1958_vm2, 0.562617, %v7202_v15  ;;  %v2406_v19 = vsel %vm1958_vm2, 1.0, %v7198_v18  ;;  %v2470_v22 = vsel %vm3934_vm3, %v2278_v50, %v2246_v45  ;;  %v3995_v45 = vld [vmem:[%s3545_s29 + $0x10] sm:$0xff] }
  0x6b   : > { %v2502_v49 = vsel %vm3934_vm3, %v2342_v4, %v2310_v3  ;;  %v355_v24 = vand.u32 255, %v323_v53  ;;  %v2534_v25 = vsel %vm3934_vm3, %v2406_v19, %v2374_v7  ;;  %v3972_v26 = vsel %vm3942_vm4, %v2470_v22, %v2438_v11 }
  0x6c   : > { %v3974_v54 = vand.u32 255, %v321_v48  ;;  %v3976_v28 = vand.u32 255, %v324_v60  ;;  %v3980_v33 = vsel %vm3942_vm4, %v2534_v25, %v2502_v49  ;;  %v7326_v22 = vmov 0 }
  0x6d   : > { %v387_v34 = vand.u32 15, %v355_v24  ;;  %v419_v35 = vshra.s32 %v355_v24, 4  ;;  %v7456_v59 = vsel %vm3800_vm6, %v3828_v16, %v3824_v12  ;;  %v7462_v57 = vsel %vm3910_vm0, %v3940_v46, %v3932_v40 }
  0x6e   : > { %v3988_v39 = vand.u32 15, %v3974_v54  ;;  %v417_v48 = vshra.s32 %v3974_v54, 4  ;;  %v3992_v60 = vand.u32 15, %v3976_v28 }
  0x6f   : > { %v1131_v44 = vand.u32 1, %v387_v34  ;;  %v1195_v52 = vand.u32 2, %v387_v34  ;;  %v1259_v62 = vand.u32 4, %v387_v34  ;;  %v1323_v2 = vand.u32 8, %v387_v34 }
  0x70   : > { %v451_v50 = vand.u32 15, %v419_v35  ;;  %v1129_v3 = vand.u32 1, %v3988_v39  ;;  %v1193_v4 = vand.u32 2, %v3988_v39  ;;  %v1257_v7 = vand.u32 4, %v3988_v39 }
  0x71   : > { %vm1163_vm8 = vcmp.gt.s32.totalorder %v1131_v44, 0  ;;  %vm4000_vm10 = vcmp.gt.s32.totalorder %v1195_v52, 0  ;;  %vm4004_vm12 = vcmp.gt.s32.totalorder %v1259_v62, 0  ;;  %vm4008_vm14 = vcmp.gt.s32.totalorder %v1323_v2, 0 }
  0x72   : > { %v7327_v22 = vsel %vm4008_vm14, 4294967295, %v7326_v22  ;;  %v1387_v49 = vsel %vm1163_vm8, -0.6961928, %v7217_v63  ;;  %v1419_v24 = vsel %vm1163_vm8, -0.3949175, %v7215_v1  ;;  %v1483_v35 = vsel %vm1163_vm8, 0.0, %v7204_v8 }
  0x73   : > { %v1451_v25 = vsel %vm1163_vm8, -0.18477343, %v7206_v6  ;;  %v1515_v44 = vsel %vm1163_vm8, 0.1609302, %v7196_v10  ;;  %v1547_v52 = vsel %vm1163_vm8, 0.33791524, %v7200_v13  ;;  %v1643_v36 = vsel %vm4000_vm10, %v1419_v24, %v1387_v49 }
  0x74   : > { %v1611_v62 = vsel %vm1163_vm8, 1.0, %v7198_v18  ;;  %v1579_v2 = vsel %vm1163_vm8, 0.562617, %v7202_v15  ;;  %v1675_v0 = vsel %vm4000_vm10, %v1483_v35, %v1451_v25  ;;  %v1707_v61 = vsel %vm4000_vm10, %v1547_v52, %v1515_v44 }
  0x75   : > { %v1739_v21 = vsel %vm4000_vm10, %v1611_v62, %v1579_v2  ;;  %v4031_v41 = vsel %vm4004_vm12, %v1675_v0, %v1643_v36  ;;  %v1931_v58 = vand.u32 1, %v451_v50  ;;  %v1995_v47 = vand.u32 2, %v451_v50 }
  0x76   : > { %v4035_v31 = vsel %vm4004_vm12, %v1739_v21, %v1707_v61  ;;  %v2059_v49 = vand.u32 4, %v451_v50  ;;  %v2123_v24 = vand.u32 8, %v451_v50  ;;  %vm4037_vm15 = vcmp.gt.s32.totalorder %v1129_v3, 0 }
  0x77   : > { %vm1963_vm2 = vcmp.gt.s32.totalorder %v1931_v58, 0  ;;  %vm4045_vm3 = vcmp.gt.s32.totalorder %v1995_v47, 0  ;;  %vm4049_vm4 = vcmp.gt.s32.totalorder %v1193_v4, 0  ;;  %v7336_v61 = vmov 0 }
  0x78   : > { %vm4053_vm8 = vcmp.gt.s32.totalorder %v2059_v49, 0  ;;  %vm4057_vm10 = vcmp.gt.s32.totalorder %v2123_v24, 0  ;;  %v2187_v50 = vsel %vm1963_vm2, -0.6961928, %v7217_v63  ;;  %v2219_v58 = vsel %vm1963_vm2, -0.3949175, %v7215_v1 }
  0x79   : > { %v7337_v61 = vsel %vm4057_vm10, 4294967295, %v7336_v61  ;;  %v2251_v47 = vsel %vm1963_vm2, -0.18477343, %v7206_v6  ;;  %v2283_v3 = vsel %vm1963_vm2, 0.0, %v7204_v8  ;;  %v2315_v4 = vsel %vm1963_vm2, 0.1609302, %v7196_v10 }
  0x7a   : > { %v2411_v19 = vsel %vm1963_vm2, 1.0, %v7198_v18  ;;  %v2347_v35 = vsel %vm1963_vm2, 0.33791524, %v7200_v13  ;;  %v2379_v44 = vsel %vm1963_vm2, 0.562617, %v7202_v15  ;;  %v2443_v52 = vsel %vm4045_vm3, %v2219_v58, %v2187_v50 }
  0x7b   : > { %v2475_v62 = vsel %vm4045_vm3, %v2283_v3, %v2251_v47  ;;  %v2507_v2 = vsel %vm4045_vm3, %v2347_v35, %v2315_v4  ;;  %v2539_v49 = vsel %vm4045_vm3, %v2411_v19, %v2379_v44  ;;  %vm4081_vm12 = vcmp.gt.s32.totalorder %v1257_v7, 0 }
  0x7c   : > { %v4079_v24 = vsel %vm4053_vm8, %v2475_v62, %v2443_v52  ;;  %v4087_v50 = vsel %vm4053_vm8, %v2539_v49, %v2507_v2  ;;  %v1321_v58 = vand.u32 8, %v3988_v39  ;;  %v1385_v47 = vsel %vm4037_vm15, -0.6961928, %v7217_v63 }
  0x7d   : > { %v1417_v0 = vsel %vm4037_vm15, -0.3949175, %v7215_v1  ;;  %v1449_v21 = vsel %vm4037_vm15, -0.18477343, %v7206_v6  ;;  %v1481_v39 = vsel %vm4037_vm15, 0.0, %v7204_v8  ;;  %v7340_v4 = vmov 0 }
  0x7e   : > { %v1513_v3 = vsel %vm4037_vm15, 0.1609302, %v7196_v10  ;;  %vm4109_vm2 = vcmp.gt.s32.totalorder %v1321_v58, 0  ;;  %v1545_v19 = vsel %vm4037_vm15, 0.33791524, %v7200_v13  ;;  %v1609_v44 = vsel %vm4037_vm15, 1.0, %v7198_v18 }
  0x7f   : > { %v7341_v4 = vsel %vm4109_vm2, 4294967295, %v7340_v4  ;;  %v1577_v35 = vsel %vm4037_vm15, 0.562617, %v7202_v15  ;;  %v1641_v52 = vsel %vm4049_vm4, %v1417_v0, %v1385_v47  ;;  %v1673_v62 = vsel %vm4049_vm4, %v1481_v39, %v1449_v21 }
  0x80   : > { %7342 = vst [vmem:[#allocation7_spill] sm:$0xff] %v7341_v4  ;;  %v1705_v2 = vsel %vm4049_vm4, %v1545_v19, %v1513_v3  ;;  %v1737_v49 = vsel %vm4049_vm4, %v1609_v44, %v1577_v35  ;;  %v4132_v58 = vsel %vm4081_vm12, %v1673_v62, %v1641_v52  ;;  %v449_v47 = vand.u32 15, %v417_v48 }
  0x81   : > { %7343 = vst [vmem:[#allocation8_spill] sm:$0xff] %v4132_v58  ;;  %v4136_v25 = vsel %vm4081_vm12, %v1737_v49, %v1705_v2  ;;  %v1132_v0 = vand.u32 1, %v3992_v60  ;;  %v1196_v36 = vand.u32 2, %v3992_v60  ;;  %v1260_v39 = vand.u32 4, %v3992_v60 }
  0x82   : > { %7344 = vst [vmem:[#allocation9_spill] sm:$0xff] %v4136_v25  ;;  %v1324_v3 = vand.u32 8, %v3992_v60  ;;  %v1929_v19 = vand.u32 1, %v449_v47  ;;  %v1993_v11 = vand.u32 2, %v449_v47  ;;  %v2057_v35 = vand.u32 4, %v449_v47 }
  0x83   : > { %v2121_v44 = vand.u32 8, %v449_v47  ;;  %vm4148_vm15 = vcmp.gt.s32.totalorder %v1132_v0, 0  ;;  %vm4152_vm3 = vcmp.gt.s32.totalorder %v1196_v36, 0  ;;  %vm4156_vm4 = vcmp.gt.s32.totalorder %v1260_v39, 0 }
  0x84   : > { %vm4160_vm8 = vcmp.gt.s32.totalorder %v1324_v3, 0  ;;  %v7351_v62 = vmov 0  ;;  %vm1961_vm12 = vcmp.gt.s32.totalorder %v1929_v19, 0  ;;  %vm4164_vm2 = vcmp.gt.s32.totalorder %v1993_v11, 0 }
  0x85   : > { %v7352_v62 = vsel %vm4160_vm8, 4294967295, %v7351_v62  ;;  %vm4168_vm10 = vcmp.gt.s32.totalorder %v2057_v35, 0  ;;  %vm4172_vm14 = vcmp.gt.s32.totalorder %v2121_v44, 0  ;;  %v7358_v49 = vmov 0 }
  0x86   : > { %7353 = vst [vmem:[#allocation10_spill] sm:$0xff] %v7352_v62  ;;  %v7359_v49 = vsel %vm4172_vm14, 4294967295, %v7358_v49  ;;  %v2185_v47 = vsel %vm1961_vm12, -0.6961928, %v7217_v63  ;;  %v2217_v0 = vsel %vm1961_vm12, -0.3949175, %v7215_v1  ;;  %v325_v39 = vunpack.c.0.s8 %v3995_v45 }
  0x87   : > { %7360 = vst [vmem:[#allocation11_spill] sm:$0xff] %v7359_v49  ;;  %v2249_v36 = vsel %vm1961_vm12, -0.18477343, %v7206_v6  ;;  %v2281_v3 = vsel %vm1961_vm12, 0.0, %v7204_v8  ;;  %v2313_v19 = vsel %vm1961_vm12, 0.1609302, %v7196_v10  ;;  %v2441_v21 = vsel %vm4164_vm2, %v2217_v0, %v2185_v47 }
  0x88   : > { %v2345_v11 = vsel %vm1961_vm12, 0.33791524, %v7200_v13  ;;  %v2409_v35 = vsel %vm1961_vm12, 1.0, %v7198_v18  ;;  %v2377_v44 = vsel %vm1961_vm12, 0.562617, %v7202_v15  ;;  %v2473_v7 = vsel %vm4164_vm2, %v2281_v3, %v2249_v36 }
  0x89   : > { %v2505_v34 = vsel %vm4164_vm2, %v2345_v11, %v2313_v19  ;;  %v2537_v53 = vsel %vm4164_vm2, %v2409_v35, %v2377_v44  ;;  %v4195_v10 = vsel %vm4168_vm10, %v2473_v7, %v2441_v21  ;;  %v1388_v18 = vsel %vm4148_vm15, -0.6961928, %v7217_v63 }
  0x8a   : > { %7361 = vst [vmem:[#allocation12_spill] sm:$0xff] %v4195_v10  ;;  %v1420_v47 = vsel %vm4148_vm15, -0.3949175, %v7215_v1  ;;  %v4205_v0 = vsel %vm4168_vm10, %v2537_v53, %v2505_v34  ;;  %v1452_v60 = vsel %vm4148_vm15, -0.18477343, %v7206_v6  ;;  %v1484_v7 = vsel %vm4148_vm15, 0.0, %v7204_v8 }
  0x8b   : > { %7362 = vst [vmem:[#allocation13_spill] sm:$0xff] %v4205_v0  ;;  %v7363_v21 = vmov 0.0795803   ;;  %v1548_v53 = vsel %vm4148_vm15, 0.33791524, %v7200_v13  ;;  %v1644_v11 = vsel %vm4152_vm3, %v1420_v47, %v1388_v18  ;;  %v1676_v35 = vsel %vm4152_vm3, %v1484_v7, %v1452_v60  ;;  %v4269_v60 = vld [vmem:[%s3545_s29 + $0x18] sm:$0xff] }
  0x8c   : > { %v1516_v36 = vsel %vm4148_vm15, 0.1609302, %v7363_v21  ;;  %v1580_v34 = vsel %vm4148_vm15, 0.562617, %v7202_v15  ;;  %v7364_v2 = vmov 0.72295684   ;;  %v4239_v13 = vsel %vm4156_vm4, %v1676_v35, %v1644_v11 }
  0x8d   : > { %v1612_v19 = vsel %vm4148_vm15, 1.0, %v7364_v2  ;;  %v1708_v44 = vsel %vm4152_vm3, %v1548_v53, %v1516_v36  ;;  %7365 = vst [vmem:[#allocation14_spill] sm:$0xff] %v4239_v13  ;;  %v420_v15 = vshra.s32 %v3976_v28, 4  ;;  %v7367_v18 = vunpack.c.1.s8 %v3858_v29  ;;  %7369 = vst [vmem:[#allocation16_spill] sm:$0xff] %v4269_v60 }
  0x8e   : > { %v1740_v3 = vsel %vm4152_vm3, %v1612_v19, %v1580_v34  ;;  %v7368_v48 = vunpack.c.2.s8 %v3995_v45  ;;  %v4256_v36 = vand.u32 255, %v325_v39  ;;  %v7374_v35 = vmov 0 }
  0x8f   : > { %v4243_v54 = vsel %vm4156_vm4, %v1740_v3, %v1708_v44  ;;  %v354_v47 = vand.u32 255, %v7367_v18  ;;  %v452_v3 = vand.u32 15, %v420_v15  ;;  %v7377_v13 = vmov -0.28444138  }
  0x90   : > { %7366 = vst [vmem:[#allocation15_spill] sm:$0xff] %v4243_v54  ;;  %v4254_v7 = vand.u32 255, %v7368_v48  ;;  %v4265_v11 = vand.u32 15, %v4256_v36  ;;  %v7387_v8 = vmov 0  ;;  %vm7466_vm6 = vnez %v7327_v22  ;;  %v7475_v22 = vld [vmem:[#allocation7_spill] sm:$0xff] }
  0x91   : > { %v386_v53 = vand.u32 15, %v354_v47  ;;  %v418_v28 = vshra.s32 %v354_v47, 4  ;;  %v1932_v44 = vand.u32 1, %v452_v3  ;;  %v1996_v39 = vand.u32 2, %v452_v3 }
  0x92   : > { %v4261_v34 = vand.u32 15, %v4254_v7  ;;  %v2060_v18 = vand.u32 4, %v452_v3  ;;  %v2124_v48 = vand.u32 8, %v452_v3  ;;  %vm7472_vm0 = vnez %v7337_v61  ;;  %v7481_v61 = vld [vmem:[#allocation11_spill] sm:$0xff] }
  0x93   : > { %v1130_v15 = vand.u32 1, %v386_v53  ;;  %v1194_v47 = vand.u32 2, %v386_v53  ;;  %v1258_v52 = vand.u32 4, %v386_v53  ;;  %v1322_v29 = vand.u32 8, %v386_v53 }
  0x94   : > { %vm1964_vm10 = vcmp.gt.s32.totalorder %v1932_v44, 0  ;;  %vm4271_vm2 = vcmp.gt.s32.totalorder %v1996_v39, 0  ;;  %vm4275_vm15 = vcmp.gt.s32.totalorder %v2060_v18, 0  ;;  %vm4279_vm3 = vcmp.gt.s32.totalorder %v2124_v48, 0 }
  0x95   : > { %v7375_v35 = vsel %vm4279_vm3, 4294967295, %v7374_v35  ;;  %v2188_v3 = vsel %vm1964_vm10, -0.6961928, %v7217_v63  ;;  %v2220_v6 = vsel %vm1964_vm10, -0.3949175, %v7215_v1  ;;  %v2412_v0 = vsel %vm1964_vm10, 1.0, %v7364_v2 }
  0x96   : > { %7376 = vst [vmem:[#allocation17_spill] sm:$0xff] %v7375_v35  ;;  %v2252_v54 = vsel %vm1964_vm10, -0.18477343, %v7377_v13  ;;  %v7378_v44 = vmov -0.091050036   ;;  %v2444_v58 = vsel %vm4271_vm2, %v2220_v6, %v2188_v3  ;;  %vm1162_vm4 = vcmp.gt.s32.totalorder %v1130_v15, 0 }
  0x97   : > { %v2284_v39 = vsel %vm1964_vm10, 0.0, %v7378_v44  ;;  %v2316_v62 = vsel %vm1964_vm10, 0.1609302, %v7363_v21  ;;  %v7379_v18 = vmov 0.2461123   ;;  %vm4304_vm12 = vcmp.gt.s32.totalorder %v1194_v47, 0 }
  0x98   : > { %v2348_v10 = vsel %vm1964_vm10, 0.33791524, %v7379_v18  ;;  %v7380_v48 = vmov 0.44070983   ;;  %v2476_v1 = vsel %vm4271_vm2, %v2284_v39, %v2252_v54  ;;  %vm4316_vm8 = vcmp.gt.s32.totalorder %v1322_v29, 0 }
  0x99   : > { %v2380_v49 = vsel %vm1964_vm10, 0.562617, %v7380_v48  ;;  %v2508_v63 = vsel %vm4271_vm2, %v2348_v10, %v2316_v62  ;;  %v4302_v25 = vsel %vm4275_vm15, %v2476_v1, %v2444_v58  ;;  %vm4312_vm10 = vcmp.gt.s32.totalorder %v1258_v52, 0 }
  0x9a   : > { %v2540_v53 = vsel %vm4271_vm2, %v2412_v0, %v2380_v49  ;;  %7381 = vst [vmem:[#allocation18_spill] sm:$0xff] %v4302_v25  ;;  %v7388_v8 = vsel %vm4316_vm8, 4294967295, %v7387_v8  ;;  %v7390_v10 = vmov -1.0   ;;  %v7391_v62 = vmov -0.52507305  }
  0x9b   : > { %v4310_v6 = vsel %vm4275_vm15, %v2540_v53, %v2508_v63  ;;  %7389 = vst [vmem:[#allocation20_spill] sm:$0xff] %v7388_v8  ;;  %v1386_v1 = vsel %vm1162_vm4, -0.6961928, %v7390_v10  ;;  %v1418_v49 = vsel %vm1162_vm4, -0.3949175, %v7391_v62  ;;  %v1482_v0 = vsel %vm1162_vm4, 0.0, %v7378_v44 }
  0x9c   : > { %7384 = vst [vmem:[#allocation19_spill] sm:$0xff] %v4310_v6  ;;  %v1450_v63 = vsel %vm1162_vm4, -0.18477343, %v7377_v13  ;;  %v1514_v52 = vsel %vm1162_vm4, 0.1609302, %v7363_v21  ;;  %v1642_v15 = vsel %vm4304_vm12, %v1418_v49, %v1386_v1  ;;  %v1610_v47 = vsel %vm1162_vm4, 1.0, %v7364_v2 }
  0x9d   : > { %v1546_v29 = vsel %vm1162_vm4, 0.33791524, %v7379_v18  ;;  %v1578_v19 = vsel %vm1162_vm4, 0.562617, %v7380_v48  ;;  %v1674_v3 = vsel %vm4304_vm12, %v1482_v0, %v1450_v63  ;;  %v450_v39 = vand.u32 15, %v418_v28 }
  0x9e   : > { %v1706_v53 = vsel %vm4304_vm12, %v1546_v29, %v1514_v52  ;;  %v1738_v58 = vsel %vm4304_vm12, %v1610_v47, %v1578_v19  ;;  %v4342_v25 = vsel %vm4312_vm10, %v1674_v3, %v1642_v15  ;;  %v1135_v6 = vand.u32 1, %v4261_v34 }
  0x9f   : > { %7392 = vst [vmem:[#allocation21_spill] sm:$0xff] %v4342_v25  ;;  %v1199_v1 = vand.u32 2, %v4261_v34  ;;  %v4348_v49 = vsel %vm4312_vm10, %v1738_v58, %v1706_v53  ;;  %v1930_v63 = vand.u32 1, %v450_v39  ;;  %v1994_v0 = vand.u32 2, %v450_v39 }
  0xa0   : > { %7393 = vst [vmem:[#allocation22_spill] sm:$0xff] %v4348_v49  ;;  %v2058_v35 = vand.u32 4, %v450_v39  ;;  %v2122_v28 = vand.u32 8, %v450_v39  ;;  %vm4354_vm2 = vcmp.gt.s32.totalorder %v1135_v6, 0  ;;  %v1263_v19 = vand.u32 4, %v4261_v34 }
  0xa1   : > { %vm4358_vm15 = vcmp.gt.s32.totalorder %v1199_v1, 0  ;;  %vm1962_vm4 = vcmp.gt.s32.totalorder %v1930_v63, 0  ;;  %vm4362_vm12 = vcmp.gt.s32.totalorder %v1994_v0, 0  ;;  %v7402_v6 = vmov 0 }
  0xa2   : > { %vm4366_vm10 = vcmp.gt.s32.totalorder %v2058_v35, 0  ;;  %vm4371_vm8 = vcmp.gt.s32.totalorder %v2122_v28, 0  ;;  %v2186_v15 = vsel %vm1962_vm4, -0.6961928, %v7390_v10  ;;  %v2218_v47 = vsel %vm1962_vm4, -0.3949175, %v7391_v62 }
  0xa3   : > { %v7403_v6 = vsel %vm4371_vm8, 4294967295, %v7402_v6  ;;  %v2282_v3 = vsel %vm1962_vm4, 0.0, %v7378_v44  ;;  %v2250_v53 = vsel %vm1962_vm4, -0.18477343, %v7377_v13  ;;  %v2314_v39 = vsel %vm1962_vm4, 0.1609302, %v7363_v21 }
  0xa4   : > { %v2346_v35 = vsel %vm1962_vm4, 0.33791524, %v7379_v18  ;;  %v2442_v1 = vsel %vm4362_vm12, %v2218_v47, %v2186_v15  ;;  %v2378_v63 = vsel %vm1962_vm4, 0.562617, %v7380_v48  ;;  %v2410_v0 = vsel %vm1962_vm4, 1.0, %v7364_v2 }
  0xa5   : > { %v2474_v28 = vsel %vm4362_vm12, %v2282_v3, %v2250_v53  ;;  %v2506_v4 = vsel %vm4362_vm12, %v2346_v35, %v2314_v39  ;;  %v2538_v25 = vsel %vm4362_vm12, %v2410_v0, %v2378_v63  ;;  %vm4395_vm3 = vcmp.gt.s32.totalorder %v1263_v19, 0 }
  0xa6   : > { %v4393_v49 = vsel %vm4366_vm10, %v2474_v28, %v2442_v1  ;;  %v1327_v15 = vand.u32 8, %v4261_v34  ;;  %v4402_v47 = vsel %vm4366_vm10, %v2538_v25, %v2506_v4  ;;  %v1391_v3 = vsel %vm4354_vm2, -0.6961928, %v7390_v10 }
  0xa7   : > { %7404 = vst [vmem:[#allocation23_spill] sm:$0xff] %v4393_v49  ;;  %v1423_v54 = vsel %vm4354_vm2, -0.3949175, %v7391_v62  ;;  %v1455_v19 = vsel %vm4354_vm2, -0.18477343, %v7377_v13  ;;  %v7407_v25 = vmov 0  ;;  %v7436_v8 = vunpack.c.2.s8 %v4269_v60 }
  0xa8   : > { %vm4417_vm4 = vcmp.gt.s32.totalorder %v1327_v15, 0  ;;  %v1487_v4 = vsel %vm4354_vm2, 0.0, %v7378_v44  ;;  %v1519_v58 = vsel %vm4354_vm2, 0.1609302, %v7363_v21  ;;  %v1551_v53 = vsel %vm4354_vm2, 0.33791524, %v7379_v18 }
  0xa9   : > { %v7408_v25 = vsel %vm4417_vm4, 4294967295, %v7407_v25  ;;  %v1583_v39 = vsel %vm4354_vm2, 0.562617, %v7380_v48  ;;  %v1615_v35 = vsel %vm4354_vm2, 1.0, %v7364_v2  ;;  %v1647_v1 = vsel %vm4358_vm15, %v1423_v54, %v1391_v3 }
  0xaa   : > { %7409 = vst [vmem:[#allocation24_spill] sm:$0xff] %v7408_v25  ;;  %v1679_v63 = vsel %vm4358_vm15, %v1487_v4, %v1455_v19  ;;  %v1711_v0 = vsel %vm4358_vm15, %v1551_v53, %v1519_v58  ;;  %v1743_v28 = vsel %vm4358_vm15, %v1615_v35, %v1583_v39  ;;  %v7410_v15 = vshra.s32 %v4254_v7, 4 }
  0xab   : > { %v4448_v49 = vsel %vm4395_vm3, %v1679_v63, %v1647_v1  ;;  %v4452_v52 = vsel %vm4395_vm3, %v1743_v28, %v1711_v0  ;;  %v1133_v3 = vand.u32 1, %v4265_v11  ;;  %v1197_v54 = vand.u32 2, %v4265_v11 }
  0xac   : > { %v455_v34 = vand.u32 15, %v7410_v15  ;;  %7411 = vst [vmem:[#allocation25_spill] sm:$0xff] %v4448_v49  ;;  %7412 = vst [vmem:[#allocation26_spill] sm:$0xff] %v4452_v52  ;;  %v1261_v39 = vand.u32 4, %v4265_v11 }
  0xad   : > { %vm4460_vm2 = vcmp.gt.s32.totalorder %v1133_v3, 0  ;;  %vm4464_vm15 = vcmp.gt.s32.totalorder %v1197_v54, 0 }
  0xae   : > { %v1935_v19 = vand.u32 1, %v455_v34  ;;  %v1999_v7 = vand.u32 2, %v455_v34  ;;  %v2063_v4 = vand.u32 4, %v455_v34  ;;  %v2127_v58 = vand.u32 8, %v455_v34 }
  0xaf   : > { %v1325_v34 = vand.u32 8, %v4265_v11  ;;  %vm4502_vm8 = vcmp.gt.s32.totalorder %v1261_v39, 0  ;;  %v1389_v35 = vsel %vm4460_vm2, -0.6961928, %v7390_v10  ;;  %v1453_v39 = vsel %vm4460_vm2, -0.18477343, %v7377_v13 }
  0xb0   : > { %vm1967_vm3 = vcmp.gt.s32.totalorder %v1935_v19, 0  ;;  %vm4469_vm12 = vcmp.gt.s32.totalorder %v1999_v7, 0  ;;  %vm4473_vm10 = vcmp.gt.s32.totalorder %v2063_v4, 0  ;;  %vm4478_vm4 = vcmp.gt.s32.totalorder %v2127_v58, 0 }
  0xb1   : > { %v2191_v0 = vsel %vm1967_vm3, -0.6961928, %v7390_v10  ;;  %v2223_v28 = vsel %vm1967_vm3, -0.3949175, %v7391_v62  ;;  %v2287_v15 = vsel %vm1967_vm3, 0.0, %v7378_v44  ;;  %v2415_v4 = vsel %vm1967_vm3, 1.0, %v7364_v2 }
  0xb2   : > { %v2255_v3 = vsel %vm1967_vm3, -0.18477343, %v7377_v13  ;;  %v2319_v54 = vsel %vm1967_vm3, 0.1609302, %v7363_v21  ;;  %v2351_v19 = vsel %vm1967_vm3, 0.33791524, %v7379_v18  ;;  %v2447_v7 = vsel %vm4469_vm12, %v2223_v28, %v2191_v0 }
  0xb3   : > { %v2383_v11 = vsel %vm1967_vm3, 0.562617, %v7380_v48  ;;  %v2479_v58 = vsel %vm4469_vm12, %v2287_v15, %v2255_v3  ;;  %v2511_v29 = vsel %vm4469_vm12, %v2351_v19, %v2319_v54  ;;  %vm4506_vm14 = vcmp.gt.s32.totalorder %v1325_v34, 0 }
  0xb4   : > { %v2543_v49 = vsel %vm4469_vm12, %v2415_v4, %v2383_v11  ;;  %v4500_v52 = vsel %vm4473_vm10, %v2479_v58, %v2447_v7  ;;  %v7426_v0 = vmov 0  ;;  %v1421_v15 = vsel %vm4460_vm2, -0.3949175, %v7391_v62 }
  0xb5   : > { %7423 = vst [vmem:[#allocation27_spill] sm:$0xff] %v4500_v52  ;;  %v7427_v0 = vsel %vm4506_vm14, 4294967295, %v7426_v0  ;;  %v4512_v28 = vsel %vm4473_vm10, %v2543_v49, %v2511_v29  ;;  %v1485_v49 = vsel %vm4460_vm2, 0.0, %v7378_v44  ;;  %v1517_v29 = vsel %vm4460_vm2, 0.1609302, %v7363_v21 }
  0xb6   : > { %7428 = vst [vmem:[#allocation28_spill] sm:$0xff] %v7427_v0  ;;  %7429 = vst [vmem:[#allocation29_spill] sm:$0xff] %v4512_v28  ;;  %v1549_v1 = vsel %vm4460_vm2, 0.33791524, %v7379_v18  ;;  %v1581_v3 = vsel %vm4460_vm2, 0.562617, %v7380_v48  ;;  %v1645_v19 = vsel %vm4464_vm15, %v1421_v15, %v1389_v35  ;;  %v1677_v7 = vsel %vm4464_vm15, %v1485_v49, %v1453_v39 }
  0xb7   : > { %v1613_v54 = vsel %vm4460_vm2, 1.0, %v7364_v2  ;;  %v1709_v11 = vsel %vm4464_vm15, %v1549_v1, %v1517_v29  ;;  %v4552_v58 = vsel %vm4502_vm8, %v1677_v7, %v1645_v19  ;;  %v7431_v34 = vshra.s32 %v4256_v36, 4 }
  0xb8   : > { %v1741_v4 = vsel %vm4464_vm15, %v1613_v54, %v1581_v3  ;;  %7430 = vst [vmem:[#allocation30_spill] sm:$0xff] %v4552_v58  ;;  %v7433_v35 = vunpack.c.3.s8 %v3995_v45  ;;  %v7434_v39 = vunpack.c.1.s8 %v3995_v45  ;;  %v4568_v29 = vand.u32 255, %v7436_v8 }
  0xb9   : > { %v453_v53 = vand.u32 15, %v7431_v34  ;;  %v4558_v52 = vsel %vm4502_vm8, %v1741_v4, %v1709_v11 }
  0xba   : > { %7432 = vst [vmem:[#allocation31_spill] sm:$0xff] %v4558_v52  ;;  %v360_v15 = vand.u32 255, %v7433_v35  ;;  %v4564_v49 = vand.u32 255, %v7434_v39  ;;  %7437 = vst [vmem:[#allocation33_spill] sm:$0xff] %v4568_v29 }
  0xbb   : > { %v1933_v34 = vand.u32 1, %v453_v53  ;;  %v1997_v25 = vand.u32 2, %v453_v53  ;;  %v2061_v1 = vand.u32 4, %v453_v53  ;;  %v2125_v3 = vand.u32 8, %v453_v53 }
  0xbc   : > { %7435 = vst [vmem:[#allocation32_spill] sm:$0xff] %v4564_v49  ;;  %v392_v54 = vand.u32 15, %v360_v15  ;;  %v424_v19 = vshra.s32 %v360_v15, 4  ;;  %v4575_v7 = vand.u32 15, %v4564_v49 }
  0xbd   : > { %vm1965_vm8 = vcmp.gt.s32.totalorder %v1933_v34, 0  ;;  %vm4577_vm2 = vcmp.gt.s32.totalorder %v1997_v25, 0  ;;  %vm4581_vm15 = vcmp.gt.s32.totalorder %v2061_v1, 0  ;;  %vm4586_vm3 = vcmp.gt.s32.totalorder %v2125_v3, 0 }
  0xbe   : > { %v2189_v53 = vsel %vm1965_vm8, -0.6961928, %v7390_v10  ;;  %v2221_v15 = vsel %vm1965_vm8, -0.3949175, %v7391_v62  ;;  %v2285_v39 = vsel %vm1965_vm8, 0.0, %v7378_v44  ;;  %v2413_v4 = vsel %vm1965_vm8, 1.0, %v7364_v2 }
  0xbf   : > { %v2253_v8 = vsel %vm1965_vm8, -0.18477343, %v7377_v13  ;;  %v2317_v34 = vsel %vm1965_vm8, 0.1609302, %v7363_v21  ;;  %v2349_v25 = vsel %vm1965_vm8, 0.33791524, %v7379_v18  ;;  %v2445_v1 = vsel %vm4577_vm2, %v2221_v15, %v2189_v53 }
  0xc0   : > { %v2381_v3 = vsel %vm1965_vm8, 0.562617, %v7380_v48  ;;  %v2477_v36 = vsel %vm4577_vm2, %v2285_v39, %v2253_v8  ;;  %v2509_v60 = vsel %vm4577_vm2, %v2349_v25, %v2317_v34  ;;  %v1136_v58 = vand.u32 1, %v392_v54 }
  0xc1   : > { %v2541_v29 = vsel %vm4577_vm2, %v2413_v4, %v2381_v3  ;;  %v4608_v49 = vsel %vm4581_vm15, %v2477_v36, %v2445_v1  ;;  %v1200_v52 = vand.u32 2, %v392_v54  ;;  %v1264_v15 = vand.u32 4, %v392_v54 }
  0xc2   : > { %v4612_v53 = vsel %vm4581_vm15, %v2541_v29, %v2509_v60  ;;  %v1328_v0 = vand.u32 8, %v392_v54  ;;  %v456_v28 = vand.u32 15, %v424_v19  ;;  %vm1168_vm12 = vcmp.gt.s32.totalorder %v1136_v58, 0 }
  0xc3   : > { %vm4618_vm10 = vcmp.gt.s32.totalorder %v1200_v52, 0  ;;  %vm4623_vm8 = vcmp.gt.s32.totalorder %v1264_v15, 0  ;;  %v1392_v29 = vsel %vm1168_vm12, -0.6961928, %v7390_v10  ;;  %v1424_v54 = vsel %vm1168_vm12, -0.3949175, %v7391_v62 }
  0xc4   : > { %vm4627_vm2 = vcmp.gt.s32.totalorder %v1328_v0, 0  ;;  %v1456_v58 = vsel %vm1168_vm12, -0.18477343, %v7377_v13  ;;  %v1488_v52 = vsel %vm1168_vm12, 0.0, %v7378_v44  ;;  %v1520_v19 = vsel %vm1168_vm12, 0.1609302, %v7363_v21 }
  0xc5   : > { %v1616_v11 = vsel %vm1168_vm12, 1.0, %v7364_v2  ;;  %v1552_v8 = vsel %vm1168_vm12, 0.33791524, %v7379_v18  ;;  %v1584_v34 = vsel %vm1168_vm12, 0.562617, %v7380_v48  ;;  %v1648_v0 = vsel %vm4618_vm10, %v1424_v54, %v1392_v29 }
  0xc6   : > { %v1680_v25 = vsel %vm4618_vm10, %v1488_v52, %v1456_v58  ;;  %v1712_v3 = vsel %vm4618_vm10, %v1552_v8, %v1520_v19  ;;  %v1744_v15 = vsel %vm4618_vm10, %v1616_v11, %v1584_v34  ;;  %v1936_v36 = vand.u32 1, %v456_v28 }
  0xc7   : > { %v4649_v39 = vsel %vm4623_vm8, %v1680_v25, %v1648_v0  ;;  %v7450_v29 = vsel %vm3581_vm5, %v3626_v27, %v3604_v17  ;;  %v4660_v19 = vsel %vm4623_vm8, %v1744_v15, %v1712_v3  ;;  %v2000_v45 = vand.u32 2, %v456_v28 }
  0xc8   : > { %v2064_v11 = vand.u32 4, %v456_v28  ;;  %v7451_v8 = vsel %vm3641_vm9, %v3671_v43, %v3669_v42  ;;  %v1840_v0 = vsel %vm4627_vm2, %v4660_v19, %v4649_v39  ;;  %vm4680_vm5 = vcmp.gt.s32.totalorder %v1936_v36, 0  ;;  %v7477_v36 = vld [vmem:[#allocation9_spill] sm:$0xff] }
  0xc9   : > { %v7455_v42 = vsel %vm3750_vm1, %v3780_v38, %v3778_v37  ;;  %vm4698_vm9 = vcmp.gt.s32.totalorder %v2000_v45, 0  ;;  %v7461_v37 = vsel %vm3860_vm11, %v3893_v56, %v3886_v51  ;;  %v2192_v3 = vsel %vm4680_vm5, -0.6961928, %v7390_v10 }
  0xca   : > { %vm4702_vm13 = vcmp.gt.s32.totalorder %v2064_v11, 0  ;;  %v7463_v51 = vsel %vm3946_vm7, %v3980_v33, %v3972_v26  ;;  %v2224_v20 = vsel %vm4680_vm5, -0.3949175, %v7391_v62  ;;  %v2256_v40 = vsel %vm4680_vm5, -0.18477343, %v7377_v13 }
  0xcb   : > { %v2288_v26 = vsel %vm4680_vm5, 0.0, %v7378_v44  ;;  %v2320_v15 = vsel %vm4680_vm5, 0.1609302, %v7363_v21  ;;  %v2416_v45 = vsel %vm4680_vm5, 1.0, %v7364_v2  ;;  %v2448_v11 = vsel %vm4698_vm9, %v2224_v20, %v2192_v3 }
  0xcc   : > { %vm7476_vm7 = vnez %v7475_v22  ;;  %vm7482_vm15 = vnez %v7481_v61  ;;  %v7499_v22 = vld [vmem:[#allocation20_spill] sm:$0xff]  ;;  %v7508_v61 = vld [vmem:[#allocation23_spill] sm:$0xff] }
  0xcd   : > { %vm7500_vm8 = vnez %v7499_v22  ;;  %v7517_v22 = vld [vmem:[#allocation26_spill] sm:$0xff] }
  0xf1   : > { %v3126_v1 = vpop.f32.mrb[0].mxu0 }
  0xf2   : > { %v4656_v54 = vmul.f32 %v3126_v1, %v7450_v29  ;;  %v3160_v58 = vpop.f32.mrb[0].mxu1  ;;  %v677_v52 = vpop.f32.mrb[1].mxu0  ;;  %v2128_v1 = vand.u32 8, %v456_v28  ;;  %v2352_v29 = vsel %vm4680_vm5, 0.33791524, %v7379_v18 }
  0xf3   : > { %v4667_v34 = vmul.f32 %v3160_v58, %v7451_v8  ;;  %v4674_v17 = vmul.f32 %v7452_v5, %v677_v52  ;;  %v998_v27 = vpop.f32.mrb[1].mxu1  ;;  %v3127_v4 = vpop.f32.mrb[2].mxu0  ;;  %v2384_v58 = vsel %vm4680_vm5, 0.562617, %v7380_v48  ;;  %v2480_v8 = vsel %vm4698_vm9, %v2288_v26, %v2256_v40  ;;  %v7483_v26 = vld [vmem:[#allocation13_spill] sm:$0xff] }
  0xf4   : > { %v4689_v43 = vmul.f32 %v7455_v42, %v998_v27  ;;  %v4696_v9 = vmul.f32 %v3127_v4, %v7456_v59  ;;  %v3161_v14 = vpop.f32.mrb[2].mxu1  ;;  %v680_v25 = vpop.f32.mrb[3].mxu0  ;;  %vm4742_vm1 = vcmp.gt.s32.totalorder %v2128_v1, 0  ;;  %v2512_v5 = vsel %vm4698_vm9, %v2352_v29, %v2320_v15  ;;  %v7487_v29 = vld [vmem:[#allocation10_spill] sm:$0xff] }
  0xf5   : > { %v4711_v38 = vmul.f32 %v3161_v14, %v7461_v37  ;;  %v4718_v12 = vmul.f32 %v7462_v57, %v680_v25  ;;  %v1001_v16 = vpop.f32.mrb[3].mxu1  ;;  %v7467_v27 = vsel %vm7466_vm6, %v4035_v31, %v4031_v41  ;;  %v2544_v32 = vsel %vm4698_vm9, %v2416_v45, %v2384_v58  ;;  %v7478_v57 = vld [vmem:[#allocation8_spill] sm:$0xff]  ;;  %v7489_v58 = vld [vmem:[#allocation15_spill] sm:$0xff] }
  0xf6   : > { %v4730_v56 = vmul.f32 %v7463_v51, %v1001_v16  ;;  %v2576_v14 = vsel %vm4702_vm13, %v2480_v8, %v2448_v11  ;;  %v7469_v25 = vand.u32 1, %v4575_v7  ;;  %v7473_v31 = vsel %vm7472_vm0, %v4087_v50, %v4079_v24  ;;  %v7484_v24 = vld [vmem:[#allocation12_spill] sm:$0xff] }
  0xf7   : > { %v7479_v16 = vsel %vm7476_vm7, %v7477_v36, %v7478_v57  ;;  %v2608_v20 = vsel %vm4702_vm13, %v2544_v32, %v2512_v5  ;;  %v1198_v40 = vand.u32 2, %v4575_v7  ;;  %v7485_v50 = vsel %vm7482_vm15, %v7483_v26, %v7484_v24  ;;  %v7496_v32 = vld [vmem:[#allocation18_spill] sm:$0xff]  ;;  %v7502_v57 = vld [vmem:[#allocation21_spill] sm:$0xff] }
  0xf8   : > { %vm4782_vm11 = vcmp.gt.s32.totalorder %v7469_v25, 0  ;;  %vm7488_vm12 = vnez %v7487_v29  ;;  %v2640_v23 = vsel %vm4742_vm1, %v2608_v20, %v2576_v14  ;;  %v1262_v5 = vand.u32 4, %v4575_v7  ;;  %v7501_v36 = vld [vmem:[#allocation22_spill] sm:$0xff] }
  0xf9   : > { %v3130_v52 = vpop.f32.mrb[4].mxu0  ;;  %vm4834_vm5 = vcmp.gt.s32.totalorder %v1198_v40, 0  ;;  %v1326_v14 = vand.u32 8, %v4575_v7  ;;  %vm7507_vm9 = vnez %v7403_v6  ;;  %v1390_v40 = vsel %vm4782_vm11, -0.6961928, %v7390_v10 }
  0xfa   : > { %v4774_v4 = vmul.f32 %v3130_v52, %v7467_v27  ;;  %v3164_v42 = vpop.f32.mrb[4].mxu1  ;;  %v693_v59 = vpop.f32.mrb[5].mxu0  ;;  %v7490_v52 = vld [vmem:[#allocation14_spill] sm:$0xff]  ;;  %v7509_v26 = vsel %vm7507_vm9, %v4402_v47, %v7508_v61  ;;  %vm4848_vm13 = vcmp.gt.s32.totalorder %v1262_v5, 0  ;;  %v1422_v47 = vsel %vm4782_vm11, -0.3949175, %v7391_v62 }
  0xfb   : > { %v4791_v41 = vmul.f32 %v3164_v42, %v7473_v31  ;;  %v4798_v1 = vmul.f32 %v7479_v16, %v693_v59  ;;  %v1014_v3 = vpop.f32.mrb[5].mxu1  ;;  %v3131_v51 = vpop.f32.mrb[6].mxu0  ;;  %v7491_v45 = vsel %vm7488_vm12, %v7489_v58, %v7490_v52  ;;  %v7493_v42 = vld [vmem:[#allocation17_spill] sm:$0xff]  ;;  %v7495_v59 = vld [vmem:[#allocation19_spill] sm:$0xff]  ;;  %v7503_v16 = vsel %vm7500_vm8, %v7501_v36, %v7502_v57 }
  0xfc   : > { %7468 = vst [vmem:[#allocation34_spill] sm:$0xff] %v4774_v4  ;;  %v4808_v15 = vmul.f32 %v7485_v50, %v1014_v3  ;;  %v4815_v11 = vmul.f32 %v3131_v51, %v7491_v45  ;;  %v3165_v8 = vpop.f32.mrb[6].mxu1  ;;  %v696_v27 = vpop.f32.mrb[7].mxu0  ;;  %vm7494_vm10 = vnez %v7493_v42  ;;  %vm4859_vm1 = vcmp.gt.s32.totalorder %v1326_v14, 0  ;;  %v7518_v36 = vld [vmem:[#allocation25_spill] sm:$0xff] }
  0xfd   : > { %7474 = vst [vmem:[#allocation35_spill] sm:$0xff] %v4791_v41  ;;  %7480 = vst [vmem:[#allocation7_spill] sm:$0xff] %v4798_v1  ;;  %v7497_v25 = vsel %vm7494_vm10, %v7495_v59, %v7496_v32  ;;  %v4832_v3 = vmul.f32 %v7503_v16, %v696_v27  ;;  %v1017_v51 = vpop.f32.mrb[7].mxu1  ;;  %v1454_v52 = vsel %vm4782_vm11, -0.18477343, %v7377_v13  ;;  %v1486_v45 = vsel %vm4782_vm11, 0.0, %v7378_v44 }
  0xfe   : > { %7486 = vst [vmem:[#allocation9_spill] sm:$0xff] %v4808_v15  ;;  %7492 = vst [vmem:[#allocation8_spill] sm:$0xff] %v4815_v11  ;;  %v4825_v31 = vmul.f32 %v3165_v8, %v7497_v25  ;;  %v4846_v24 = vmul.f32 %v7509_v26, %v1017_v51  ;;  %v1518_v8 = vsel %vm4782_vm11, 0.1609302, %v7363_v21  ;;  %v1550_v5 = vsel %vm4782_vm11, 0.33791524, %v7379_v18 }
  0xff   : > { %7504 = vst [vmem:[#allocation13_spill] sm:$0xff] %v4832_v3  ;;  %v1582_v42 = vsel %vm4782_vm11, 0.562617, %v7380_v48  ;;  %v1614_v59 = vsel %vm4782_vm11, 1.0, %v7364_v2  ;;  %v1646_v32 = vsel %vm4834_vm5, %v1422_v47, %v1390_v40  ;;  %v7515_v25 = vld [vmem:[#allocation24_spill] sm:$0xff]  ;;  %v1678_v61 = vsel %vm4834_vm5, %v1486_v45, %v1454_v52  ;;  %v7521_v40 = vld [vmem:[#allocation29_spill] sm:$0xff] }
 0x100   : > { %7498 = vst [vmem:[#allocation11_spill] sm:$0xff] %v4825_v31  ;;  %7510 = vst [vmem:[#allocation12_spill] sm:$0xff] %v4846_v24  ;;  %vm7516_vm6 = vnez %v7515_v25  ;;  %v1710_v26 = vsel %vm4834_vm5, %v1550_v5, %v1518_v8  ;;  %v1742_v37 = vsel %vm4834_vm5, %v1614_v59, %v1582_v42  ;;  %v7522_v47 = vld [vmem:[#allocation27_spill] sm:$0xff]  ;;  %v1774_v55 = vsel %vm4848_vm13, %v1678_v61, %v1646_v32  ;;  %v7533_v32 = vld [vmem:[#allocation32_spill] sm:$0xff] }
 0x101   : > { %v3134_v27 = vpop.f32.mrb[8].mxu0  ;;  %v7519_v57 = vsel %vm7516_vm6, %v7517_v22, %v7518_v36  ;;  %v7523_v25 = vsel %vm4478_vm4, %v7521_v40, %v7522_v47  ;;  %v7526_v22 = vld [vmem:[#allocation31_spill] sm:$0xff]  ;;  %v7527_v36 = vld [vmem:[#allocation30_spill] sm:$0xff]  ;;  %v1806_v63 = vsel %vm4848_vm13, %v1742_v37, %v1710_v26  ;;  %v7530_v8 = vsel %vm4586_vm3, %v4612_v53, %v4608_v49  ;;  %v7537_v26 = vld [vmem:[#allocation33_spill] sm:$0xff] }
 0x102   : > { %v4893_v16 = vmul.f32 %v3134_v27, %v7519_v57  ;;  %v3168_v51 = vpop.f32.mrb[8].mxu1  ;;  %v709_v14 = vpop.f32.mrb[9].mxu0  ;;  %v7528_v57 = vsel %vm4506_vm14, %v7526_v22, %v7527_v36  ;;  %v1838_v50 = vsel %vm4859_vm1, %v1806_v63, %v1774_v55  ;;  %v395_v60 = vand.u32 15, %v7537_v26 }
 0x103   : > { %v4906_v7 = vmul.f32 %v3168_v51, %v7523_v25  ;;  %v4913_v58 = vmul.f32 %v7528_v57, %v709_v14  ;;  %v1030_v52 = vpop.f32.mrb[9].mxu1  ;;  %v3135_v45 = vpop.f32.mrb[10].mxu0  ;;  %v7534_v14 = vshra.s32 %v7533_v32, 4  ;;  %v427_v37 = vshra.s32 %v7537_v26, 4 }
 0x104   : > { %7520 = vst [vmem:[#allocation10_spill] sm:$0xff] %v4893_v16  ;;  %v4924_v5 = vmul.f32 %v7530_v8, %v1030_v52  ;;  %v4931_v42 = vmul.f32 %v3135_v45, %v1840_v0  ;;  %v3169_v59 = vpop.f32.mrb[10].mxu1  ;;  %v712_v51 = vpop.f32.mrb[11].mxu0  ;;  %v1139_v25 = vand.u32 1, %v395_v60  ;;  %v1203_v36 = vand.u32 2, %v395_v60 }
 0x105   : > { %7524 = vst [vmem:[#allocation15_spill] sm:$0xff] %v4906_v7  ;;  %7529 = vst [vmem:[#allocation14_spill] sm:$0xff] %v4913_v58  ;;  %v454_v35 = vand.u32 15, %v7534_v14  ;;  %v4937_v61 = vmul.f32 %v3169_v59, %v2640_v23  ;;  %v4939_v49 = vmul.f32 %v1838_v50, %v712_v51  ;;  %v1033_v53 = vpop.f32.mrb[11].mxu1  ;;  %v1267_v27 = vand.u32 4, %v395_v60  ;;  %v5046_v23 = vld [vmem:[%s3545_s29 + $0x20] sm:$0xff] }
 0x106   : > { %7531 = vst [vmem:[#allocation17_spill] sm:$0xff] %v4924_v5  ;;  %7532 = vst [vmem:[#allocation19_spill] sm:$0xff] %v4931_v42  ;;  %vm4981_vm11 = vcmp.gt.s32.totalorder %v1139_v25, 0  ;;  %vm4985_vm0 = vcmp.gt.s32.totalorder %v1203_v36, 0  ;;  %v459_v46 = vand.u32 15, %v427_v37 }
 0x107   : > { %7535 = vst [vmem:[#allocation18_spill] sm:$0xff] %v4937_v61  ;;  %7536 = vst [vmem:[#allocation20_spill] sm:$0xff] %v4939_v49  ;;  %v1934_v19 = vand.u32 1, %v454_v35  ;;  %v1998_v0 = vand.u32 2, %v454_v35  ;;  %v2062_v40 = vand.u32 4, %v454_v35  ;;  %v2126_v47 = vand.u32 8, %v454_v35 }
 0x108   : > { %v1395_v25 = vsel %vm4981_vm11, -0.6961928, %v7390_v10  ;;  %v1459_v22 = vsel %vm4981_vm11, -0.18477343, %v7377_v13  ;;  %vm1299_vm7 = vcmp.gt.s32.totalorder %v1267_v27, 0  ;;  %v2067_v37 = vand.u32 4, %v459_v46 }
 0x109   : > { %vm1966_vm14 = vcmp.gt.s32.totalorder %v1934_v19, 0  ;;  %vm4949_vm4 = vcmp.gt.s32.totalorder %v1998_v0, 0  ;;  %vm4953_vm3 = vcmp.gt.s32.totalorder %v2062_v40, 0  ;;  %vm4957_vm2 = vcmp.gt.s32.totalorder %v2126_v47, 0  ;;  %v3138_v26 = vpop.f32.mrb[12].mxu0 }
 0x10a   : > { %v2190_v52 = vsel %vm1966_vm14, -0.6961928, %v7390_v10  ;;  %v2222_v45 = vsel %vm1966_vm14, -0.3949175, %v7391_v62  ;;  %v2286_v55 = vsel %vm1966_vm14, 0.0, %v7378_v44  ;;  %v2414_v32 = vsel %vm1966_vm14, 1.0, %v7364_v2 }
 0x10b   : > { %v2254_v63 = vsel %vm1966_vm14, -0.18477343, %v7377_v13  ;;  %v2318_v8 = vsel %vm1966_vm14, 0.1609302, %v7363_v21  ;;  %v2350_v59 = vsel %vm1966_vm14, 0.33791524, %v7379_v18  ;;  %v2446_v51 = vsel %vm4949_vm4, %v2222_v45, %v2190_v52 }
 0x10c   : > { %v2382_v50 = vsel %vm1966_vm14, 0.562617, %v7380_v48  ;;  %v2478_v14 = vsel %vm4949_vm4, %v2286_v55, %v2254_v63  ;;  %v2510_v35 = vsel %vm4949_vm4, %v2350_v59, %v2318_v8  ;;  %v4975_v19 = vpop.f32.mrb[12].mxu1  ;;  %v4989_v45 = vpop.f32.mrb[13].mxu0  ;;  %v1331_v8 = vand.u32 8, %v395_v60 }
 0x10d   : > { %v2542_v0 = vsel %vm4949_vm4, %v2414_v32, %v2382_v50  ;;  %v2574_v40 = vsel %vm4953_vm3, %v2478_v14, %v2446_v51  ;;  %v4991_v55 = vpop.f32.mrb[13].mxu1  ;;  %v4998_v59 = vpop.f32.mrb[14].mxu0  ;;  %v1427_v50 = vsel %vm4981_vm11, -0.3949175, %v7391_v62  ;;  %v1491_v60 = vsel %vm4981_vm11, 0.0, %v7378_v44 }
 0x10e   : > { %v2606_v63 = vsel %vm4953_vm3, %v2542_v0, %v2510_v35  ;;  %v5000_v51 = vpop.f32.mrb[14].mxu1  ;;  %v5013_v32 = vpop.f32.mrb[15].mxu0  ;;  %vm5017_vm15 = vcmp.gt.s32.totalorder %v1331_v8, 0  ;;  %v1523_v35 = vsel %vm4981_vm11, 0.1609302, %v7363_v21  ;;  %v1651_v27 = vsel %vm4985_vm0, %v1427_v50, %v1395_v25  ;;  %v7551_v25 = vld [vmem:[#allocation16_spill] sm:$0xff] }
 0x10f   : > { %v2638_v36 = vsel %vm4957_vm2, %v2606_v63, %v2574_v40  ;;  %v5024_v0 = vpop.f32.mrb[15].mxu1  ;;  %v1555_v40 = vsel %vm4981_vm11, 0.33791524, %v7379_v18  ;;  %v1619_v63 = vsel %vm4981_vm11, 1.0, %v7364_v2  ;;  %v329_v50 = vunpack.c.0.s8 %v7551_v25 }
 0x110   : > { %v5015_v14 = vmul.f32 %v2638_v36, %v1033_v53  ;;  %v1587_v53 = vsel %vm4981_vm11, 0.562617, %v7380_v48  ;;  %v1683_v36 = vsel %vm4985_vm0, %v1491_v60, %v1459_v22  ;;  %v1715_v6 = vsel %vm4985_vm0, %v1555_v40, %v1523_v35 }
 0x111   : > { %v1747_v39 = vsel %vm4985_vm0, %v1619_v63, %v1587_v53  ;;  %v5048_v20 = vpop.f32.mrb[16].mxu0  ;;  %v1779_v47 = vsel %vm1299_vm7, %v1683_v36, %v1651_v27  ;;  %v332_v60 = vunpack.c.3.s8 %v7551_v25  ;;  %v330_v52 = vunpack.c.1.s8 %v7551_v25 }
 0x112   : > { %7548 = vst [vmem:[#allocation22_spill] sm:$0xff] %v5015_v14  ;;  %v1811_v29 = vsel %vm1299_vm7, %v1747_v39, %v1715_v6  ;;  %v5051_v33 = vpop.f32.mrb[16].mxu1  ;;  %v5053_v8 = vpop.f32.mrb[17].mxu0  ;;  %v1939_v53 = vand.u32 1, %v459_v46  ;;  %v2003_v39 = vand.u32 2, %v459_v46  ;;  %v335_v6 = vunpack.c.2.s8 %v5046_v23 }
 0x113   : > { %v1843_v22 = vsel %vm5017_vm15, %v1811_v29, %v1779_v47  ;;  %v5059_v35 = vpop.f32.mrb[17].mxu1  ;;  %v5061_v40 = vpop.f32.mrb[18].mxu0  ;;  %v2131_v29 = vand.u32 8, %v459_v46  ;;  %v361_v57 = vand.u32 255, %v329_v50  ;;  %v5070_v47 = vand.u32 255, %v332_v60 }
 0x114   : > { %v5064_v63 = vpop.f32.mrb[18].mxu1  ;;  %v5066_v27 = vpop.f32.mrb[19].mxu0  ;;  %v5068_v36 = vmul.f32 %v3138_v26, %v1843_v22  ;;  %vm1971_vm12 = vcmp.gt.s32.totalorder %v1939_v53, 0  ;;  %vm5074_vm10 = vcmp.gt.s32.totalorder %v2003_v39, 0  ;;  %vm5078_vm8 = vcmp.gt.s32.totalorder %v2067_v37, 0 }
 0x115   : > { %v5072_v25 = vpop.f32.mrb[19].mxu1  ;;  %v5082_v7 = vand.u32 255, %v330_v52  ;;  %vm5084_vm5 = vcmp.gt.s32.totalorder %v2131_v29, 0  ;;  %v2195_v46 = vsel %vm1971_vm12, -0.6961928, %v7390_v10  ;;  %v2291_v22 = vsel %vm1971_vm12, 0.0, %v7378_v44 }
 0x116   : > { %7552 = vst [vmem:[#allocation21_spill] sm:$0xff] %v5068_v36  ;;  %v2227_v50 = vsel %vm1971_vm12, -0.3949175, %v7391_v62  ;;  %v2259_v60 = vsel %vm1971_vm12, -0.18477343, %v7377_v13  ;;  %v2419_v29 = vsel %vm1971_vm12, 1.0, %v7364_v2 }
 0x117   : > { %v2323_v53 = vsel %vm1971_vm12, 0.1609302, %v7363_v21  ;;  %v2355_v39 = vsel %vm1971_vm12, 0.33791524, %v7379_v18  ;;  %v2451_v52 = vsel %vm5074_vm10, %v2227_v50, %v2195_v46  ;;  %v2387_v37 = vsel %vm1971_vm12, 0.562617, %v7380_v48 }
 0x118   : > { %v2483_v61 = vsel %vm5074_vm10, %v2291_v22, %v2259_v60  ;;  %v2515_v5 = vsel %vm5074_vm10, %v2355_v39, %v2323_v53  ;;  %v2547_v16 = vsel %vm5074_vm10, %v2419_v29, %v2387_v37  ;;  %v393_v58 = vand.u32 15, %v361_v57 }
 0x119   : > { %v5102_v14 = vpop.f32.mrb[20].mxu0  ;;  %v2579_v42 = vsel %vm5078_vm8, %v2483_v61, %v2451_v52  ;;  %v425_v46 = vshra.s32 %v361_v57, 4  ;;  %v2611_v22 = vsel %vm5078_vm8, %v2547_v16, %v2515_v5  ;;  %v5115_v60 = vand.u32 15, %v5070_v47 }
 0x11a   : > { %v5108_v50 = vpop.f32.mrb[20].mxu1  ;;  %v5110_v49 = vpop.f32.mrb[21].mxu0  ;;  %v5118_v39 = vand.u32 255, %v335_v6  ;;  %v1137_v61 = vand.u32 1, %v393_v58  ;;  %v1201_v57 = vand.u32 2, %v393_v58  ;;  %v1265_v52 = vand.u32 4, %v393_v58 }
 0x11b   : > { %7559 = vst [vmem:[#allocation23_spill] sm:$0xff] %v5110_v49  ;;  %v5120_v30 = vpop.f32.mrb[21].mxu1  ;;  %v5122_v37 = vpop.f32.mrb[22].mxu0  ;;  %v5125_v29 = vand.u32 15, %v5082_v7  ;;  %v2643_v28 = vsel %vm5084_vm5, %v2611_v22, %v2579_v42  ;;  %v1329_v16 = vand.u32 8, %v393_v58  ;;  %v457_v5 = vand.u32 15, %v425_v46 }
 0x11c   : > { %7560 = vst [vmem:[#allocation24_spill] sm:$0xff] %v5120_v30  ;;  %7561 = vst [vmem:[#allocation26_spill] sm:$0xff] %v5122_v37  ;;  %v1140_v41 = vand.u32 1, %v5115_v60  ;;  %v5130_v53 = vpop.f32.mrb[22].mxu1  ;;  %vm1169_vm9 = vcmp.gt.s32.totalorder %v1137_v61, 0  ;;  %vm5132_vm13 = vcmp.gt.s32.totalorder %v1201_v57, 0 }
 0x11d   : > { %7562 = vst [vmem:[#allocation25_spill] sm:$0xff] %v5130_v53  ;;  %vm5136_vm1 = vcmp.gt.s32.totalorder %v1265_v52, 0  ;;  %v1204_v15 = vand.u32 2, %v5115_v60  ;;  %vm5141_vm6 = vcmp.gt.s32.totalorder %v1329_v16, 0  ;;  %v1393_v58 = vsel %vm1169_vm9, -0.6961928, %v7390_v10 }
 0x11e   : > { %v1425_v42 = vsel %vm1169_vm9, -0.3949175, %v7391_v62  ;;  %v1489_v46 = vsel %vm1169_vm9, 0.0, %v7378_v44  ;;  %v1457_v22 = vsel %vm1169_vm9, -0.18477343, %v7377_v13  ;;  %v1617_v24 = vsel %vm1169_vm9, 1.0, %v7364_v2 }
 0x11f   : > { %v1521_v61 = vsel %vm1169_vm9, 0.1609302, %v7363_v21  ;;  %v1553_v57 = vsel %vm1169_vm9, 0.33791524, %v7379_v18  ;;  %v1649_v52 = vsel %vm5132_vm13, %v1425_v42, %v1393_v58  ;;  %v1585_v16 = vsel %vm1169_vm9, 0.562617, %v7380_v48 }
 0x120   : > { %v1681_v4 = vsel %vm5132_vm13, %v1489_v46, %v1457_v22  ;;  %v1713_v11 = vsel %vm5132_vm13, %v1553_v57, %v1521_v61  ;;  %v1745_v1 = vsel %vm5132_vm13, %v1617_v24, %v1585_v16  ;;  %v1937_v53 = vand.u32 1, %v457_v5 }
 0x121   : > { %v1777_v3 = vsel %vm5136_vm1, %v1681_v4, %v1649_v52  ;;  %v2001_v37 = vand.u32 2, %v457_v5  ;;  %v5164_v58 = vmul.f32 %v4975_v19, %v2643_v28  ;;  %v1809_v42 = vsel %vm5136_vm1, %v1745_v1, %v1713_v11 }
 0x122   : > { %v2065_v30 = vand.u32 4, %v457_v5  ;;  %v2129_v49 = vand.u32 8, %v457_v5  ;;  %v1841_v46 = vsel %vm5141_vm6, %v1809_v42, %v1777_v3  ;;  %vm1969_vm14 = vcmp.gt.s32.totalorder %v1937_v53, 0  ;;  %v5191_v3 = vpop.f32.mrb[23].mxu0 }
 0x123   : > { %7569 = vst [vmem:[#allocation29_spill] sm:$0xff] %v5164_v58  ;;  %vm5170_vm4 = vcmp.gt.s32.totalorder %v2001_v37, 0  ;;  %vm5174_vm3 = vcmp.gt.s32.totalorder %v1140_v41, 0  ;;  %v2193_v11 = vsel %vm1969_vm14, -0.6961928, %v7390_v10  ;;  %vm5187_vm0 = vcmp.gt.s32.totalorder %v1204_v15, 0 }
 0x124   : > { %vm5178_vm2 = vcmp.gt.s32.totalorder %v2065_v30, 0  ;;  %vm5182_vm11 = vcmp.gt.s32.totalorder %v2129_v49, 0  ;;  %v2225_v41 = vsel %vm1969_vm14, -0.3949175, %v7391_v62  ;;  %v2257_v19 = vsel %vm1969_vm14, -0.18477343, %v7377_v13 }
 0x125   : > { %v2289_v53 = vsel %vm1969_vm14, 0.0, %v7378_v44  ;;  %v2417_v30 = vsel %vm1969_vm14, 1.0, %v7364_v2  ;;  %v2321_v49 = vsel %vm1969_vm14, 0.1609302, %v7363_v21  ;;  %v2353_v37 = vsel %vm1969_vm14, 0.33791524, %v7379_v18 }
 0x126   : > { %v2385_v28 = vsel %vm1969_vm14, 0.562617, %v7380_v48  ;;  %v2449_v15 = vsel %vm5170_vm4, %v2225_v41, %v2193_v11  ;;  %v2481_v5 = vsel %vm5170_vm4, %v2289_v53, %v2257_v19  ;;  %v2513_v26 = vsel %vm5170_vm4, %v2353_v37, %v2321_v49  ;;  %v5255_v37 = vpop.f32.mrb[23].mxu1 }
 0x127   : > { %v2545_v22 = vsel %vm5170_vm4, %v2417_v30, %v2385_v28  ;;  %v1268_v61 = vand.u32 4, %v5115_v60  ;;  %v5211_v57 = vsel %vm5178_vm2, %v2481_v5, %v2449_v15  ;;  %v1332_v16 = vand.u32 8, %v5115_v60 }
 0x128   : > { %v5215_v52 = vsel %vm5178_vm2, %v2545_v22, %v2513_v26  ;;  %v1396_v42 = vsel %vm5174_vm3, -0.6961928, %v7390_v10  ;;  %v5222_v11 = vmul.f32 %v1841_v46, %v4989_v45  ;;  %v1428_v24 = vsel %vm5174_vm3, -0.3949175, %v7391_v62 }
 0x129   : > { %v1460_v60 = vsel %vm5174_vm3, -0.18477343, %v7377_v13  ;;  %vm1300_vm7 = vcmp.gt.s32.totalorder %v1268_v61, 0  ;;  %vm5234_vm15 = vcmp.gt.s32.totalorder %v1332_v16, 0  ;;  %v1492_v45 = vsel %vm5174_vm3, 0.0, %v7378_v44 }
 0x12a   : > { %v1524_v46 = vsel %vm5174_vm3, 0.1609302, %v7363_v21  ;;  %v1556_v19 = vsel %vm5174_vm3, 0.33791524, %v7379_v18  ;;  %v1588_v53 = vsel %vm5174_vm3, 0.562617, %v7380_v48  ;;  %v1652_v49 = vsel %vm5187_vm0, %v1428_v24, %v1396_v42 }
 0x12b   : > { %v1620_v30 = vsel %vm5174_vm3, 1.0, %v7364_v2  ;;  %v1684_v28 = vsel %vm5187_vm0, %v1492_v45, %v1460_v60  ;;  %v1716_v15 = vsel %vm5187_vm0, %v1556_v19, %v1524_v46  ;;  %v7582_v26 = vshra.s32 %v5070_v47, 4 }
 0x12c   : > { %v1748_v5 = vsel %vm5187_vm0, %v1620_v30, %v1588_v53  ;;  %v1780_v61 = vsel %vm1300_vm7, %v1684_v28, %v1652_v49  ;;  %v1138_v16 = vand.u32 1, %v5125_v29  ;;  %v1202_v42 = vand.u32 2, %v5125_v29 }
 0x12d   : > { %v460_v22 = vand.u32 15, %v7582_v26  ;;  %v1812_v4 = vsel %vm1300_vm7, %v1748_v5, %v1716_v15  ;;  %v431_v47 = vshra.s32 %v5118_v39, 4  ;;  %v7622_v58 = vunpack.c.3.s8 %v5046_v23 }
 0x12e   : > { %v1844_v24 = vsel %vm5234_vm15, %v1812_v4, %v1780_v61  ;;  %vm5272_vm12 = vcmp.gt.s32.totalorder %v1138_v16, 0  ;;  %vm5276_vm10 = vcmp.gt.s32.totalorder %v1202_v42, 0 }
 0x12f   : > { %v1940_v6 = vand.u32 1, %v460_v22  ;;  %v2004_v60 = vand.u32 2, %v460_v22  ;;  %v2068_v45 = vand.u32 4, %v460_v22  ;;  %v5270_v46 = vmul.f32 %v4998_v59, %v1844_v24 }
 0x130   : > { %v2132_v31 = vand.u32 8, %v460_v22  ;;  %v1266_v59 = vand.u32 4, %v5125_v29  ;;  %v1426_v53 = vsel %vm5272_vm12, -0.3949175, %v7391_v62  ;;  %v1490_v41 = vsel %vm5272_vm12, 0.0, %v7378_v44 }
 0x131   : > { %7583 = vst [vmem:[#allocation27_spill] sm:$0xff] %v5270_v46  ;;  %vm1972_vm8 = vcmp.gt.s32.totalorder %v1940_v6, 0  ;;  %vm5280_vm5 = vcmp.gt.s32.totalorder %v2004_v60, 0  ;;  %vm5284_vm9 = vcmp.gt.s32.totalorder %v2068_v45, 0  ;;  %v1586_v49 = vsel %vm5272_vm12, 0.562617, %v7380_v48 }
 0x132   : > { %vm5291_vm13 = vcmp.gt.s32.totalorder %v2132_v31, 0  ;;  %v2196_v28 = vsel %vm1972_vm8, -0.6961928, %v7390_v10  ;;  %v2228_v6 = vsel %vm1972_vm8, -0.3949175, %v7391_v62  ;;  %v2292_v5 = vsel %vm1972_vm8, 0.0, %v7378_v44 }
 0x133   : > { %v2260_v15 = vsel %vm1972_vm8, -0.18477343, %v7377_v13  ;;  %v2324_v26 = vsel %vm1972_vm8, 0.1609302, %v7363_v21  ;;  %v2420_v22 = vsel %vm1972_vm8, 1.0, %v7364_v2  ;;  %v2452_v16 = vsel %vm5280_vm5, %v2228_v6, %v2196_v28 }
 0x134   : > { %v2356_v61 = vsel %vm1972_vm8, 0.33791524, %v7379_v18  ;;  %v2388_v4 = vsel %vm1972_vm8, 0.562617, %v7380_v48  ;;  %v2484_v42 = vsel %vm5280_vm5, %v2292_v5, %v2260_v15  ;;  %vm5313_vm1 = vcmp.gt.s32.totalorder %v1266_v59, 0 }
 0x135   : > { %v2516_v24 = vsel %vm5280_vm5, %v2356_v61, %v2324_v26  ;;  %v2548_v60 = vsel %vm5280_vm5, %v2420_v22, %v2388_v4  ;;  %v2580_v45 = vsel %vm5284_vm9, %v2484_v42, %v2452_v16  ;;  %v1330_v28 = vand.u32 8, %v5125_v29  ;;  %v5359_v16 = vpop.f32.mrb[24].mxu0  ;;  %v5361_v42 = vpop.f32.mrb[24].mxu1 }
 0x136   : > { %v2612_v30 = vsel %vm5284_vm9, %v2548_v60, %v2516_v24  ;;  %v1394_v6 = vsel %vm5272_vm12, -0.6961928, %v7390_v10  ;;  %v1458_v59 = vsel %vm5272_vm12, -0.18477343, %v7377_v13  ;;  %v1522_v29 = vsel %vm5272_vm12, 0.1609302, %v7363_v21 }
 0x137   : > { %v2644_v15 = vsel %vm5291_vm13, %v2612_v30, %v2580_v45  ;;  %vm5340_vm6 = vcmp.gt.s32.totalorder %v1330_v28, 0  ;;  %v1554_v30 = vsel %vm5272_vm12, 0.33791524, %v7379_v18  ;;  %v1618_v22 = vsel %vm5272_vm12, 1.0, %v7364_v2 }
 0x138   : > { %v5338_v5 = vmul.f32 %v5000_v51, %v2644_v15  ;;  %v1650_v51 = vsel %vm5276_vm10, %v1426_v53, %v1394_v6  ;;  %v1682_v61 = vsel %vm5276_vm10, %v1490_v41, %v1458_v59  ;;  %v1714_v4 = vsel %vm5276_vm10, %v1554_v30, %v1522_v29 }
 0x139   : > { %v1746_v19 = vsel %vm5276_vm10, %v1618_v22, %v1586_v49  ;;  %v1778_v60 = vsel %vm5313_vm1, %v1682_v61, %v1650_v51  ;;  %v426_v45 = vshra.s32 %v5082_v7, 4  ;;  %v7599_v28 = vsel %vm5182_vm11, %v5215_v52, %v5211_v57 }
 0x13a   : > { %7596 = vst [vmem:[#allocation28_spill] sm:$0xff] %v5338_v5  ;;  %v5376_v6 = vmul.f32 %v7599_v28, %v4991_v55  ;;  %v1810_v53 = vsel %vm5313_vm1, %v1746_v19, %v1714_v4  ;;  %v399_v15 = vand.u32 15, %v5118_v39  ;;  %v333_v7 = vunpack.c.0.s8 %v5046_v23 }
 0x13b   : > { %v1842_v59 = vsel %vm5340_vm6, %v1810_v53, %v1778_v60  ;;  %v458_v41 = vand.u32 15, %v426_v45  ;;  %v5415_v60 = vpop.f32.mrb[25].mxu0  ;;  %v5532_v5 = vand.u32 255, %v7622_v58 }
 0x13c   : > { %7600 = vst [vmem:[#allocation31_spill] sm:$0xff] %v5376_v6  ;;  %v5387_v29 = vmul.f32 %v1842_v59, %v5013_v32  ;;  %v1143_v55 = vand.u32 1, %v399_v15  ;;  %v1207_v57 = vand.u32 2, %v399_v15  ;;  %v1271_v52 = vand.u32 4, %v399_v15 }
 0x13d   : > { %v1938_v31 = vand.u32 1, %v458_v41  ;;  %v2002_v30 = vand.u32 2, %v458_v41  ;;  %v2066_v49 = vand.u32 4, %v458_v41  ;;  %v2130_v22 = vand.u32 8, %v458_v41 }
 0x13e   : > { %vm5391_vm14 = vcmp.gt.s32.totalorder %v1143_v55, 0  ;;  %vm5395_vm4 = vcmp.gt.s32.totalorder %v1207_v57, 0  ;;  %vm5399_vm3 = vcmp.gt.s32.totalorder %v1271_v52, 0  ;;  %v1335_v59 = vand.u32 8, %v399_v15 }
 0x13f   : > { %vm1970_vm2 = vcmp.gt.s32.totalorder %v1938_v31, 0  ;;  %vm5403_vm11 = vcmp.gt.s32.totalorder %v2002_v30, 0  ;;  %vm5407_vm0 = vcmp.gt.s32.totalorder %v2066_v49, 0  ;;  %vm5411_vm7 = vcmp.gt.s32.totalorder %v2130_v22, 0 }
 0x140   : > { %v2194_v45 = vsel %vm1970_vm2, -0.6961928, %v7390_v10  ;;  %v2226_v28 = vsel %vm1970_vm2, -0.3949175, %v7391_v62  ;;  %v2258_v53 = vsel %vm1970_vm2, -0.18477343, %v7377_v13 }
 0x141   : > { %v2290_v41 = vsel %vm1970_vm2, 0.0, %v7378_v44  ;;  %v2322_v55 = vsel %vm1970_vm2, 0.1609302, %v7363_v21  ;;  %v2354_v57 = vsel %vm1970_vm2, 0.33791524, %v7379_v18  ;;  %v2418_v52 = vsel %vm1970_vm2, 1.0, %v7364_v2 }
 0x142   : > { %v2386_v31 = vsel %vm1970_vm2, 0.562617, %v7380_v48  ;;  %v2450_v30 = vsel %vm5403_vm11, %v2226_v28, %v2194_v45  ;;  %v2482_v49 = vsel %vm5403_vm11, %v2290_v41, %v2258_v53  ;;  %v2514_v22 = vsel %vm5403_vm11, %v2354_v57, %v2322_v55  ;;  %v5462_v55 = vpop.f32.mrb[25].mxu1  ;;  %v5504_v41 = vpop.f32.mrb[26].mxu0 }
 0x143   : > { %v2546_v24 = vsel %vm5403_vm11, %v2418_v52, %v2386_v31  ;;  %v2578_v39 = vsel %vm5407_vm0, %v2482_v49, %v2450_v30  ;;  %v1399_v1 = vsel %vm5391_vm14, -0.6961928, %v7390_v10  ;;  %v1431_v28 = vsel %vm5391_vm14, -0.3949175, %v7391_v62  ;;  %v5482_v49 = vld [vmem:[%s3545_s29 + $0x28] sm:$0xff] }
 0x144   : > { %v2610_v45 = vsel %vm5407_vm0, %v2546_v24, %v2514_v22  ;;  %v1463_v61 = vsel %vm5391_vm14, -0.18477343, %v7377_v13  ;;  %v1495_v15 = vsel %vm5391_vm14, 0.0, %v7378_v44  ;;  %vm5452_vm15 = vcmp.gt.s32.totalorder %v1335_v59, 0 }
 0x145   : > { %v2642_v53 = vsel %vm5411_vm7, %v2610_v45, %v2578_v39  ;;  %v1527_v24 = vsel %vm5391_vm14, 0.1609302, %v7363_v21  ;;  %v1559_v4 = vsel %vm5391_vm14, 0.33791524, %v7379_v18  ;;  %v1591_v39 = vsel %vm5391_vm14, 0.562617, %v7380_v48 }
 0x146   : > { %v5465_v57 = vmul.f32 %v2642_v53, %v5024_v0  ;;  %v1623_v19 = vsel %vm5391_vm14, 1.0, %v7364_v2  ;;  %v1655_v59 = vsel %vm5395_vm4, %v1431_v28, %v1399_v1  ;;  %v1687_v52 = vsel %vm5395_vm4, %v1495_v15, %v1463_v61 }
 0x147   : > { %v1719_v31 = vsel %vm5395_vm4, %v1559_v4, %v1527_v24  ;;  %v1751_v0 = vsel %vm5395_vm4, %v1623_v19, %v1591_v39  ;;  %v463_v30 = vand.u32 15, %v431_v47  ;;  %v1783_v26 = vsel %vm5399_vm3, %v1687_v52, %v1655_v59 }
 0x148   : > { %7615 = vst [vmem:[#allocation30_spill] sm:$0xff] %v5465_v57  ;;  %v1815_v1 = vsel %vm5399_vm3, %v1751_v0, %v1719_v31  ;;  %v365_v45 = vand.u32 255, %v333_v7 }
 0x149   : > { %v1847_v28 = vsel %vm5452_vm15, %v1815_v1, %v1783_v26  ;;  %v1943_v61 = vand.u32 1, %v463_v30  ;;  %v2007_v15 = vand.u32 2, %v463_v30  ;;  %v2071_v51 = vand.u32 4, %v463_v30 }
 0x14a   : > { %v5493_v47 = vmul.f32 %v5048_v20, %v1847_v28  ;;  %v2135_v53 = vand.u32 8, %v463_v30  ;;  %v397_v24 = vand.u32 15, %v365_v45  ;;  %v429_v32 = vshra.s32 %v365_v45, 4 }
 0x14b   : > { %vm1975_vm12 = vcmp.gt.s32.totalorder %v1943_v61, 0  ;;  %vm5496_vm10 = vcmp.gt.s32.totalorder %v2007_v15, 0  ;;  %vm5500_vm8 = vcmp.gt.s32.totalorder %v2071_v51, 0 }
 0x14c   : > { %vm5506_vm5 = vcmp.gt.s32.totalorder %v2135_v53, 0  ;;  %v2199_v20 = vsel %vm1975_vm12, -0.6961928, %v7390_v10  ;;  %v2231_v59 = vsel %vm1975_vm12, -0.3949175, %v7391_v62  ;;  %v2295_v52 = vsel %vm1975_vm12, 0.0, %v7378_v44 }
 0x14d   : > { %v2263_v31 = vsel %vm1975_vm12, -0.18477343, %v7377_v13  ;;  %v2327_v0 = vsel %vm1975_vm12, 0.1609302, %v7363_v21  ;;  %v2359_v30 = vsel %vm1975_vm12, 0.33791524, %v7379_v18  ;;  %v2455_v26 = vsel %vm5496_vm10, %v2231_v59, %v2199_v20 }
 0x14e   : > { %v2391_v1 = vsel %vm1975_vm12, 0.562617, %v7380_v48  ;;  %v2423_v45 = vsel %vm1975_vm12, 1.0, %v7364_v2  ;;  %v2487_v28 = vsel %vm5496_vm10, %v2295_v52, %v2263_v31  ;;  %v2519_v61 = vsel %vm5496_vm10, %v2359_v30, %v2327_v0 }
 0x14f   : > { %v2551_v15 = vsel %vm5496_vm10, %v2423_v45, %v2391_v1  ;;  %v2583_v51 = vsel %vm5500_vm8, %v2487_v28, %v2455_v26  ;;  %v1141_v53 = vand.u32 1, %v397_v24  ;;  %v1205_v22 = vand.u32 2, %v397_v24 }
 0x150   : > { %v2615_v20 = vsel %vm5500_vm8, %v2551_v15, %v2519_v61  ;;  %v1269_v59 = vand.u32 4, %v397_v24  ;;  %v1333_v4 = vand.u32 8, %v397_v24  ;;  %v461_v31 = vand.u32 15, %v429_v32 }
 0x151   : > { %v2647_v52 = vsel %vm5506_vm5, %v2615_v20, %v2583_v51  ;;  %vm1173_vm9 = vcmp.gt.s32.totalorder %v1141_v53, 0  ;;  %vm5536_vm13 = vcmp.gt.s32.totalorder %v1205_v22, 0  ;;  %v400_v24 = vand.u32 15, %v5532_v5  ;;  %v5565_v53 = vpop.f32.mrb[26].mxu1 }
 0x152   : > { %vm5540_vm1 = vcmp.gt.s32.totalorder %v1269_v59, 0  ;;  %vm5544_vm6 = vcmp.gt.s32.totalorder %v1333_v4, 0  ;;  %v1397_v58 = vsel %vm1173_vm9, -0.6961928, %v7390_v10  ;;  %v1429_v19 = vsel %vm1173_vm9, -0.3949175, %v7391_v62 }
 0x153   : > { %v1461_v22 = vsel %vm1173_vm9, -0.18477343, %v7377_v13  ;;  %v1493_v30 = vsel %vm1173_vm9, 0.0, %v7378_v44  ;;  %v1621_v32 = vsel %vm1173_vm9, 1.0, %v7364_v2  ;;  %v1525_v26 = vsel %vm1173_vm9, 0.1609302, %v7363_v21 }
 0x154   : > { %v1557_v1 = vsel %vm1173_vm9, 0.33791524, %v7379_v18  ;;  %v1589_v4 = vsel %vm1173_vm9, 0.562617, %v7380_v48  ;;  %v1653_v45 = vsel %vm5536_vm13, %v1429_v19, %v1397_v58  ;;  %v1685_v28 = vsel %vm5536_vm13, %v1493_v30, %v1461_v22 }
 0x155   : > { %v1717_v61 = vsel %vm5536_vm13, %v1557_v1, %v1525_v26  ;;  %v1749_v15 = vsel %vm5536_vm13, %v1621_v32, %v1589_v4  ;;  %v1941_v51 = vand.u32 1, %v461_v31  ;;  %v1781_v20 = vsel %vm5540_vm1, %v1685_v28, %v1653_v45 }
 0x156   : > { %v1813_v59 = vsel %vm5540_vm1, %v1749_v15, %v1717_v61  ;;  %v2005_v6 = vand.u32 2, %v461_v31  ;;  %v2069_v58 = vand.u32 4, %v461_v31  ;;  %v5572_v19 = vmul.f32 %v5051_v33, %v2647_v52  ;;  %v5591_v52 = vpop.f32.mrb[27].mxu0 }
 0x157   : > { %vm5574_vm14 = vcmp.gt.s32.totalorder %v1941_v51, 0  ;;  %v2133_v39 = vand.u32 8, %v461_v31  ;;  %v1144_v30 = vand.u32 1, %v400_v24  ;;  %v1845_v32 = vsel %vm5544_vm6, %v1813_v59, %v1781_v20  ;;  %v5662_v31 = vpop.f32.mrb[27].mxu1 }
 0x158   : > { %vm5580_vm4 = vcmp.gt.s32.totalorder %v2005_v6, 0  ;;  %vm5584_vm3 = vcmp.gt.s32.totalorder %v2069_v58, 0  ;;  %v2197_v33 = vsel %vm5574_vm14, -0.6961928, %v7390_v10  ;;  %v2229_v6 = vsel %vm5574_vm14, -0.3949175, %v7391_v62 }
 0x159   : > { %vm5593_vm2 = vcmp.gt.s32.totalorder %v2133_v39, 0  ;;  %v2261_v7 = vsel %vm5574_vm14, -0.18477343, %v7377_v13  ;;  %v2293_v1 = vsel %vm5574_vm14, 0.0, %v7378_v44  ;;  %v2325_v4 = vsel %vm5574_vm14, 0.1609302, %v7363_v21 }
 0x15a   : > { %v2357_v45 = vsel %vm5574_vm14, 0.33791524, %v7379_v18  ;;  %v2389_v28 = vsel %vm5574_vm14, 0.562617, %v7380_v48  ;;  %v2453_v61 = vsel %vm5580_vm4, %v2229_v6, %v2197_v33  ;;  %v2421_v15 = vsel %vm5574_vm14, 1.0, %v7364_v2 }
 0x15b   : > { %v2485_v51 = vsel %vm5580_vm4, %v2293_v1, %v2261_v7  ;;  %v2517_v20 = vsel %vm5580_vm4, %v2357_v45, %v2325_v4  ;;  %vm5624_vm11 = vcmp.gt.s32.totalorder %v1144_v30, 0  ;;  %v2549_v58 = vsel %vm5580_vm4, %v2421_v15, %v2389_v28 }
 0x15c   : > { %v2581_v39 = vsel %vm5584_vm3, %v2485_v51, %v2453_v61  ;;  %v1208_v33 = vand.u32 2, %v400_v24  ;;  %v1272_v6 = vand.u32 4, %v400_v24  ;;  %v2613_v22 = vsel %vm5584_vm3, %v2549_v58, %v2517_v20 }
 0x15d   : > { %v1336_v57 = vand.u32 8, %v400_v24  ;;  %v1400_v7 = vsel %vm5624_vm11, -0.6961928, %v7390_v10  ;;  %v1432_v30 = vsel %vm5624_vm11, -0.3949175, %v7391_v62  ;;  %v5641_v26 = vmul.f32 %v1845_v32, %v5053_v8 }
 0x15e   : > { %v2645_v1 = vsel %vm5593_vm2, %v2613_v22, %v2581_v39  ;;  %vm5645_vm0 = vcmp.gt.s32.totalorder %v1208_v33, 0  ;;  %v1464_v24 = vsel %vm5624_vm11, -0.18477343, %v7377_v13  ;;  %vm1304_vm7 = vcmp.gt.s32.totalorder %v1272_v6, 0 }
 0x15f   : > { %vm5652_vm15 = vcmp.gt.s32.totalorder %v1336_v57, 0  ;;  %v1496_v8 = vsel %vm5624_vm11, 0.0, %v7378_v44  ;;  %v1528_v32 = vsel %vm5624_vm11, 0.1609302, %v7363_v21  ;;  %v1560_v45 = vsel %vm5624_vm11, 0.33791524, %v7379_v18 }
 0x160   : > { %v1592_v57 = vsel %vm5624_vm11, 0.562617, %v7380_v48  ;;  %v1624_v28 = vsel %vm5624_vm11, 1.0, %v7364_v2  ;;  %v1656_v61 = vsel %vm5645_vm0, %v1432_v30, %v1400_v7  ;;  %v1688_v15 = vsel %vm5645_vm0, %v1496_v8, %v1464_v24 }
 0x161   : > { %v1720_v51 = vsel %vm5645_vm0, %v1560_v45, %v1528_v32  ;;  %v1752_v20 = vsel %vm5645_vm0, %v1624_v28, %v1592_v57  ;;  %v432_v58 = vshra.s32 %v5532_v5, 4  ;;  %v1784_v39 = vsel %vm1304_vm7, %v1688_v15, %v1656_v61 }
 0x162   : > { %v1816_v33 = vsel %vm1304_vm7, %v1752_v20, %v1720_v51  ;;  %v7643_v6 = vunpack.c.1.s8 %v5046_v23  ;;  %v7644_v22 = vunpack.c.2.s8 %v5482_v49  ;;  %v5689_v7 = vmul.f32 %v2645_v1, %v5059_v35 }
 0x163   : > { %v1848_v30 = vsel %vm5652_vm15, %v1816_v33, %v1784_v39  ;;  %v464_v24 = vand.u32 15, %v432_v58 }
 0x164   : > { %v366_v59 = vand.u32 255, %v7643_v6  ;;  %v5686_v36 = vand.u32 255, %v7644_v22  ;;  %v5695_v5 = vmul.f32 %v5061_v40, %v1848_v30 }
 0x165   : > { %v1944_v45 = vand.u32 1, %v464_v24  ;;  %v2008_v57 = vand.u32 2, %v464_v24  ;;  %v2072_v28 = vand.u32 4, %v464_v24  ;;  %v2136_v61 = vand.u32 8, %v464_v24 }
 0x166   : > { %v398_v8 = vand.u32 15, %v366_v59  ;;  %v430_v32 = vshra.s32 %v366_v59, 4  ;;  %v5698_v23 = vand.u32 15, %v5686_v36  ;;  %v435_v46 = vshra.s32 %v5686_v36, 4 }
 0x167   : > { %vm1976_vm12 = vcmp.gt.s32.totalorder %v1944_v45, 0  ;;  %vm5702_vm10 = vcmp.gt.s32.totalorder %v2008_v57, 0  ;;  %vm5706_vm8 = vcmp.gt.s32.totalorder %v2072_v28, 0  ;;  %vm5710_vm5 = vcmp.gt.s32.totalorder %v2136_v61, 0 }
 0x168   : > { %v1142_v1 = vand.u32 1, %v398_v8  ;;  %v1206_v0 = vand.u32 2, %v398_v8  ;;  %v1270_v15 = vand.u32 4, %v398_v8  ;;  %v2200_v58 = vsel %vm1976_vm12, -0.6961928, %v7390_v10 }
 0x169   : > { %v2232_v39 = vsel %vm1976_vm12, -0.3949175, %v7391_v62  ;;  %v2264_v33 = vsel %vm1976_vm12, -0.18477343, %v7377_v13  ;;  %v2296_v59 = vsel %vm1976_vm12, 0.0, %v7378_v44  ;;  %v2424_v24 = vsel %vm1976_vm12, 1.0, %v7364_v2 }
 0x16a   : > { %v2328_v22 = vsel %vm1976_vm12, 0.1609302, %v7363_v21  ;;  %v2360_v30 = vsel %vm1976_vm12, 0.33791524, %v7379_v18  ;;  %v2392_v45 = vsel %vm1976_vm12, 0.562617, %v7380_v48  ;;  %v2456_v57 = vsel %vm5702_vm10, %v2232_v39, %v2200_v58 }
 0x16b   : > { %v2488_v28 = vsel %vm5702_vm10, %v2296_v59, %v2264_v33  ;;  %v2520_v61 = vsel %vm5702_vm10, %v2360_v30, %v2328_v22  ;;  %v2552_v6 = vsel %vm5702_vm10, %v2424_v24, %v2392_v45  ;;  %vm5733_vm9 = vcmp.gt.s32.totalorder %v1142_v1, 0  ;;  %v5774_v59 = vpop.f32.mrb[28].mxu0  ;;  %v5786_v45 = vpop.f32.mrb[28].mxu1 }
 0x16c   : > { %v2584_v4 = vsel %vm5706_vm8, %v2488_v28, %v2456_v57  ;;  %vm5737_vm13 = vcmp.gt.s32.totalorder %v1206_v0, 0  ;;  %v2616_v58 = vsel %vm5706_vm8, %v2552_v6, %v2520_v61  ;;  %vm5743_vm1 = vcmp.gt.s32.totalorder %v1270_v15, 0 }
 0x16d   : > { %v1334_v51 = vand.u32 8, %v398_v8  ;;  %v1398_v33 = vsel %vm5733_vm9, -0.6961928, %v7390_v10  ;;  %v2648_v1 = vsel %vm5710_vm5, %v2616_v58, %v2584_v4  ;;  %v1430_v0 = vsel %vm5733_vm9, -0.3949175, %v7391_v62 }
 0x16e   : > { %v1462_v40 = vsel %vm5733_vm9, -0.18477343, %v7377_v13  ;;  %v1494_v15 = vsel %vm5733_vm9, 0.0, %v7378_v44  ;;  %v5762_v8 = vmul.f32 %v5064_v63, %v2648_v1  ;;  %v1526_v4 = vsel %vm5733_vm9, 0.1609302, %v7363_v21 }
 0x16f   : > { %vm5764_vm6 = vcmp.gt.s32.totalorder %v1334_v51, 0  ;;  %v1558_v20 = vsel %vm5733_vm9, 0.33791524, %v7379_v18  ;;  %v1590_v22 = vsel %vm5733_vm9, 0.562617, %v7380_v48  ;;  %v1622_v63 = vsel %vm5733_vm9, 1.0, %v7364_v2 }
 0x170   : > { %v1654_v30 = vsel %vm5737_vm13, %v1430_v0, %v1398_v33  ;;  %v1686_v24 = vsel %vm5737_vm13, %v1494_v15, %v1462_v40  ;;  %v2702_v57 = vpack.c.bf16 %v5762_v8, %v5572_v19  ;;  %v1718_v28 = vsel %vm5737_vm13, %v1558_v20, %v1526_v4 }
 0x171   : > { %v1750_v61 = vsel %vm5737_vm13, %v1622_v63, %v1590_v22  ;;  %v1782_v35 = vsel %vm5743_vm1, %v1686_v24, %v1654_v30  ;;  %v462_v51 = vand.u32 15, %v430_v32  ;;  %v1147_v33 = vand.u32 1, %v5698_v23  ;;  %v5827_v24 = vpop.f32.mrb[29].mxu0 }
 0x172   : > { %v1814_v58 = vsel %vm5743_vm1, %v1750_v61, %v1718_v28  ;;  %v1211_v1 = vand.u32 2, %v5698_v23  ;;  %v1275_v40 = vand.u32 4, %v5698_v23  ;;  %v1339_v15 = vand.u32 8, %v5698_v23 }
 0x173   : > { %v1846_v0 = vsel %vm5764_vm6, %v1814_v58, %v1782_v35  ;;  %v1942_v20 = vand.u32 1, %v462_v51  ;;  %v2006_v22 = vand.u32 2, %v462_v51  ;;  %v2070_v39 = vand.u32 4, %v462_v51 }
 0x174   : > { %v1878_v4 = vmul.f32 %v1846_v0, %v5066_v27  ;;  %v2134_v63 = vand.u32 8, %v462_v51  ;;  %vm5806_vm14 = vcmp.gt.s32.totalorder %v1147_v33, 0  ;;  %vm5810_vm4 = vcmp.gt.s32.totalorder %v1211_v1, 0 }
 0x175   : > { %vm5814_vm3 = vcmp.gt.s32.totalorder %v1275_v40, 0  ;;  %vm1974_vm2 = vcmp.gt.s32.totalorder %v1942_v20, 0  ;;  %vm5819_vm11 = vcmp.gt.s32.totalorder %v2006_v22, 0  ;;  %vm5823_vm0 = vcmp.gt.s32.totalorder %v2070_v39, 0 }
 0x176   : > { %v1901_v36 = vpack.c.bf16 %v1878_v4, %v5641_v26  ;;  %vm5829_vm7 = vcmp.gt.s32.totalorder %v2134_v63, 0  ;;  %v2198_v61 = vsel %vm1974_vm2, -0.6961928, %v7390_v10  ;;  %v2230_v35 = vsel %vm1974_vm2, -0.3949175, %v7391_v62 }
 0x177   : > { %v2294_v26 = vsel %vm1974_vm2, 0.0, %v7378_v44  ;;  %v2262_v58 = vsel %vm1974_vm2, -0.18477343, %v7377_v13  ;;  %v2326_v51 = vsel %vm1974_vm2, 0.1609302, %v7363_v21  ;;  %v2454_v1 = vsel %vm5819_vm11, %v2230_v35, %v2198_v61 }
 0x178   : > { %v2358_v33 = vsel %vm1974_vm2, 0.33791524, %v7379_v18  ;;  %3104 = vmatprep.subr.bf16.mxu0 %v1901_v36  ;;  %v2390_v0 = vsel %vm1974_vm2, 0.562617, %v7380_v48  ;;  %v2422_v40 = vsel %vm1974_vm2, 1.0, %v7364_v2  ;;  %v2486_v4 = vsel %vm5819_vm11, %v2294_v26, %v2262_v58 }
 0x179   : > { %v2518_v20 = vsel %vm5819_vm11, %v2358_v33, %v2326_v51  ;;  %v7671_v22 = vpack.c.bf16 %v4718_v12, %v4674_v17  ;;  %v2550_v39 = vsel %vm5819_vm11, %v2422_v40, %v2390_v0  ;;  %v2582_v63 = vsel %vm5823_vm0, %v2486_v4, %v2454_v1 }
 0x17a   : > { %v7672_v36 = vpack.c.bf16 %v5695_v5, %v5493_v47  ;;  %vm5857_vm15 = vcmp.gt.s32.totalorder %v1339_v15, 0  ;;  %v1403_v35 = vsel %vm5806_vm14, -0.6961928, %v7390_v10  ;;  %v2614_v17 = vsel %vm5823_vm0, %v2550_v39, %v2518_v20  ;;  %v5875_v15 = vpop.f32.mrb[29].mxu1 }
 0x17b   : > { %3105 = vmatpush3.bf16.xpose.msra.mxu0 %v7671_v22  ;;  %v1435_v12 = vsel %vm5806_vm14, -0.3949175, %v7391_v62  ;;  %v1467_v47 = vsel %vm5806_vm14, -0.18477343, %v7377_v13  ;;  %v1499_v5 = vsel %vm5806_vm14, 0.0, %v7378_v44  ;;  %v2646_v27 = vsel %vm5829_vm7, %v2614_v17, %v2582_v63 }
 0x17c   : > { %3106 = vmatprep.subr.bf16.mxu0 %v7672_v36  ;;  %v1531_v23 = vsel %vm5806_vm14, 0.1609302, %v7363_v21  ;;  %v1563_v26 = vsel %vm5806_vm14, 0.33791524, %v7379_v18  ;;  %v1595_v58 = vsel %vm5806_vm14, 0.562617, %v7380_v48  ;;  %v2678_v51 = vmul.f32 %v2646_v27, %v5072_v25 }
 0x17d   : > { %v1627_v33 = vsel %vm5806_vm14, 1.0, %v7364_v2  ;;  %v1659_v28 = vsel %vm5810_vm4, %v1435_v12, %v1403_v35  ;;  %v1691_v1 = vsel %vm5810_vm4, %v1499_v5, %v1467_v47  ;;  %v1723_v0 = vsel %vm5810_vm4, %v1563_v26, %v1531_v23  ;;  %v5917_v27 = vpop.f32.mrb[30].mxu0 }
 0x17e   : > { %v1755_v40 = vsel %vm5810_vm4, %v1627_v33, %v1595_v58  ;;  %v1787_v4 = vsel %vm5814_vm3, %v1691_v1, %v1659_v28  ;;  %v467_v25 = vand.u32 15, %v435_v46  ;;  %v2701_v20 = vpack.c.bf16 %v2678_v51, %v5689_v7 }
 0x17f   : > { %v1819_v32 = vsel %vm5814_vm3, %v1755_v40, %v1723_v0  ;;  %v7675_v22 = vunpack.c.0.s8 %v5482_v49  ;;  %v338_v63 = vunpack.c.1.s8 %v5482_v49  ;;  %v7676_v30 = vunpack.c.3.s8 %v5482_v49 }
 0x180   : > { %v1947_v36 = vand.u32 1, %v467_v25  ;;  %v2011_v35 = vand.u32 2, %v467_v25  ;;  %v2075_v17 = vand.u32 4, %v467_v25  ;;  %3086 = vmatprep.subr.bf16.mxu1 %v2701_v20  ;;  %v1851_v46 = vsel %vm5857_vm15, %v1819_v32, %v1787_v4 }
 0x181   : > { %v369_v39 = vand.u32 255, %v7675_v22  ;;  %v5910_v12 = vand.u32 255, %v7676_v30  ;;  %v2139_v7 = vand.u32 8, %v467_v25  ;;  %v7677_v5 = vpack.c.bf16 %v4696_v9, %v4656_v54 }
 0x182   : > { %v7678_v23 = vpack.c.bf16 %v4730_v56, %v4689_v43  ;;  %vm1979_vm12 = vcmp.gt.s32.totalorder %v1947_v36, 0  ;;  %vm5922_vm10 = vcmp.gt.s32.totalorder %v2011_v35, 0  ;;  %vm5926_vm8 = vcmp.gt.s32.totalorder %v2075_v17, 0 }
 0x183   : > { %v401_v47 = vand.u32 15, %v369_v39  ;;  %v433_v6 = vshra.s32 %v369_v39, 4  ;;  %3107 = vmatpush3.bf16.xpose.msra.mxu0 %v7677_v5  ;;  %v5931_v58 = vand.u32 15, %v5910_v12  ;;  %vm5936_vm5 = vcmp.gt.s32.totalorder %v2139_v7, 0  ;;  %v5979_v5 = vpop.f32.mrb[30].mxu1 }
 0x184   : > { %3087 = vmatpush3.bf16.xpose.msra.mxu1 %v7678_v23  ;;  %v2203_v43 = vsel %vm1979_vm12, -0.6961928, %v7390_v10  ;;  %v2235_v9 = vsel %vm1979_vm12, -0.3949175, %v7391_v62  ;;  %v2299_v56 = vsel %vm1979_vm12, 0.0, %v7378_v44  ;;  %v5959_v32 = vmul.f32 %v5102_v14, %v1851_v46 }
 0x185   : > { %3088 = vmatprep.subr.bf16.mxu1 %v2702_v57  ;;  %v2267_v51 = vsel %vm1979_vm12, -0.18477343, %v7377_v13  ;;  %v2331_v33 = vsel %vm1979_vm12, 0.1609302, %v7363_v21  ;;  %v2363_v28 = vsel %vm1979_vm12, 0.33791524, %v7379_v18  ;;  %v2459_v19 = vsel %vm5922_vm10, %v2235_v9, %v2203_v43 }
 0x186   : > { %v2395_v8 = vsel %vm1979_vm12, 0.562617, %v7380_v48  ;;  %v2427_v57 = vsel %vm1979_vm12, 1.0, %v7364_v2  ;;  %v2491_v1 = vsel %vm5922_vm10, %v2299_v56, %v2267_v51  ;;  %v2523_v0 = vsel %vm5922_vm10, %v2363_v28, %v2331_v33 }
 0x187   : > { %v2555_v40 = vsel %vm5922_vm10, %v2427_v57, %v2395_v8  ;;  %v2587_v4 = vsel %vm5926_vm8, %v2491_v1, %v2459_v19  ;;  %v1145_v25 = vand.u32 1, %v401_v47  ;;  %v1209_v20 = vand.u32 2, %v401_v47 }
 0x188   : > { %v2619_v22 = vsel %vm5926_vm8, %v2555_v40, %v2523_v0  ;;  %v1273_v39 = vand.u32 4, %v401_v47  ;;  %v1337_v36 = vand.u32 8, %v401_v47  ;;  %v465_v30 = vand.u32 15, %v433_v6 }
 0x189   : > { %v2651_v35 = vsel %vm5936_vm5, %v2619_v22, %v2587_v4  ;;  %vm1177_vm9 = vcmp.gt.s32.totalorder %v1145_v25, 0  ;;  %vm5965_vm13 = vcmp.gt.s32.totalorder %v1209_v20, 0  ;;  %v1148_v47 = vand.u32 1, %v5931_v58 }
 0x18a   : > { %vm5969_vm1 = vcmp.gt.s32.totalorder %v1273_v39, 0  ;;  %vm5973_vm6 = vcmp.gt.s32.totalorder %v1337_v36, 0  ;;  %v1401_v46 = vsel %vm1177_vm9, -0.6961928, %v7390_v10  ;;  %v1433_v23 = vsel %vm1177_vm9, -0.3949175, %v7391_v62 }
 0x18b   : > { %v1465_v26 = vsel %vm1177_vm9, -0.18477343, %v7377_v13  ;;  %v1497_v6 = vsel %vm1177_vm9, 0.0, %v7378_v44  ;;  %v1625_v61 = vsel %vm1177_vm9, 1.0, %v7364_v2  ;;  %v7691_v54 = vpack.c.bf16 %v4711_v38, %v4667_v34  ;;  %v7707_v39 = vld [vmem:[#allocation24_spill] sm:$0xff] }
 0x18c   : > { %v1529_v43 = vsel %vm1177_vm9, 0.1609302, %v7363_v21  ;;  %v1561_v9 = vsel %vm1177_vm9, 0.33791524, %v7379_v18  ;;  %v1593_v56 = vsel %vm1177_vm9, 0.562617, %v7380_v48  ;;  %v1657_v51 = vsel %vm5965_vm13, %v1433_v23, %v1401_v46 }
 0x18d   : > { %3089 = vmatpush3.bf16.xpose.msra.mxu1 %v7691_v54  ;;  %v1689_v33 = vsel %vm5965_vm13, %v1497_v6, %v1465_v26  ;;  %v1721_v28 = vsel %vm5965_vm13, %v1561_v9, %v1529_v43  ;;  %v1753_v19 = vsel %vm5965_vm13, %v1625_v61, %v1593_v56  ;;  %v1945_v34 = vand.u32 1, %v465_v30  ;;  %v6039_v61 = vpop.f32.mrb[31].mxu0 }
 0x18e   : > { %v1785_v38 = vsel %vm5969_vm1, %v1689_v33, %v1657_v51  ;;  %v1817_v8 = vsel %vm5969_vm1, %v1753_v19, %v1721_v28  ;;  %v2009_v57 = vand.u32 2, %v465_v30  ;;  %v2073_v1 = vand.u32 4, %v465_v30 }
 0x18f   : > { %v6004_v0 = vmul.f32 %v5108_v50, %v2651_v35  ;;  %v1849_v40 = vsel %vm5973_vm6, %v1817_v8, %v1785_v38  ;;  %vm1977_vm14 = vcmp.gt.s32.totalorder %v1945_v34, 0  ;;  %v2137_v4 = vand.u32 8, %v465_v30  ;;  %v7702_v34 = vld [vmem:[#allocation23_spill] sm:$0xff] }
 0x190   : > { %vm6008_vm4 = vcmp.gt.s32.totalorder %v2009_v57, 0  ;;  %vm6012_vm3 = vcmp.gt.s32.totalorder %v2073_v1, 0  ;;  %v2201_v22 = vsel %vm1977_vm14, -0.6961928, %v7390_v10  ;;  %vm6017_vm2 = vcmp.gt.s32.totalorder %v1148_v47, 0  ;;  %v6072_v1 = vld [vmem:[%s3545_s29 + $0x30] sm:$0xff] }
 0x191   : > { %vm6021_vm11 = vcmp.gt.s32.totalorder %v2137_v4, 0  ;;  %v2233_v36 = vsel %vm1977_vm14, -0.3949175, %v7391_v62  ;;  %v2265_v35 = vsel %vm1977_vm14, -0.18477343, %v7377_v13  ;;  %v2297_v17 = vsel %vm1977_vm14, 0.0, %v7378_v44 }
 0x192   : > { %v2329_v30 = vsel %vm1977_vm14, 0.1609302, %v7363_v21  ;;  %v2361_v7 = vsel %vm1977_vm14, 0.33791524, %v7379_v18  ;;  %v2393_v14 = vsel %vm1977_vm14, 0.562617, %v7380_v48  ;;  %v2457_v46 = vsel %vm6008_vm4, %v2233_v36, %v2201_v22 }
 0x193   : > { %v2425_v47 = vsel %vm1977_vm14, 1.0, %v7364_v2  ;;  %v2489_v23 = vsel %vm6008_vm4, %v2297_v17, %v2265_v35  ;;  %v2521_v26 = vsel %vm6008_vm4, %v2361_v7, %v2329_v30  ;;  %v1212_v6 = vand.u32 2, %v5931_v58 }
 0x194   : > { %v2553_v54 = vsel %vm6008_vm4, %v2425_v47, %v2393_v14  ;;  %v2585_v43 = vsel %vm6012_vm3, %v2489_v23, %v2457_v46  ;;  %v1276_v9 = vand.u32 4, %v5931_v58  ;;  %v1340_v56 = vand.u32 8, %v5931_v58  ;;  %v6104_v46 = vpop.f32.mrb[31].mxu1 }
 0x195   : > { %v2617_v51 = vsel %vm6012_vm3, %v2553_v54, %v2521_v26  ;;  %vm6049_vm0 = vcmp.gt.s32.totalorder %v1212_v6, 0  ;;  %v1404_v28 = vsel %vm6017_vm2, -0.6961928, %v7390_v10  ;;  %v1436_v19 = vsel %vm6017_vm2, -0.3949175, %v7391_v62 }
 0x196   : > { %v6060_v38 = vmul.f32 %v1849_v40, %v7702_v34  ;;  %v2649_v58 = vsel %vm6021_vm11, %v2617_v51, %v2585_v43  ;;  %vm6064_vm7 = vcmp.gt.s32.totalorder %v1276_v9, 0  ;;  %v1468_v57 = vsel %vm6017_vm2, -0.18477343, %v7377_v13 }
 0x197   : > { %vm6074_vm15 = vcmp.gt.s32.totalorder %v1340_v56, 0  ;;  %v1500_v40 = vsel %vm6017_vm2, 0.0, %v7378_v44  ;;  %v1532_v25 = vsel %vm6017_vm2, 0.1609302, %v7363_v21  ;;  %v1564_v20 = vsel %vm6017_vm2, 0.33791524, %v7379_v18 }
 0x198   : > { %v1596_v22 = vsel %vm6017_vm2, 0.562617, %v7380_v48  ;;  %v1628_v50 = vsel %vm6017_vm2, 1.0, %v7364_v2  ;;  %v1660_v36 = vsel %vm6049_vm0, %v1436_v19, %v1404_v28  ;;  %v1692_v35 = vsel %vm6049_vm0, %v1500_v40, %v1468_v57  ;;  %v7708_v56 = vld [vmem:[#allocation26_spill] sm:$0xff] }
 0x199   : > { %v1724_v17 = vsel %vm6049_vm0, %v1564_v20, %v1532_v25  ;;  %v1756_v30 = vsel %vm6049_vm0, %v1628_v50, %v1596_v22  ;;  %v1788_v7 = vsel %vm6064_vm7, %v1692_v35, %v1660_v36  ;;  %v436_v14 = vshra.s32 %v5910_v12, 4 }
 0x19a   : > { %v6107_v47 = vmul.f32 %v2649_v58, %v7707_v39  ;;  %v1820_v23 = vsel %vm6064_vm7, %v1756_v30, %v1724_v17  ;;  %v370_v26 = vand.u32 255, %v338_v63  ;;  %v343_v6 = vunpack.c.2.s8 %v6072_v1 }
 0x19b   : > { %v1852_v54 = vsel %vm6074_vm15, %v1820_v23, %v1788_v7  ;;  %v468_v43 = vand.u32 15, %v436_v14  ;;  %v341_v9 = vunpack.c.0.s8 %v6072_v1  ;;  %v344_v12 = vunpack.c.3.s8 %v6072_v1 }
 0x19c   : > { %v6119_v51 = vmul.f32 %v7708_v56, %v1852_v54  ;;  %v402_v33 = vand.u32 15, %v370_v26  ;;  %v434_v28 = vshra.s32 %v370_v26, 4  ;;  %v6121_v19 = vand.u32 255, %v343_v6 }
 0x19d   : > { %v1948_v34 = vand.u32 1, %v468_v43  ;;  %v2012_v49 = vand.u32 2, %v468_v43  ;;  %v2076_v63 = vand.u32 4, %v468_v43  ;;  %v2140_v58 = vand.u32 8, %v468_v43 }
 0x19e   : > { %v1904_v8 = vpack.c.bf16 %v6119_v51, %v5959_v32  ;;  %v1146_v57 = vand.u32 1, %v402_v33  ;;  %v1210_v4 = vand.u32 2, %v402_v33  ;;  %v1274_v40 = vand.u32 4, %v402_v33 }
 0x19f   : > { %vm1980_vm12 = vcmp.gt.s32.totalorder %v1948_v34, 0  ;;  %vm6125_vm10 = vcmp.gt.s32.totalorder %v2012_v49, 0  ;;  %vm6129_vm8 = vcmp.gt.s32.totalorder %v2076_v63, 0  ;;  %vm6133_vm5 = vcmp.gt.s32.totalorder %v2140_v58, 0 }
 0x1a0   : > { %v2204_v50 = vsel %vm1980_vm12, -0.6961928, %v7390_v10  ;;  %v2236_v36 = vsel %vm1980_vm12, -0.3949175, %v7391_v62  ;;  %v2268_v35 = vsel %vm1980_vm12, -0.18477343, %v7377_v13  ;;  %v342_v17 = vunpack.c.1.s8 %v6072_v1 }
 0x1a1   : > { %v2300_v30 = vsel %vm1980_vm12, 0.0, %v7378_v44  ;;  %v2332_v7 = vsel %vm1980_vm12, 0.1609302, %v7363_v21  ;;  %v2364_v14 = vsel %vm1980_vm12, 0.33791524, %v7379_v18  ;;  %v2428_v39 = vsel %vm1980_vm12, 1.0, %v7364_v2 }
 0x1a2   : > { %v2396_v23 = vsel %vm1980_vm12, 0.562617, %v7380_v48  ;;  %v2460_v26 = vsel %vm6125_vm10, %v2236_v36, %v2204_v50  ;;  %v2492_v6 = vsel %vm6125_vm10, %v2300_v30, %v2268_v35  ;;  %v2524_v54 = vsel %vm6125_vm10, %v2364_v14, %v2332_v7  ;;  %v6198_v7 = vld [vmem:[%s3545_s29 + $0x38] sm:$0xff]  ;;  %s3293_s29 = sshll.u32 %s3377_s27, 4  ;;  %s3294_s29 = int_to_ptr.vmem [resolvable:$false] %s3293_s29 }
 0x1a3   : > { %v2556_v43 = vsel %vm6125_vm10, %v2428_v39, %v2396_v23  ;;  %v2588_v56 = vsel %vm6129_vm8, %v2492_v6, %v2460_v26  ;;  %vm6156_vm9 = vcmp.gt.s32.totalorder %v1146_v57, 0  ;;  %vm6160_vm13 = vcmp.gt.s32.totalorder %v1210_v4, 0  ;;  %s3295_s7 = scalar_lea.vmem %s3294_s29, 512  ;;  %p3296_p2 = scmp.lt.s32.totalorder %s7142_s15, %s3294_s29 }
 0x1a4   : > { %v2620_v63 = vsel %vm6129_vm8, %v2556_v43, %v2524_v54  ;;  %vm6166_vm1 = vcmp.gt.s32.totalorder %v1274_v40, 0  ;;  %v1338_v25 = vand.u32 8, %v402_v33  ;;  %v1402_v50 = vsel %vm6156_vm9, -0.6961928, %v7390_v10  ;;  %v7721_v33 = vld [vmem:[#allocation25_spill] sm:$0xff]  ;;  %p3297_p3 = scmp.lt.s32.totalorder %s3295_s7, %s3289_s25 }
 0x1a5   : > { %v2652_v57 = vsel %vm6133_vm5, %v2620_v63, %v2588_v56  ;;  %v1434_v4 = vsel %vm6156_vm9, -0.3949175, %v7391_v62  ;;  %v1466_v20 = vsel %vm6156_vm9, -0.18477343, %v7377_v13  ;;  %v1498_v40 = vsel %vm6156_vm9, 0.0, %v7378_v44 }
 0x1a6   : > { %v6185_v36 = vmul.f32 %v7721_v33, %v2652_v57  ;;  %vm6187_vm6 = vcmp.gt.s32.totalorder %v1338_v25, 0  ;;  %v1530_v22 = vsel %vm6156_vm9, 0.1609302, %v7363_v21  ;;  %v1562_v30 = vsel %vm6156_vm9, 0.33791524, %v7379_v18  ;;  %p3298_p5 = por %p3297_p3, %p3296_p2 }
 0x1a7   : > { %v1594_v14 = vsel %vm6156_vm9, 0.562617, %v7380_v48  ;;  %v1626_v39 = vsel %vm6156_vm9, 1.0, %v7364_v2  ;;  %v1658_v23 = vsel %vm6160_vm13, %v1434_v4, %v1402_v50  ;;  %v1690_v26 = vsel %vm6160_vm13, %v1498_v40, %v1466_v20  ;;  %v6269_v50 = vld [vmem:[%s7187_s0] sm:$0xf] }
 0x1a8   : > { %v2704_v6 = vpack.c.bf16 %v6185_v36, %v6004_v0  ;;  %v1722_v54 = vsel %vm6160_vm13, %v1562_v30, %v1530_v22  ;;  %v1754_v43 = vsel %vm6160_vm13, %v1626_v39, %v1594_v14  ;;  %v1786_v56 = vsel %vm6166_vm1, %v1690_v26, %v1658_v23  ;;  %3120 = vmatprep.mubr.bf16.mxu0 %v6269_v50  ;;  %p3299_p6 = pnand %p3298_p5, %p3292_p1 }
 0x1a9   : > { %v1818_v34 = vsel %vm6166_vm1, %v1754_v43, %v1722_v54  ;;  %v466_v63 = vand.u32 15, %v434_v28  ;;  %v407_v25 = vand.u32 15, %v6121_v19  ;;  %v439_v4 = vshra.s32 %v6121_v19, 4 }
 0x1aa   : > { %v1850_v57 = vsel %vm6187_vm6, %v1818_v34, %v1786_v56  ;;  %v6225_v20 = vand.u32 255, %v341_v9  ;;  %v6227_v49 = vand.u32 255, %v344_v12 }
 0x1ab   : > { %v1882_v40 = vmul.f32 %v1850_v57, %v5191_v3  ;;  %v1946_v33 = vand.u32 1, %v466_v63  ;;  %v2010_v22 = vand.u32 2, %v466_v63  ;;  %v2074_v58 = vand.u32 4, %v466_v63  ;;  %v6242_v3 = vld [vmem:[%s7187_s0 + $0x4] sm:$0xf] }
 0x1ac   : > { %v2138_v30 = vand.u32 8, %v466_v63  ;;  %v1151_v28 = vand.u32 1, %v407_v25  ;;  %v1215_v14 = vand.u32 2, %v407_v25  ;;  %v1279_v39 = vand.u32 4, %v407_v25  ;;  %3102 = vmatprep.mubr.bf16.mxu1 %v6242_v3 }
 0x1ad   : > { %v1903_v23 = vpack.c.bf16 %v1882_v40, %v6060_v38  ;;  %vm1978_vm14 = vcmp.gt.s32.totalorder %v1946_v33, 0  ;;  %vm6231_vm4 = vcmp.gt.s32.totalorder %v2010_v22, 0  ;;  %vm6235_vm3 = vcmp.gt.s32.totalorder %v2074_v58, 0  ;;  %v7730_v22 = vld [vmem:[#allocation13_spill] sm:$0xff]  ;;  %v7731_v58 = vld [vmem:[#allocation7_spill] sm:$0xff] }
 0x1ae   : > { %vm6244_vm2 = vcmp.gt.s32.totalorder %v2138_v30, 0  ;;  %v2202_v38 = vsel %vm1978_vm14, -0.6961928, %v7390_v10  ;;  %v2234_v19 = vsel %vm1978_vm14, -0.3949175, %v7391_v62  ;;  %v2298_v26 = vsel %vm1978_vm14, 0.0, %v7378_v44 }
 0x1af   : > { %v2266_v54 = vsel %vm1978_vm14, -0.18477343, %v7377_v13  ;;  %v2330_v43 = vsel %vm1978_vm14, 0.1609302, %v7363_v21  ;;  %v2362_v56 = vsel %vm1978_vm14, 0.33791524, %v7379_v18  ;;  %v2458_v34 = vsel %vm6231_vm4, %v2234_v19, %v2202_v38  ;;  %3108 = vmatprep.subr.bf16.mxu0 %v1903_v23 }
 0x1b0   : > { %v2394_v63 = vsel %vm1978_vm14, 0.562617, %v7380_v48  ;;  %v2426_v57 = vsel %vm1978_vm14, 1.0, %v7364_v2  ;;  %v2490_v40 = vsel %vm6231_vm4, %v2298_v26, %v2266_v54  ;;  %v2522_v33 = vsel %vm6231_vm4, %v2362_v56, %v2330_v43  ;;  %v7741_v54 = vld [vmem:[#allocation8_spill] sm:$0xff] }
 0x1b1   : > { %v7732_v30 = vpack.c.bf16 %v7730_v22, %v7731_v58  ;;  %v2554_v23 = vsel %vm6231_vm4, %v2426_v57, %v2394_v63  ;;  %v2586_v38 = vsel %vm6235_vm3, %v2490_v40, %v2458_v34  ;;  %vm6278_vm11 = vcmp.gt.s32.totalorder %v1151_v28, 0 }
 0x1b2   : > { %vm6282_vm0 = vcmp.gt.s32.totalorder %v1215_v14, 0  ;;  %v2618_v35 = vsel %vm6235_vm3, %v2554_v23, %v2522_v33  ;;  %vm6289_vm7 = vcmp.gt.s32.totalorder %v1279_v39, 0  ;;  %v1343_v43 = vand.u32 8, %v407_v25 }
 0x1b3   : > { %3109 = vmatpush3.bf16.xpose.msra.mxu0 %v7732_v30  ;;  %v1407_v32 = vsel %vm6278_vm11, -0.6961928, %v7390_v10  ;;  %v2650_v51 = vsel %vm6244_vm2, %v2618_v35, %v2586_v38  ;;  %v1471_v28 = vsel %vm6278_vm11, -0.18477343, %v7377_v13  ;;  %v1503_v14 = vsel %vm6278_vm11, 0.0, %v7378_v44 }
 0x1b4   : > { %3110 = vmatprep.subr.bf16.mxu0 %v1904_v8  ;;  %v1439_v8 = vsel %vm6278_vm11, -0.3949175, %v7391_v62  ;;  %v2682_v25 = vmul.f32 %v2650_v51, %v5255_v37  ;;  %vm6308_vm15 = vcmp.gt.s32.totalorder %v1343_v43, 0  ;;  %v1535_v9 = vsel %vm6278_vm11, 0.1609302, %v7363_v21  ;;  %v7742_v43 = vld [vmem:[#allocation34_spill] sm:$0xff] }
 0x1b5   : > { %v1567_v12 = vsel %vm6278_vm11, 0.33791524, %v7379_v18  ;;  %v1599_v56 = vsel %vm6278_vm11, 0.562617, %v7380_v48  ;;  %v1631_v37 = vsel %vm6278_vm11, 1.0, %v7364_v2  ;;  %v1663_v34 = vsel %vm6282_vm0, %v1439_v8, %v1407_v32  ;;  %v7744_v32 = vld [vmem:[#allocation12_spill] sm:$0xff] }
 0x1b6   : > { %v1695_v63 = vsel %vm6282_vm0, %v1503_v14, %v1471_v28  ;;  %v2703_v57 = vpack.c.bf16 %v2682_v25, %v6107_v47  ;;  %v1727_v40 = vsel %vm6282_vm0, %v1567_v12, %v1535_v9  ;;  %v1759_v33 = vsel %vm6282_vm0, %v1631_v37, %v1599_v56  ;;  %v7745_v51 = vld [vmem:[#allocation9_spill] sm:$0xff] }
 0x1b7   : > { %v1791_v22 = vsel %vm6289_vm7, %v1695_v63, %v1663_v34  ;;  %v1823_v58 = vsel %vm6289_vm7, %v1759_v33, %v1727_v40  ;;  %v471_v30 = vand.u32 15, %v439_v4  ;;  %v405_v23 = vand.u32 15, %v6225_v20 }
 0x1b8   : > { %v6340_v38 = vand.u32 255, %v342_v17  ;;  %3090 = vmatprep.subr.bf16.mxu1 %v2703_v57  ;;  %v1855_v47 = vsel %vm6308_vm15, %v1823_v58, %v1791_v22  ;;  %v437_v19 = vshra.s32 %v6225_v20, 4  ;;  %v6346_v26 = vand.u32 15, %v6227_v49 }
 0x1b9   : > { %v440_v35 = vshra.s32 %v6227_v49, 4  ;;  %v7743_v4 = vpack.c.bf16 %v7741_v54, %v7742_v43  ;;  %v7746_v1 = vpack.c.bf16 %v7744_v32, %v7745_v51  ;;  %v1951_v17 = vand.u32 1, %v471_v30 }
 0x1ba   : > { %v2015_v8 = vand.u32 2, %v471_v30  ;;  %v2079_v28 = vand.u32 4, %v471_v30  ;;  %v6356_v14 = vand.u32 15, %v6340_v38  ;;  %v6362_v20 = vmul.f32 %v5359_v16, %v1855_v47 }
 0x1bb   : > { %3111 = vmatpush3.bf16.xpose.msra.mxu0 %v7743_v4  ;;  %3091 = vmatpush3.bf16.xpose.msra.mxu1 %v7746_v1  ;;  %v2143_v25 = vand.u32 8, %v471_v30  ;;  %v1149_v39 = vand.u32 1, %v405_v23  ;;  %v1213_v9 = vand.u32 2, %v405_v23  ;;  %vm1983_vm12 = vcmp.gt.s32.totalorder %v1951_v17, 0 }
 0x1bc   : > { %3092 = vmatprep.subr.bf16.mxu1 %v2704_v6  ;;  %vm6364_vm10 = vcmp.gt.s32.totalorder %v2015_v8, 0  ;;  %vm6368_vm8 = vcmp.gt.s32.totalorder %v2079_v28, 0  ;;  %v1277_v37 = vand.u32 4, %v405_v23  ;;  %v2207_v34 = vsel %vm1983_vm12, -0.6961928, %v7390_v10 }
 0x1bd   : > { %v2239_v0 = vsel %vm1983_vm12, -0.3949175, %v7391_v62  ;;  %v2303_v16 = vsel %vm1983_vm12, 0.0, %v7378_v44  ;;  %v1341_v36 = vand.u32 8, %v405_v23  ;;  %v2271_v6 = vsel %vm1983_vm12, -0.18477343, %v7377_v13 }
 0x1be   : > { %v2335_v63 = vsel %vm1983_vm12, 0.1609302, %v7363_v21  ;;  %v2367_v57 = vsel %vm1983_vm12, 0.33791524, %v7379_v18  ;;  %v2463_v40 = vsel %vm6364_vm10, %v2239_v0, %v2207_v34  ;;  %v2399_v33 = vsel %vm1983_vm12, 0.562617, %v7380_v48 }
 0x1bf   : > { %v2431_v22 = vsel %vm1983_vm12, 1.0, %v7364_v2  ;;  %v2495_v58 = vsel %vm6364_vm10, %v2303_v16, %v2271_v6  ;;  %v2527_v30 = vsel %vm6364_vm10, %v2367_v57, %v2335_v63  ;;  %vm6386_vm5 = vcmp.gt.s32.totalorder %v2143_v25, 0  ;;  %v7759_v25 = vld [vmem:[#allocation11_spill] sm:$0xff] }
 0x1c0   : > { %v2559_v47 = vsel %vm6364_vm10, %v2431_v22, %v2399_v33  ;;  %v2591_v54 = vsel %vm6368_vm8, %v2495_v58, %v2463_v40  ;;  %vm1181_vm9 = vcmp.gt.s32.totalorder %v1149_v39, 0  ;;  %vm6396_vm13 = vcmp.gt.s32.totalorder %v1213_v9, 0  ;;  %v7760_v39 = vld [vmem:[#allocation35_spill] sm:$0xff] }
 0x1c1   : > { %v2623_v43 = vsel %vm6368_vm8, %v2559_v47, %v2527_v30  ;;  %vm6400_vm1 = vcmp.gt.s32.totalorder %v1277_v37, 0  ;;  %v1405_v51 = vsel %vm1181_vm9, -0.6961928, %v7390_v10  ;;  %vm6405_vm6 = vcmp.gt.s32.totalorder %v1341_v36, 0 }
 0x1c2   : > { %v1437_v17 = vsel %vm1181_vm9, -0.3949175, %v7391_v62  ;;  %v1469_v8 = vsel %vm1181_vm9, -0.18477343, %v7377_v13  ;;  %v1501_v28 = vsel %vm1181_vm9, 0.0, %v7378_v44  ;;  %v7761_v9 = vpack.c.bf16 %v7759_v25, %v7760_v39 }
 0x1c3   : > { %v2655_v12 = vsel %vm6386_vm5, %v2623_v43, %v2591_v54  ;;  %v1533_v56 = vsel %vm1181_vm9, 0.1609302, %v7363_v21  ;;  %v1565_v37 = vsel %vm1181_vm9, 0.33791524, %v7379_v18  ;;  %v1597_v34 = vsel %vm1181_vm9, 0.562617, %v7380_v48 }
 0x1c4   : > { %3093 = vmatpush3.bf16.xpose.msra.mxu1 %v7761_v9  ;;  %v1629_v0 = vsel %vm1181_vm9, 1.0, %v7364_v2  ;;  %v1661_v16 = vsel %vm6396_vm13, %v1437_v17, %v1405_v51  ;;  %v1693_v36 = vsel %vm6396_vm13, %v1501_v28, %v1469_v8  ;;  %v1725_v6 = vsel %vm6396_vm13, %v1565_v37, %v1533_v56 }
 0x1c5   : > { %v1757_v63 = vsel %vm6396_vm13, %v1629_v0, %v1597_v34  ;;  %v1789_v57 = vsel %vm6400_vm1, %v1693_v36, %v1661_v16  ;;  %v469_v40 = vand.u32 15, %v437_v19  ;;  %v1152_v33 = vand.u32 1, %v6346_v26 }
 0x1c6   : > { %v6433_v22 = vmul.f32 %v5361_v42, %v2655_v12  ;;  %v1821_v58 = vsel %vm6400_vm1, %v1757_v63, %v1725_v6  ;;  %v1216_v30 = vand.u32 2, %v6346_v26  ;;  %v1280_v23 = vand.u32 4, %v6346_v26 }
 0x1c7   : > { %v1949_v47 = vand.u32 1, %v469_v40  ;;  %v2013_v54 = vand.u32 2, %v469_v40  ;;  %v2077_v43 = vand.u32 4, %v469_v40  ;;  %v1344_v4 = vand.u32 8, %v6346_v26 }
 0x1c8   : > { %v1853_v19 = vsel %vm6405_vm6, %v1821_v58, %v1789_v57  ;;  %v2141_v51 = vand.u32 8, %v469_v40  ;;  %vm6442_vm14 = vcmp.gt.s32.totalorder %v1152_v33, 0  ;;  %vm6446_vm4 = vcmp.gt.s32.totalorder %v1216_v30, 0 }
 0x1c9   : > { %vm1981_vm3 = vcmp.gt.s32.totalorder %v1949_v47, 0  ;;  %vm6450_vm2 = vcmp.gt.s32.totalorder %v2013_v54, 0  ;;  %vm6454_vm11 = vcmp.gt.s32.totalorder %v2077_v43, 0  ;;  %vm6458_vm0 = vcmp.gt.s32.totalorder %v1280_v23, 0 }
 0x1ca   : > { %vm6462_vm7 = vcmp.gt.s32.totalorder %v2141_v51, 0  ;;  %v2205_v28 = vsel %vm1981_vm3, -0.6961928, %v7390_v10  ;;  %v2237_v25 = vsel %vm1981_vm3, -0.3949175, %v7391_v62  ;;  %v2301_v39 = vsel %vm1981_vm3, 0.0, %v7378_v44 }
 0x1cb   : > { %v2269_v9 = vsel %vm1981_vm3, -0.18477343, %v7377_v13  ;;  %v2333_v12 = vsel %vm1981_vm3, 0.1609302, %v7363_v21  ;;  %v2365_v56 = vsel %vm1981_vm3, 0.33791524, %v7379_v18  ;;  %v2461_v37 = vsel %vm6450_vm2, %v2237_v25, %v2205_v28 }
 0x1cc   : > { %v2397_v34 = vsel %vm1981_vm3, 0.562617, %v7380_v48  ;;  %v2429_v0 = vsel %vm1981_vm3, 1.0, %v7364_v2  ;;  %v2493_v16 = vsel %vm6450_vm2, %v2301_v39, %v2269_v9  ;;  %v2525_v36 = vsel %vm6450_vm2, %v2365_v56, %v2333_v12 }
 0x1cd   : > { %v2557_v6 = vsel %vm6450_vm2, %v2429_v0, %v2397_v34  ;;  %v6484_v63 = vsel %vm6454_vm11, %v2493_v16, %v2461_v37  ;;  %vm6486_vm15 = vcmp.gt.s32.totalorder %v1344_v4, 0  ;;  %v1408_v40 = vsel %vm6442_vm14, -0.6961928, %v7390_v10 }
 0x1ce   : > { %v6495_v33 = vsel %vm6454_vm11, %v2557_v6, %v2525_v36  ;;  %v1440_v58 = vsel %vm6442_vm14, -0.3949175, %v7391_v62  ;;  %v1472_v30 = vsel %vm6442_vm14, -0.18477343, %v7377_v13  ;;  %v1504_v23 = vsel %vm6442_vm14, 0.0, %v7378_v44 }
 0x1cf   : > { %v6507_v47 = vmul.f32 %v1853_v19, %v5415_v60  ;;  %v1536_v54 = vsel %vm6442_vm14, 0.1609302, %v7363_v21  ;;  %v1568_v43 = vsel %vm6442_vm14, 0.33791524, %v7379_v18  ;;  %v1600_v4 = vsel %vm6442_vm14, 0.562617, %v7380_v48 }
 0x1d0   : > { %v2653_v51 = vsel %vm6462_vm7, %v6495_v33, %v6484_v63  ;;  %v1632_v60 = vsel %vm6442_vm14, 1.0, %v7364_v2  ;;  %v1664_v19 = vsel %vm6446_vm4, %v1440_v58, %v1408_v40  ;;  %v1696_v32 = vsel %vm6446_vm4, %v1504_v23, %v1472_v30 }
 0x1d1   : > { %v1728_v8 = vsel %vm6446_vm4, %v1568_v43, %v1536_v54  ;;  %v1760_v28 = vsel %vm6446_vm4, %v1632_v60, %v1600_v4  ;;  %v1792_v25 = vsel %vm6458_vm0, %v1696_v32, %v1664_v19  ;;  %v472_v39 = vand.u32 15, %v440_v35 }
 0x1d2   : > { %v1824_v17 = vsel %vm6458_vm0, %v1760_v28, %v1728_v8  ;;  %v1150_v9 = vand.u32 1, %v6356_v14  ;;  %v1214_v12 = vand.u32 2, %v6356_v14  ;;  %v1278_v56 = vand.u32 4, %v6356_v14 }
 0x1d3   : > { %v1856_v37 = vsel %vm6486_vm15, %v1824_v17, %v1792_v25  ;;  %v1952_v42 = vand.u32 1, %v472_v39  ;;  %v2016_v34 = vand.u32 2, %v472_v39  ;;  %v2080_v0 = vand.u32 4, %v472_v39 }
 0x1d4   : > { %v6545_v16 = vmul.f32 %v5504_v41, %v1856_v37  ;;  %v2144_v49 = vand.u32 8, %v472_v39  ;;  %vm6547_vm12 = vcmp.gt.s32.totalorder %v1150_v9, 0  ;;  %vm6551_vm10 = vcmp.gt.s32.totalorder %v1214_v12, 0 }
 0x1d5   : > { %vm1984_vm8 = vcmp.gt.s32.totalorder %v1952_v42, 0  ;;  %vm6555_vm5 = vcmp.gt.s32.totalorder %v2016_v34, 0  ;;  %vm6559_vm9 = vcmp.gt.s32.totalorder %v2080_v0, 0  ;;  %vm6563_vm13 = vcmp.gt.s32.totalorder %v1278_v56, 0 }
 0x1d6   : > { %v1906_v57 = vpack.c.bf16 %v6545_v16, %v6362_v20  ;;  %vm6569_vm1 = vcmp.gt.s32.totalorder %v2144_v49, 0  ;;  %v2208_v58 = vsel %vm1984_vm8, -0.6961928, %v7390_v10  ;;  %v2240_v30 = vsel %vm1984_vm8, -0.3949175, %v7391_v62 }
 0x1d7   : > { %v2272_v23 = vsel %vm1984_vm8, -0.18477343, %v7377_v13  ;;  %v2304_v54 = vsel %vm1984_vm8, 0.0, %v7378_v44  ;;  %v2336_v43 = vsel %vm1984_vm8, 0.1609302, %v7363_v21  ;;  %v2432_v4 = vsel %vm1984_vm8, 1.0, %v7364_v2 }
 0x1d8   : > { %v2368_v60 = vsel %vm1984_vm8, 0.33791524, %v7379_v18  ;;  %v2400_v19 = vsel %vm1984_vm8, 0.562617, %v7380_v48  ;;  %v2464_v32 = vsel %vm6555_vm5, %v2240_v30, %v2208_v58  ;;  %v2496_v8 = vsel %vm6555_vm5, %v2304_v54, %v2272_v23 }
 0x1d9   : > { %v2528_v28 = vsel %vm6555_vm5, %v2368_v60, %v2336_v43  ;;  %v2560_v25 = vsel %vm6555_vm5, %v2432_v4, %v2400_v19  ;;  %v2592_v39 = vsel %vm6559_vm9, %v2496_v8, %v2464_v32  ;;  %v1342_v17 = vand.u32 8, %v6356_v14 }
 0x1da   : > { %v2624_v9 = vsel %vm6559_vm9, %v2560_v25, %v2528_v28  ;;  %v1406_v12 = vsel %vm6547_vm12, -0.6961928, %v7390_v10  ;;  %v1438_v56 = vsel %vm6547_vm12, -0.3949175, %v7391_v62  ;;  %v1470_v37 = vsel %vm6547_vm12, -0.18477343, %v7377_v13 }
 0x1db   : > { %v2656_v42 = vsel %vm6569_vm1, %v2624_v9, %v2592_v39  ;;  %vm6605_vm6 = vcmp.gt.s32.totalorder %v1342_v17, 0  ;;  %v1502_v34 = vsel %vm6547_vm12, 0.0, %v7378_v44  ;;  %v1534_v0 = vsel %vm6547_vm12, 0.1609302, %v7363_v21 }
 0x1dc   : > { %v6616_v49 = vmul.f32 %v5565_v53, %v2656_v42  ;;  %v1566_v36 = vsel %vm6547_vm12, 0.33791524, %v7379_v18  ;;  %v1598_v6 = vsel %vm6547_vm12, 0.562617, %v7380_v48  ;;  %v1630_v40 = vsel %vm6547_vm12, 1.0, %v7364_v2 }
 0x1dd   : > { %v1662_v58 = vsel %vm6551_vm10, %v1438_v56, %v1406_v12  ;;  %v1694_v30 = vsel %vm6551_vm10, %v1502_v34, %v1470_v37  ;;  %v1726_v53 = vsel %vm6551_vm10, %v1566_v36, %v1534_v0  ;;  %v1758_v23 = vsel %vm6551_vm10, %v1630_v40, %v1598_v6  ;;  %v7799_v0 = vld [vmem:[#allocation20_spill] sm:$0xff]  ;;  %v7800_v36 = vld [vmem:[#allocation14_spill] sm:$0xff] }
 0x1de   : > { %v2706_v54 = vpack.c.bf16 %v6616_v49, %v6433_v22  ;;  %v1790_v43 = vsel %vm6563_vm13, %v1694_v30, %v1662_v58  ;;  %v1822_v35 = vsel %vm6563_vm13, %v1758_v23, %v1726_v53  ;;  %v438_v4 = vshra.s32 %v6340_v38, 4 }
 0x1df   : > { %v1854_v60 = vsel %vm6605_vm6, %v1822_v35, %v1790_v43  ;;  %v7790_v19 = vunpack.c.2.s8 %v6198_v7  ;;  %v345_v26 = vunpack.c.0.s8 %v6198_v7  ;;  %v2685_v41 = vmul.f32 %v2653_v51, %v5462_v55 }
 0x1e0   : > { %v1886_v8 = vmul.f32 %v1854_v60, %v5591_v52  ;;  %v470_v28 = vand.u32 15, %v438_v4  ;;  %v348_v38 = vunpack.c.3.s8 %v6198_v7  ;;  %v7801_v6 = vpack.c.bf16 %v7799_v0, %v7800_v36 }
 0x1e1   : > { %v379_v32 = vand.u32 255, %v7790_v19  ;;  %v6656_v52 = vand.u32 255, %v345_v26 }
 0x1e2   : > { %v1905_v39 = vpack.c.bf16 %v1886_v8, %v6507_v47  ;;  %v1950_v17 = vand.u32 1, %v470_v28  ;;  %v2014_v9 = vand.u32 2, %v470_v28  ;;  %v2078_v12 = vand.u32 4, %v470_v28 }
 0x1e3   : > { %v411_v25 = vand.u32 15, %v379_v32  ;;  %v2142_v56 = vand.u32 8, %v470_v28  ;;  %v443_v42 = vshra.s32 %v379_v32, 4  ;;  %v409_v36 = vand.u32 15, %v6656_v52 }
 0x1e4   : > { %vm6658_vm14 = vcmp.gt.s32.totalorder %v1950_v17, 0  ;;  %vm6662_vm4 = vcmp.gt.s32.totalorder %v2014_v9, 0  ;;  %vm6666_vm3 = vcmp.gt.s32.totalorder %v2078_v12, 0  ;;  %3112 = vmatprep.subr.bf16.mxu0 %v1905_v39 }
 0x1e5   : > { %v1155_v37 = vand.u32 1, %v411_v25  ;;  %v1219_v63 = vand.u32 2, %v411_v25  ;;  %vm6670_vm2 = vcmp.gt.s32.totalorder %v2142_v56, 0  ;;  %v2206_v47 = vsel %vm6658_vm14, -0.6961928, %v7390_v10  ;;  %3113 = vmatpush3.bf16.xpose.msra.mxu0 %v7801_v6 }
 0x1e6   : > { %v2238_v51 = vsel %vm6658_vm14, -0.3949175, %v7391_v62  ;;  %v2302_v34 = vsel %vm6658_vm14, 0.0, %v7378_v44  ;;  %v2270_v40 = vsel %vm6658_vm14, -0.18477343, %v7377_v13  ;;  %3114 = vmatprep.subr.bf16.mxu0 %v1906_v57  ;;  %v2430_v43 = vsel %vm6658_vm14, 1.0, %v7364_v2 }
 0x1e7   : > { %v2334_v58 = vsel %vm6658_vm14, 0.1609302, %v7363_v21  ;;  %v2366_v30 = vsel %vm6658_vm14, 0.33791524, %v7379_v18  ;;  %v2462_v53 = vsel %vm6662_vm4, %v2238_v51, %v2206_v47  ;;  %v2398_v23 = vsel %vm6658_vm14, 0.562617, %v7380_v48 }
 0x1e8   : > { %v2494_v35 = vsel %vm6662_vm4, %v2302_v34, %v2270_v40  ;;  %v2526_v4 = vsel %vm6662_vm4, %v2366_v30, %v2334_v58  ;;  %v2558_v60 = vsel %vm6662_vm4, %v2430_v43, %v2398_v23  ;;  %vm1187_vm11 = vcmp.gt.s32.totalorder %v1155_v37, 0  ;;  %v7806_v51 = vld [vmem:[#allocation19_spill] sm:$0xff]  ;;  %v7807_v34 = vld [vmem:[#allocation10_spill] sm:$0xff]  ;;  %v7812_v23 = vld [vmem:[#allocation17_spill] sm:$0xff] }
 0x1e9   : > { %v2590_v20 = vsel %vm6666_vm3, %v2494_v35, %v2462_v53  ;;  %v1283_v16 = vand.u32 4, %v411_v25  ;;  %v2622_v57 = vsel %vm6666_vm3, %v2558_v60, %v2526_v4  ;;  %vm6716_vm0 = vcmp.gt.s32.totalorder %v1219_v63, 0  ;;  %v7811_v53 = vld [vmem:[#allocation22_spill] sm:$0xff] }
 0x1ea   : > { %v1347_v32 = vand.u32 8, %v411_v25  ;;  %v1411_v26 = vsel %vm1187_vm11, -0.6961928, %v7390_v10  ;;  %v2654_v8 = vsel %vm6670_vm2, %v2622_v57, %v2590_v20  ;;  %v1443_v28 = vsel %vm1187_vm11, -0.3949175, %v7391_v62 }
 0x1eb   : > { %v1475_v39 = vsel %vm1187_vm11, -0.18477343, %v7377_v13  ;;  %v1507_v17 = vsel %vm1187_vm11, 0.0, %v7378_v44  ;;  %v2686_v9 = vmul.f32 %v2654_v8, %v5662_v31  ;;  %v1539_v12 = vsel %vm1187_vm11, 0.1609302, %v7363_v21 }
 0x1ec   : > { %v1571_v56 = vsel %vm1187_vm11, 0.33791524, %v7379_v18  ;;  %v1603_v37 = vsel %vm1187_vm11, 0.562617, %v7380_v48  ;;  %vm6730_vm7 = vcmp.gt.s32.totalorder %v1283_v16, 0  ;;  %v1635_v14 = vsel %vm1187_vm11, 1.0, %v7364_v2 }
 0x1ed   : > { %v1667_v1 = vsel %vm6716_vm0, %v1443_v28, %v1411_v26  ;;  %v1699_v55 = vsel %vm6716_vm0, %v1507_v17, %v1475_v39  ;;  %v2705_v63 = vpack.c.bf16 %v2686_v9, %v2685_v41  ;;  %v1731_v31 = vsel %vm6716_vm0, %v1571_v56, %v1539_v12 }
 0x1ee   : > { %v1763_v33 = vsel %vm6716_vm0, %v1635_v14, %v1603_v37  ;;  %v475_v47 = vand.u32 15, %v443_v42  ;;  %v7808_v0 = vpack.c.bf16 %v7806_v51, %v7807_v34  ;;  %v6747_v6 = vand.u32 255, %v348_v38 }
 0x1ef   : > { %3094 = vmatprep.subr.bf16.mxu1 %v2705_v63  ;;  %vm6749_vm15 = vcmp.gt.s32.totalorder %v1347_v32, 0  ;;  %v7813_v43 = vpack.c.bf16 %v7811_v53, %v7812_v23  ;;  %v1795_v42 = vsel %vm6730_vm7, %v1699_v55, %v1667_v1  ;;  %v1827_v35 = vsel %vm6730_vm7, %v1763_v33, %v1731_v31 }
 0x1f0   : > { %3115 = vmatpush3.bf16.xpose.msra.mxu0 %v7808_v0  ;;  %v1955_v41 = vand.u32 1, %v475_v47  ;;  %v2019_v58 = vand.u32 2, %v475_v47  ;;  %v2083_v30 = vand.u32 4, %v475_v47  ;;  %v2147_v38 = vand.u32 8, %v475_v47 }
 0x1f1   : > { %3095 = vmatpush3.bf16.xpose.msra.mxu1 %v7813_v43  ;;  %v441_v4 = vshra.s32 %v6656_v52, 4  ;;  %v1153_v20 = vand.u32 1, %v409_v36  ;;  %v1217_v16 = vand.u32 2, %v409_v36  ;;  %v1281_v17 = vand.u32 4, %v409_v36 }
 0x1f2   : > { %3096 = vmatprep.subr.bf16.mxu1 %v2706_v54  ;;  %vm1987_vm12 = vcmp.gt.s32.totalorder %v1955_v41, 0  ;;  %vm6764_vm10 = vcmp.gt.s32.totalorder %v2019_v58, 0  ;;  %vm6768_vm8 = vcmp.gt.s32.totalorder %v2083_v30, 0  ;;  %v412_v37 = vand.u32 15, %v6747_v6  ;;  %v7825_v41 = vld [vmem:[#allocation15_spill] sm:$0xff] }
 0x1f3   : > { %v2211_v19 = vsel %vm1987_vm12, -0.6961928, %v7390_v10  ;;  %v2243_v32 = vsel %vm1987_vm12, -0.3949175, %v7391_v62  ;;  %v2307_v52 = vsel %vm1987_vm12, 0.0, %v7378_v44  ;;  %v2435_v28 = vsel %vm1987_vm12, 1.0, %v7364_v2 }
 0x1f4   : > { %v2275_v22 = vsel %vm1987_vm12, -0.18477343, %v7377_v13  ;;  %v2339_v49 = vsel %vm1987_vm12, 0.1609302, %v7363_v21  ;;  %v2371_v54 = vsel %vm1987_vm12, 0.33791524, %v7379_v18  ;;  %v2467_v26 = vsel %vm6764_vm10, %v2243_v32, %v2211_v19 }
 0x1f5   : > { %v2403_v8 = vsel %vm1987_vm12, 0.562617, %v7380_v48  ;;  %v2499_v39 = vsel %vm6764_vm10, %v2307_v52, %v2275_v22  ;;  %v2531_v9 = vsel %vm6764_vm10, %v2371_v54, %v2339_v49  ;;  %vm6788_vm5 = vcmp.gt.s32.totalorder %v1153_v20, 0 }
 0x1f6   : > { %v2563_v12 = vsel %vm6764_vm10, %v2435_v28, %v2403_v8  ;;  %vm6793_vm9 = vcmp.gt.s32.totalorder %v2147_v38, 0  ;;  %v2595_v14 = vsel %vm6768_vm8, %v2499_v39, %v2467_v26  ;;  %vm6799_vm13 = vcmp.gt.s32.totalorder %v1217_v16, 0 }
 0x1f7   : > { %v1409_v55 = vsel %vm6788_vm5, -0.6961928, %v7390_v10  ;;  %v1345_v63 = vand.u32 8, %v409_v36  ;;  %v1441_v31 = vsel %vm6788_vm5, -0.3949175, %v7391_v62  ;;  %v1505_v47 = vsel %vm6788_vm5, 0.0, %v7378_v44 }
 0x1f8   : > { %v1473_v33 = vsel %vm6788_vm5, -0.18477343, %v7377_v13  ;;  %v2627_v51 = vsel %vm6768_vm8, %v2563_v12, %v2531_v9  ;;  %vm1313_vm1 = vcmp.gt.s32.totalorder %v1281_v17, 0  ;;  %v1537_v34 = vsel %vm6788_vm5, 0.1609302, %v7363_v21  ;;  %v7824_v36 = vld [vmem:[#allocation18_spill] sm:$0xff] }
 0x1f9   : > { %v1569_v0 = vsel %vm6788_vm5, 0.33791524, %v7379_v18  ;;  %v7826_v58 = vpack.c.bf16 %v7824_v36, %v7825_v41  ;;  %v1601_v30 = vsel %vm6788_vm5, 0.562617, %v7380_v48  ;;  %v1633_v53 = vsel %vm6788_vm5, 1.0, %v7364_v2 }
 0x1fa   : > { %v1665_v23 = vsel %vm6799_vm13, %v1441_v31, %v1409_v55  ;;  %v1697_v43 = vsel %vm6799_vm13, %v1505_v47, %v1473_v33  ;;  %v1859_v38 = vsel %vm6749_vm15, %v1827_v35, %v1795_v42  ;;  %v1729_v60 = vsel %vm6799_vm13, %v1569_v0, %v1537_v34 }
 0x1fb   : > { %3097 = vmatpush3.bf16.xpose.msra.mxu1 %v7826_v58  ;;  %v1761_v20 = vsel %vm6799_vm13, %v1633_v53, %v1601_v30  ;;  %v6842_v16 = vand.u32 15, %v441_v4  ;;  %vm6844_vm6 = vcmp.gt.s32.totalorder %v1345_v63, 0  ;;  %v1793_v19 = vsel %vm1313_vm1, %v1697_v43, %v1665_v23 }
 0x1fc   : > { %v1825_v32 = vsel %vm1313_vm1, %v1761_v20, %v1729_v60  ;;  %v1156_v52 = vand.u32 1, %v412_v37  ;;  %v2659_v22 = vsel %vm6793_vm9, %v2627_v51, %v2595_v14  ;;  %v1220_v35 = vand.u32 2, %v412_v37 }
 0x1fd   : > { %v1953_v40 = vand.u32 1, %v6842_v16  ;;  %v2017_v42 = vand.u32 2, %v6842_v16  ;;  %v1857_v49 = vsel %vm6844_vm6, %v1825_v32, %v1793_v19  ;;  %v1284_v54 = vand.u32 4, %v412_v37 }
 0x1fe   : > { %v6859_v26 = vmul.f32 %v5774_v59, %v1859_v38  ;;  %v6862_v8 = vmul.f32 %v5786_v45, %v2659_v22  ;;  %vm6864_vm4 = vcmp.gt.s32.totalorder %v1156_v52, 0  ;;  %v346_v39 = vunpack.c.1.s8 %v6198_v7 }
 0x1ff   : > { %vm6854_vm14 = vcmp.gt.s32.totalorder %v1953_v40, 0  ;;  %vm6869_vm3 = vcmp.gt.s32.totalorder %v2017_v42, 0  ;;  %v2081_v9 = vand.u32 4, %v6842_v16  ;;  %v2145_v12 = vand.u32 8, %v6842_v16 }
 0x200   : > { %vm6875_vm2 = vcmp.gt.s32.totalorder %v1220_v35, 0  ;;  %v6880_v45 = vmul.f32 %v1857_v49, %v5827_v24  ;;  %v6885_v56 = vsel %vm6854_vm14, -0.6961928, %v7390_v10  ;;  %v6890_v7 = vsel %vm6854_vm14, -0.3949175, %v7391_v62 }
 0x201   : > { %v6895_v25 = vsel %vm6854_vm14, -0.18477343, %v7377_v13  ;;  %v6900_v24 = vsel %vm6854_vm14, 0.1609302, %v7363_v21  ;;  %vm6902_vm11 = vcmp.gt.s32.totalorder %v1284_v54, 0  ;;  %v1348_v1 = vand.u32 8, %v412_v37 }
 0x202   : > { %v1412_v55 = vsel %vm6864_vm4, -0.6961928, %v7390_v10  ;;  %v6912_v63 = vsel %vm6854_vm14, 0.0, %v7378_v44  ;;  %v1444_v31 = vsel %vm6864_vm4, -0.3949175, %v7391_v62  ;;  %v1508_v37 = vsel %vm6864_vm4, 0.0, %v7378_v44 }
 0x203   : > { %v1476_v33 = vsel %vm6864_vm4, -0.18477343, %v7377_v13  ;;  %v6926_v47 = vsel %vm6854_vm14, 0.33791524, %v7379_v18  ;;  %v2465_v51 = vsel %vm6869_vm3, %v6890_v7, %v6885_v56  ;;  %v1540_v34 = vsel %vm6864_vm4, 0.1609302, %v7363_v21 }
 0x204   : > { %v1572_v0 = vsel %vm6864_vm4, 0.33791524, %v7379_v18  ;;  %vm6938_vm0 = vcmp.gt.s32.totalorder %v1348_v1, 0  ;;  %v1604_v41 = vsel %vm6864_vm4, 0.562617, %v7380_v48  ;;  %v1636_v58 = vsel %vm6864_vm4, 1.0, %v7364_v2 }
 0x205   : > { %v1668_v30 = vsel %vm6875_vm2, %v1444_v31, %v1412_v55  ;;  %v1700_v53 = vsel %vm6875_vm2, %v1508_v37, %v1476_v33  ;;  %v1732_v23 = vsel %vm6875_vm2, %v1572_v0, %v1540_v34  ;;  %v1764_v43 = vsel %vm6875_vm2, %v1636_v58, %v1604_v41 }
 0x206   : > { %v444_v38 = vshra.s32 %v6747_v6, 4  ;;  %v6960_v60 = vsel %vm6854_vm14, 0.562617, %v7380_v48  ;;  %v1796_v20 = vsel %vm6902_vm11, %v1700_v53, %v1668_v30  ;;  %v1828_v16 = vsel %vm6902_vm11, %v1764_v43, %v1732_v23 }
 0x207   : > { %v6966_v57 = vand.u32 255, %v346_v39  ;;  %v2433_v19 = vsel %vm6854_vm14, 1.0, %v7364_v2  ;;  %v2497_v6 = vsel %vm6869_vm3, %v6912_v63, %v6895_v25  ;;  %v1860_v32 = vsel %vm6938_vm0, %v1828_v16, %v1796_v20 }
 0x208   : > { %v476_v52 = vand.u32 15, %v444_v38  ;;  %v2529_v22 = vsel %vm6869_vm3, %v6926_v47, %v6900_v24  ;;  %v6982_v40 = vmul.f32 %v5917_v27, %v1860_v32  ;;  %vm6986_vm7 = vcmp.gt.s32.totalorder %v2081_v9, 0 }
 0x209   : > { %v410_v42 = vand.u32 15, %v6966_v57  ;;  %v442_v35 = vshra.s32 %v6966_v57, 4  ;;  %v2561_v55 = vsel %vm6869_vm3, %v2433_v19, %v6960_v60  ;;  %vm7010_vm5 = vcmp.gt.s32.totalorder %v2145_v12, 0 }
 0x20a   : > { %v1956_v49 = vand.u32 1, %v476_v52  ;;  %v2020_v4 = vand.u32 2, %v476_v52  ;;  %v2084_v54 = vand.u32 4, %v476_v52  ;;  %v2148_v28 = vand.u32 8, %v476_v52 }
 0x20b   : > { %v1908_v59 = vpack.c.bf16 %v6982_v40, %v6859_v26  ;;  %v1154_v25 = vand.u32 1, %v410_v42  ;;  %v1218_v24 = vand.u32 2, %v410_v42  ;;  %v1282_v14 = vand.u32 4, %v410_v42  ;;  %v7868_v26 = vld [vmem:[#allocation31_spill] sm:$0xff] }
 0x20c   : > { %vm1988_vm15 = vcmp.gt.s32.totalorder %v1956_v49, 0  ;;  %vm6992_vm12 = vcmp.gt.s32.totalorder %v2020_v4, 0  ;;  %vm6996_vm10 = vcmp.gt.s32.totalorder %v2084_v54, 0  ;;  %vm7000_vm8 = vcmp.gt.s32.totalorder %v2148_v28, 0 }
 0x20d   : > { %v2212_v63 = vsel %vm1988_vm15, -0.6961928, %v7390_v10  ;;  %v2244_v31 = vsel %vm1988_vm15, -0.3949175, %v7391_v62  ;;  %v2276_v33 = vsel %vm1988_vm15, -0.18477343, %v7377_v13 }
 0x20e   : > { %v2308_v47 = vsel %vm1988_vm15, 0.0, %v7378_v44  ;;  %v2340_v34 = vsel %vm1988_vm15, 0.1609302, %v7363_v21  ;;  %v2372_v0 = vsel %vm1988_vm15, 0.33791524, %v7379_v18  ;;  %v2436_v36 = vsel %vm1988_vm15, 1.0, %v7364_v2 }
 0x20f   : > { %v2404_v41 = vsel %vm1988_vm15, 0.562617, %v7380_v48  ;;  %v2468_v58 = vsel %vm6992_vm12, %v2244_v31, %v2212_v63  ;;  %v2500_v30 = vsel %vm6992_vm12, %v2308_v47, %v2276_v33  ;;  %v2532_v12 = vsel %vm6992_vm12, %v2372_v0, %v2340_v34 }
 0x210   : > { %v2564_v53 = vsel %vm6992_vm12, %v2436_v36, %v2404_v41  ;;  %v2596_v23 = vsel %vm6996_vm10, %v2500_v30, %v2468_v58  ;;  %vm1186_vm9 = vcmp.gt.s32.totalorder %v1154_v25, 0  ;;  %vm7029_vm13 = vcmp.gt.s32.totalorder %v1218_v24, 0 }
 0x211   : > { %v2628_v38 = vsel %vm6996_vm10, %v2564_v53, %v2532_v12  ;;  %vm7035_vm1 = vcmp.gt.s32.totalorder %v1282_v14, 0  ;;  %v1346_v20 = vand.u32 8, %v410_v42  ;;  %v1410_v16 = vsel %vm1186_vm9, -0.6961928, %v7390_v10  ;;  %v7864_v53 = vld [vmem:[#allocation27_spill] sm:$0xff] }
 0x212   : > { %v2660_v57 = vsel %vm7000_vm8, %v2628_v38, %v2596_v23  ;;  %v1442_v19 = vsel %vm1186_vm9, -0.3949175, %v7391_v62  ;;  %v1474_v32 = vsel %vm1186_vm9, -0.18477343, %v7377_v13  ;;  %v1506_v52 = vsel %vm1186_vm9, 0.0, %v7378_v44  ;;  %v7865_v23 = vld [vmem:[#allocation21_spill] sm:$0xff] }
 0x213   : > { %v2692_v49 = vmul.f32 %v5979_v5, %v2660_v57  ;;  %vm7046_vm6 = vcmp.gt.s32.totalorder %v1346_v20, 0  ;;  %v1538_v54 = vsel %vm1186_vm9, 0.1609302, %v7363_v21  ;;  %v1570_v42 = vsel %vm1186_vm9, 0.33791524, %v7379_v18  ;;  %v7867_v38 = vld [vmem:[#allocation30_spill] sm:$0xff] }
 0x214   : > { %v1602_v28 = vsel %vm1186_vm9, 0.562617, %v7380_v48  ;;  %v1634_v25 = vsel %vm1186_vm9, 1.0, %v7364_v2  ;;  %v1666_v24 = vsel %vm7029_vm13, %v1442_v19, %v1410_v16  ;;  %v1698_v14 = vsel %vm7029_vm13, %v1506_v52, %v1474_v32 }
 0x215   : > { %v2708_v5 = vpack.c.bf16 %v2692_v49, %v6862_v8  ;;  %v1730_v27 = vsel %vm7029_vm13, %v1570_v42, %v1538_v54  ;;  %v1762_v1 = vsel %vm7029_vm13, %v1634_v25, %v1602_v28  ;;  %v1794_v9 = vsel %vm7035_vm1, %v1698_v14, %v1666_v24 }
 0x216   : > { %v2593_v63 = vsel %vm6986_vm7, %v2497_v6, %v2465_v51  ;;  %v2625_v8 = vsel %vm6986_vm7, %v2561_v55, %v2529_v22  ;;  %v1826_v31 = vsel %vm7035_vm1, %v1762_v1, %v1730_v27  ;;  %v474_v33 = vand.u32 15, %v442_v35 }
 0x217   : > { %v1858_v47 = vsel %vm7046_vm6, %v1826_v31, %v1794_v9  ;;  %v2657_v56 = vsel %vm7010_vm5, %v2625_v8, %v2593_v63  ;;  %v7866_v43 = vpack.c.bf16 %v7864_v53, %v7865_v23  ;;  %v7869_v40 = vpack.c.bf16 %v7867_v38, %v7868_v26 }
 0x218   : > { %v1890_v34 = vmul.f32 %v1858_v47, %v6039_v61  ;;  %v1954_v0 = vand.u32 1, %v474_v33  ;;  %v2018_v17 = vand.u32 2, %v474_v33  ;;  %v2082_v36 = vand.u32 4, %v474_v33 }
 0x219   : > { %v2146_v7 = vand.u32 8, %v474_v33 }
 0x21a   : > { %v1907_v51 = vpack.c.bf16 %v1890_v34, %v6880_v45  ;;  %vm1986_vm14 = vcmp.gt.s32.totalorder %v1954_v0, 0  ;;  %vm7082_vm4 = vcmp.gt.s32.totalorder %v2018_v17, 0  ;;  %vm7086_vm3 = vcmp.gt.s32.totalorder %v2082_v36, 0 }
 0x21b   : > { %vm7090_vm2 = vcmp.gt.s32.totalorder %v2146_v7, 0  ;;  %v2210_v35 = vsel %vm1986_vm14, -0.6961928, %v7390_v10  ;;  %v2242_v39 = vsel %vm1986_vm14, -0.3949175, %v7391_v62  ;;  %v2306_v55 = vsel %vm1986_vm14, 0.0, %v7378_v44 }
 0x21c   : > { %v2274_v45 = vsel %vm1986_vm14, -0.18477343, %v7377_v13  ;;  %v2338_v37 = vsel %vm1986_vm14, 0.1609302, %v7363_v21  ;;  %v2370_v41 = vsel %vm1986_vm14, 0.33791524, %v7379_v18  ;;  %v2466_v58 = vsel %vm7082_vm4, %v2242_v39, %v2210_v35  ;;  %3116 = vmatprep.subr.bf16.mxu0 %v1907_v51 }
 0x21d   : > { %v2402_v30 = vsel %vm1986_vm14, 0.562617, %v7380_v48  ;;  %v2434_v12 = vsel %vm1986_vm14, 1.0, %v7364_v2  ;;  %v2498_v10 = vsel %vm7082_vm4, %v2306_v55, %v2274_v45  ;;  %v2530_v44 = vsel %vm7082_vm4, %v2370_v41, %v2338_v37 }
 0x21e   : > { %v7863_v13 = vpack.c.bf16 %v5387_v29, %v5222_v11  ;;  %v2562_v21 = vsel %vm7082_vm4, %v2434_v12, %v2402_v30  ;;  %v2594_v18 = vsel %vm7086_vm3, %v2498_v10, %v2466_v58  ;;  %v2689_v2 = vmul.f32 %v2657_v56, %v5875_v15  ;;  %v7870_v15 = vld [vmem:[#allocation28_spill] sm:$0xff] }
 0x21f   : > { %v2626_v48 = vsel %vm7086_vm3, %v2562_v21, %v2530_v44 }
 0x220   : > { %3117 = vmatpush3.bf16.xpose.msra.mxu0 %v7863_v13  ;;  %v2658_v62 = vsel %vm7090_vm2, %v2626_v48, %v2594_v18 }
 0x221   : > { %3118 = vmatprep.subr.bf16.mxu0 %v1908_v59  ;;  %v2690_v11 = vmul.f32 %v2658_v62, %v6104_v46  ;;  %v7871_v59 = vld [vmem:[#allocation29_spill] sm:$0xff] }
 0x222   : > { %v7872_v60 = vpack.c.bf16 %v7870_v15, %v7871_v59 }
 0x223   : > { %v2707_v29 = vpack.c.bf16 %v2690_v11, %v2689_v2 }
 0x225   : > { %3098 = vmatprep.subr.bf16.mxu1 %v2707_v29 }
 0x226   : > { %3099 = vmatpush3.bf16.xpose.msra.mxu1 %v7869_v40 }
 0x227   : > { %3100 = vmatprep.subr.bf16.mxu1 %v2708_v5 }
 0x228   : > { %3119 = vmatpush3.bf16.xpose.msra.mxu0 %v7866_v43 }
 0x22e   : > { %3101 = vmatpush3.bf16.xpose.msra.mxu1 %v7872_v60 }
 0x22f   : > { %3121 = vmatmul.mubr.bf16.vlgmr.msra.gmra.mrb[32].mxu0 %v6269_v50 }
 0x235   : > { %3103 = vmatmul.mubr.bf16.vlgmr.msra.gmra.mrb[32].mxu1 %v6242_v3 }
 0x302   : > { %v2834_v46 = vpop.f32.mrb[32].mxu0 }
 0x303   : > { %v2836_v20 = vpop.f32.mrb[33].mxu0 }
 0x304   : > { %v2838_v16 = vpop.f32.mrb[34].mxu0 }
 0x305   : > { %v2839_v57 = vpop.f32.mrb[35].mxu0 }
 0x308   : > { %v2793_v19 = vpop.f32.mrb[32].mxu1 }
 0x309   : > { %v2835_v32 = vadd.f32 %v2834_v46, %v2793_v19  ;;  %v2795_v52 = vpop.f32.mrb[33].mxu1 }
 0x30a   : > { %v2837_v50 = vadd.f32 %v2836_v20, %v2795_v52  ;;  %v2797_v49 = vpop.f32.mrb[34].mxu1 }
 0x30b   : > { %2841 = vst [vmem:[%s279_s14] sm:$0xff] %v2835_v32  ;;  %v2798_v3 = vpop.f32.mrb[35].mxu1 }
 0x30c   : > { %2842 = vst [vmem:[%s279_s14 + $0x8] sm:$0xff] %v2837_v50 }
 0x30d   : > { %3302 = shalt.err (!%p3299_p6)
}
 0x30e   : > { %s3303_s8 = scalar_lea.hbm %s7140_s24, 256  ;;  %s3307_s11 = scalar_lea.hbm %s7192_s5, 512 }
 0x30f   : > { %p3304_p7 = scmp.ne.s32.totalorder %s7140_s24, %s3303_s8  ;;  %p3308_p11 = scmp.lt.u32.totalorder %s7140_s24, %s7192_s5 }
 0x310   : > { %p3309_p12 = scmp.lt.u32.totalorder %s3307_s11, %s3303_s8  ;;  %p3311_p0 = scmp.lt.u32.totalorder %s3303_s8, %s7140_s24 }
 0x311   : > { %p3305_p9 = pnand %p3304_p7, %p3448_p4 }
 0x312   : > { %p3310_p13 = por %p3309_p12, %p3308_p11 }
 0x313   : > { %p3306_p10 = pneg %p3305_p9 }
 0x314   : > { %p3312_p1 = por %p3311_p0, %p3310_p13 }
 0x316   : > { %p3313_p2 = pnand %p3312_p1, %p3306_p10 }
 0x318   : > { %3316 = shalt.err (!%p3313_p2)
}
 0x319   : > { %3194 = dma.vmem_to_hbm [thread:$0]  (%p3448_p4), %s7142_s15, 256, %s7140_s24, %s2844_s21  }
 0x31a PF: > { %p3200_p3 = scmp.ge.s32.totalorder %s3367_s23, 2  ;;  %s2872_s14 = sand.u32 1, %s3347_s18  }
 0x31b   : > { %s2873_s16 = scalar_lea.sflag [#allocation5], %s2872_s14 }
 0x31c   : > { %p3197_p5 = pnand %p3200_p3, %p3455_p8 }
 0x31e   : > { %3342 = dma.done.wait (!%p3197_p5), %s2873_s16, 256  }
 0x31f   : > { %3344 = vsyncadd (!%p3197_p5), %s2873_s16, 4294967040  ;;  %s18_s23 = sadd.s32 1, %s3367_s23   ;;  %s7873_s18 = smov %s3351_s19 }
 0x320   : > { %p15_p6 = scmp.ge.s32.totalorder %s18_s23, 4   ;;  %s7874_s19 = smov %s3355_s20 }
 0x321   : > { %s7875_s20 = smov %s3461_s6  ;;  %s7876_s21 = smov %s3363_s22 }
 0x322   : > { %s7877_s22 = smov %s7879_s26  ;;  %17 = sbr.rel (!%p15_p6) target bundleno = 4 (0x4), region = 88 }
 0x329   :  { %2878 = vsyncpa [#allocation5], 1 }
 0x32a   :  { %2880 = vsyncpa [#allocation5 + $0x1], 1 }

</bundles_post_ra>
